<compile_context>
chip_gen: v5e
topology: v5e:2x2
jax: 0.10.0
libtpu: 0.0.40
codegen_flags: <defaults>
</compile_context>

<pallas_src>
import functools

import jax
import jax.numpy as jnp
from jax import lax
from jax.experimental import pallas as pl
from jax.experimental.pallas import tpu as pltpu


def _conv3x3_acc(act, w_ref, bias, mask_l, mask_r, W):
    """3x3 'same' conv as 9 accumulated per-tap GEMMs.

    act:    (Cin, H*W) f32 value (lane-dense).
    w_ref:  (9, Cout, Cin) bf16 ref, tap order (ky, kx).
    bias:   (Cout, 1) f32 value.
    mask_l: (1, H*W) bool, valid where x >= 1   (for dx = -1 taps).
    mask_r: (1, H*W) bool, valid where x <= W-2 (for dx = +1 taps).
    """
    Cin, HW = act.shape
    Cout = w_ref.shape[1]

    # Zero-extend the flat spatial axis: handles all dy (row) taps for free.
    zpad = jnp.zeros((Cin, W + 1), jnp.float32)
    padded = jnp.concatenate([zpad, act, zpad], axis=1)       # (Cin, HW + 2W + 2)

    acc = jnp.zeros((Cout, HW), jnp.float32)
    t = 0
    for ky in range(3):
        for kx in range(3):
            dy, dx = ky - 1, kx - 1
            off = (W + 1) + dy * W + dx                       # static lane offset
            tap = padded[:, off:off + HW]                     # (Cin, HW) f32
            if dx == -1:                                      # only dx!=0 taps need a mask
                tap = jnp.where(mask_l, tap, 0.0)
            elif dx == 1:
                tap = jnp.where(mask_r, tap, 0.0)
            # bf16 operands, f32 accumulation on the MXU.
            acc = acc + jnp.dot(w_ref[t], tap.astype(jnp.bfloat16),
                                preferred_element_type=jnp.float32)
            t += 1
    return acc + bias                                         # (Cout, HW) f32


def reconstruct_kernel(x_ref, w1_ref, w2_ref, w3_ref, wl_ref, b_ref, o_ref,
                       *, H, W, mid, dim, outc):
    HW = H * W
    x = x_ref[0]                                              # (dim, HW) f32, no re-cast

    # Two column-validity masks (hoisted once, shared by all four convs).
    xx = lax.broadcasted_iota(jnp.int32, (1, HW), 1) % W
    mask_l = xx >= 1
    mask_r = xx <= W - 2

    # Packed biases: single DMA'd input, static sublane slices (offsets 0/16/32/64).
    b1 = b_ref[0:mid]
    b2 = b_ref[mid:2 * mid]
    b3 = b_ref[2 * mid:2 * mid + dim]
    bl = b_ref[2 * mid + dim:2 * mid + dim + outc]

    leaky = lambda v: jnp.maximum(v, 0.2 * v)                 # LeakyReLU(0.2), f32

    h = leaky(_conv3x3_acc(x, w1_ref, b1, mask_l, mask_r, W))
    h = leaky(_conv3x3_acc(h, w2_ref, b2, mask_l, mask_r, W))
    h = _conv3x3_acc(h, w3_ref, b3, mask_l, mask_r, W)
    out = _conv3x3_acc(h, wl_ref, bl, mask_l, mask_r, W)

    o_ref[0] = out.astype(o_ref.dtype)                        # lane-dense (Cout, 256) store


def _prep_w(w):
    """PyTorch OIHW (Cout, Cin, 3, 3) -> (9, Cout, Cin) bf16, tap order (ky, kx)."""
    Cout, Cin = w.shape[0], w.shape[1]
    return jnp.transpose(w, (2, 3, 0, 1)).reshape(9, Cout, Cin).astype(jnp.bfloat16)


def reconstruct_forward(x_nchw, p):
    """x_nchw: (B, dim, H, W) float32. Returns (B, out_channels, H, W)."""
    B, C, H, W = x_nchw.shape
    HW = H * W
    mid = p["w1"].shape[0]
    dim = p["w3"].shape[0]
    outc = p["w_last"].shape[0]
    assert C == dim and mid == dim // 2

    x_flat = x_nchw.reshape(B, C, HW)                         # free reshape, lane-dense

    w1 = _prep_w(p["w1"])
    w2 = _prep_w(p["w2"])
    w3 = _prep_w(p["w3"])
    wl = _prep_w(p["w_last"])
    b_all = jnp.concatenate(
        [p["b1"], p["b2"], p["b3"], p["b_last"]]).reshape(-1, 1).astype(jnp.float32)

    bmap = lambda b: (b, 0, 0)
    wmap = lambda b: (0, 0, 0)
    in_specs = [
        pl.BlockSpec((1, C, HW), bmap),                       # x (lane-dense)
        pl.BlockSpec(w1.shape, wmap),
        pl.BlockSpec(w2.shape, wmap),
        pl.BlockSpec(w3.shape, wmap),
        pl.BlockSpec(wl.shape, wmap),
        pl.BlockSpec(b_all.shape, lambda b: (0, 0)),          # packed biases
    ]

    kernel = functools.partial(reconstruct_kernel,
                               H=H, W=W, mid=mid, dim=dim, outc=outc)

    flops = 2 * B * HW * 9 * (mid * dim + mid * mid + dim * mid + outc * dim)
    bytes_accessed = (x_flat.size * 4
                      + (w1.size + w2.size + w3.size + wl.size) * 2
                      + b_all.size * 4
                      + B * outc * HW * 4)

    out_flat = pl.pallas_call(
        kernel,
        out_shape=jax.ShapeDtypeStruct((B, outc, HW), x_nchw.dtype),
        grid_spec=pltpu.PrefetchScalarGridSpec(
            num_scalar_prefetch=0,
            grid=(B,),
            in_specs=in_specs,
            out_specs=pl.BlockSpec((1, outc, HW), bmap),      # lane-dense stores
        ),
        compiler_params=pltpu.CompilerParams(
            dimension_semantics=("parallel",),                # v7x: 2 TCs, B=2
            vmem_limit_bytes=32 * 1024 * 1024),
        cost_estimate=pl.CostEstimate(
            flops=flops, transcendentals=0, bytes_accessed=bytes_accessed),
    )(x_flat, w1, w2, w3, wl, b_all)

    return out_flat.reshape(B, outc, H, W)


def reconstruct_reference(x, p):
    """Pure-JAX f32 reference mirroring the PyTorch forward (NCHW, OIHW)."""
    def conv3x3(v, w, b):
        out = lax.conv_general_dilated(
            v, w, window_strides=(1, 1), padding=((1, 1), (1, 1)),
            dimension_numbers=("NCHW", "OIHW", "NCHW"),
            precision=lax.Precision.HIGHEST)
        return out + b[None, :, None, None]

    def lrelu(v):
        return jnp.where(v >= 0, v, 0.2 * v)

    h = lrelu(conv3x3(x, p["w1"], p["b1"]))
    h = lrelu(conv3x3(h, p["w2"], p["b2"]))
    h = conv3x3(h, p["w3"], p["b3"])
    return conv3x3(h, p["w_last"], p["b_last"])


def make_params(key, dim, out_channels):
    ks = jax.random.split(key, 8)
    s = 0.1
    mid = dim // 2
    return {
        "w1": s * jax.random.normal(ks[0], (mid, dim, 3, 3), jnp.float32),
        "b1": s * jax.random.normal(ks[1], (mid,), jnp.float32),
        "w2": s * jax.random.normal(ks[2], (mid, mid, 3, 3), jnp.float32),
        "b2": s * jax.random.normal(ks[3], (mid,), jnp.float32),
        "w3": s * jax.random.normal(ks[4], (dim, mid, 3, 3), jnp.float32),
        "b3": s * jax.random.normal(ks[5], (dim,), jnp.float32),
        "w_last": s * jax.random.normal(ks[6], (out_channels, dim, 3, 3), jnp.float32),
        "b_last": s * jax.random.normal(ks[7], (out_channels,), jnp.float32),
    }


if __name__ == "__main__":
    B, dim, H, W = 2, 32, 16, 16      # small: dim=32, dim//2=16, H*W=256
    out_channels = 3

    key = jax.random.PRNGKey(0)
    kx, kp = jax.random.split(key)
    x = jax.random.normal(kx, (B, dim, H, W), jnp.float32)
    params = make_params(kp, dim, out_channels)

    out = jax.block_until_ready(reconstruct_forward(x, params))
    ref = jax.block_until_ready(reconstruct_reference(x, params))

    assert out.shape == (B, out_channels, H, W)
    max_err = float(jnp.max(jnp.abs(out - ref)))
    scale = float(jnp.max(jnp.abs(ref)))
    # bf16 MXU operands with f32 accumulation: check with a relative tolerance.
    assert max_err <= 3e-2 * max(scale, 1.0), \
        f"mismatch vs reference: {max_err} (ref max {scale})"
    print("KERNEL_OK")
</pallas_src>

<mosaic_0001>
module attributes {stable_mosaic.version = 11 : i64} {
  func.func @reconstruct_kernel(%arg0: i32, %arg1: memref<1x32x256xf32, #tpu.memory_space<vmem>>, %arg2: memref<9x16x32xbf16, #tpu.memory_space<vmem>>, %arg3: memref<9x16x16xbf16, #tpu.memory_space<vmem>>, %arg4: memref<9x32x16xbf16, #tpu.memory_space<vmem>>, %arg5: memref<9x3x32xbf16, #tpu.memory_space<vmem>>, %arg6: memref<67x1xf32, #tpu.memory_space<vmem>>, %arg7: memref<1x3x256xf32, #tpu.memory_space<vmem>>) attributes {dimension_semantics = [#tpu.dimension_semantics<parallel>], iteration_bounds = array<i64: 2>, scalar_prefetch = 0 : i64, scratch_operands = 0 : i64, tpu.core_type = #tpu.core_type<tc>, window_params = [{transform_indices = @transform_0, window_bounds = array<i64: 1, 32, 256>}, {pipeline_mode = #tpu.pipeline_mode<synchronous>, transform_indices = @transform_1, window_bounds = array<i64: 9, 16, 32>}, {pipeline_mode = #tpu.pipeline_mode<synchronous>, transform_indices = @transform_2, window_bounds = array<i64: 9, 16, 16>}, {pipeline_mode = #tpu.pipeline_mode<synchronous>, transform_indices = @transform_3, window_bounds = array<i64: 9, 32, 16>}, {pipeline_mode = #tpu.pipeline_mode<synchronous>, transform_indices = @transform_4, window_bounds = array<i64: 9, 3, 32>}, {pipeline_mode = #tpu.pipeline_mode<synchronous>, transform_indices = @transform_5, window_bounds = array<i64: 67, 1>}, {transform_indices = @transform_6, window_bounds = array<i64: 1, 3, 256>}]} {
    %c0 = arith.constant 0 : index
    %c0_0 = arith.constant 0 : index
    %c0_1 = arith.constant 0 : index
    %0 = vector.load %arg1[%c0, %c0_0, %c0_1] : memref<1x32x256xf32, #tpu.memory_space<vmem>>, vector<1x32x256xf32>
    %1 = vector.shape_cast %0 : vector<1x32x256xf32> to vector<32x256xf32>
    %2 = tpu.iota {dimensions = array<i32: 1>} : vector<1x256xi32>
    %c16_i32 = arith.constant 16 : i32
    %c0_i32 = arith.constant 0 : i32
    %3 = arith.cmpi eq, %c16_i32, %c0_i32 : i32
    %c1_i32 = arith.constant 1 : i32
    %4 = arith.select %3, %c1_i32, %c16_i32 : i32
    %5 = vector.broadcast %4 : i32 to vector<1x256xi32>
    %6 = arith.remsi %2, %5 : vector<1x256xi32>
    %c0_i32_2 = arith.constant 0 : i32
    %7 = vector.broadcast %c0_i32_2 : i32 to vector<1x256xi32>
    %8 = arith.cmpi ne, %6, %7 : vector<1x256xi32>
    %c0_i32_3 = arith.constant 0 : i32
    %9 = vector.broadcast %c0_i32_3 : i32 to vector<1x256xi32>
    %10 = arith.cmpi slt, %6, %9 : vector<1x256xi32>
    %c0_i32_4 = arith.constant 0 : i32
    %11 = arith.cmpi slt, %4, %c0_i32_4 : i32
    %12 = vector.broadcast %11 : i1 to vector<1x256xi1>
    %13 = vector.broadcast %12 : vector<1x256xi1> to vector<1x256xi1>
    %14 = arith.xori %10, %13 : vector<1x256xi1>
    %15 = arith.andi %14, %8 : vector<1x256xi1>
    %16 = vector.broadcast %4 : i32 to vector<1x256xi32>
    %17 = arith.addi %6, %16 : vector<1x256xi32>
    %18 = arith.select %15, %17, %6 : vector<1x256xi1>, vector<1x256xi32>
    %c1_i32_5 = arith.constant 1 : i32
    %19 = vector.broadcast %c1_i32_5 : i32 to vector<1x256xi32>
    %20 = arith.cmpi sge, %18, %19 : vector<1x256xi32>
    %c14_i32 = arith.constant 14 : i32
    %21 = vector.broadcast %c14_i32 : i32 to vector<1x256xi32>
    %22 = arith.cmpi sle, %18, %21 : vector<1x256xi32>
    %c0_6 = arith.constant 0 : index
    %c0_7 = arith.constant 0 : index
    %23 = vector.load %arg6[%c0_6, %c0_7] : memref<67x1xf32, #tpu.memory_space<vmem>>, vector<16x1xf32>
    %c16 = arith.constant 16 : index
    %c0_8 = arith.constant 0 : index
    %24 = vector.load %arg6[%c16, %c0_8] : memref<67x1xf32, #tpu.memory_space<vmem>>, vector<16x1xf32>
    %c32 = arith.constant 32 : index
    %c0_9 = arith.constant 0 : index
    %25 = vector.load %arg6[%c32, %c0_9] : memref<67x1xf32, #tpu.memory_space<vmem>>, vector<32x1xf32>
    %c64 = arith.constant 64 : index
    %c0_10 = arith.constant 0 : index
    %26 = vector.load %arg6[%c64, %c0_10] : memref<67x1xf32, #tpu.memory_space<vmem>>, vector<3x1xf32>
    %cst = arith.constant 0.000000e+00 : f32
    %27 = vector.broadcast %cst : f32 to vector<32x17xf32>
    %28 = tpu.concatenate %27, %1, %27 in 1 : vector<32x17xf32>, vector<32x256xf32>, vector<32x17xf32> -> vector<32x290xf32>
    %cst_11 = arith.constant 0.000000e+00 : f32
    %29 = vector.broadcast %cst_11 : f32 to vector<16x256xf32>
    %30 = vector.extract_strided_slice %28 {offsets = [0, 0], sizes = [32, 256], strides = [1, 1]} : vector<32x290xf32> to vector<32x256xf32>
    %cst_12 = arith.constant 0.000000e+00 : f32
    %31 = vector.shape_cast %20 : vector<1x256xi1> to vector<1x256xi1>
    %32 = vector.broadcast %31 : vector<1x256xi1> to vector<32x256xi1>
    %33 = vector.broadcast %cst_12 : f32 to vector<32x256xf32>
    %34 = arith.select %32, %30, %33 : vector<32x256xi1>, vector<32x256xf32>
    %c0_13 = arith.constant 0 : index
    %c0_14 = arith.constant 0 : index
    %c0_15 = arith.constant 0 : index
    %35 = vector.load %arg2[%c0_13, %c0_14, %c0_15] : memref<9x16x32xbf16, #tpu.memory_space<vmem>>, vector<1x16x32xbf16>
    %36 = vector.shape_cast %35 : vector<1x16x32xbf16> to vector<16x32xbf16>
    %37 = arith.truncf %34 : vector<32x256xf32> to vector<32x256xbf16>
    %cst_16 = arith.constant dense<0.000000e+00> : vector<16x256xf32>
    %38 = tpu.matmul %36, %37, %cst_16 {dimension_numbers = #tpu.dot_dimension_numbers<[1], [0], [0], [1], [0, 0, 1, 1], [], []>} : vector<16x32xbf16>, vector<32x256xbf16>, vector<16x256xf32> -> vector<16x256xf32>
    %39 = arith.addf %29, %38 : vector<16x256xf32>
    %40 = vector.extract_strided_slice %28 {offsets = [0, 1], sizes = [32, 256], strides = [1, 1]} : vector<32x290xf32> to vector<32x256xf32>
    %c1 = arith.constant 1 : index
    %c0_17 = arith.constant 0 : index
    %c0_18 = arith.constant 0 : index
    %41 = vector.load %arg2[%c1, %c0_17, %c0_18] : memref<9x16x32xbf16, #tpu.memory_space<vmem>>, vector<1x16x32xbf16>
    %42 = vector.shape_cast %41 : vector<1x16x32xbf16> to vector<16x32xbf16>
    %43 = arith.truncf %40 : vector<32x256xf32> to vector<32x256xbf16>
    %cst_19 = arith.constant dense<0.000000e+00> : vector<16x256xf32>
    %44 = tpu.matmul %42, %43, %cst_19 {dimension_numbers = #tpu.dot_dimension_numbers<[1], [0], [0], [1], [0, 0, 1, 1], [], []>} : vector<16x32xbf16>, vector<32x256xbf16>, vector<16x256xf32> -> vector<16x256xf32>
    %45 = arith.addf %39, %44 : vector<16x256xf32>
    %46 = vector.extract_strided_slice %28 {offsets = [0, 2], sizes = [32, 256], strides = [1, 1]} : vector<32x290xf32> to vector<32x256xf32>
    %cst_20 = arith.constant 0.000000e+00 : f32
    %47 = vector.shape_cast %22 : vector<1x256xi1> to vector<1x256xi1>
    %48 = vector.broadcast %47 : vector<1x256xi1> to vector<32x256xi1>
    %49 = vector.broadcast %cst_20 : f32 to vector<32x256xf32>
    %50 = arith.select %48, %46, %49 : vector<32x256xi1>, vector<32x256xf32>
    %c2 = arith.constant 2 : index
    %c0_21 = arith.constant 0 : index
    %c0_22 = arith.constant 0 : index
    %51 = vector.load %arg2[%c2, %c0_21, %c0_22] : memref<9x16x32xbf16, #tpu.memory_space<vmem>>, vector<1x16x32xbf16>
    %52 = vector.shape_cast %51 : vector<1x16x32xbf16> to vector<16x32xbf16>
    %53 = arith.truncf %50 : vector<32x256xf32> to vector<32x256xbf16>
    %cst_23 = arith.constant dense<0.000000e+00> : vector<16x256xf32>
    %54 = tpu.matmul %52, %53, %cst_23 {dimension_numbers = #tpu.dot_dimension_numbers<[1], [0], [0], [1], [0, 0, 1, 1], [], []>} : vector<16x32xbf16>, vector<32x256xbf16>, vector<16x256xf32> -> vector<16x256xf32>
    %55 = arith.addf %45, %54 : vector<16x256xf32>
    %56 = vector.extract_strided_slice %28 {offsets = [0, 16], sizes = [32, 256], strides = [1, 1]} : vector<32x290xf32> to vector<32x256xf32>
    %cst_24 = arith.constant 0.000000e+00 : f32
    %57 = vector.shape_cast %20 : vector<1x256xi1> to vector<1x256xi1>
    %58 = vector.broadcast %57 : vector<1x256xi1> to vector<32x256xi1>
    %59 = vector.broadcast %cst_24 : f32 to vector<32x256xf32>
    %60 = arith.select %58, %56, %59 : vector<32x256xi1>, vector<32x256xf32>
    %c3 = arith.constant 3 : index
    %c0_25 = arith.constant 0 : index
    %c0_26 = arith.constant 0 : index
    %61 = vector.load %arg2[%c3, %c0_25, %c0_26] : memref<9x16x32xbf16, #tpu.memory_space<vmem>>, vector<1x16x32xbf16>
    %62 = vector.shape_cast %61 : vector<1x16x32xbf16> to vector<16x32xbf16>
    %63 = arith.truncf %60 : vector<32x256xf32> to vector<32x256xbf16>
    %cst_27 = arith.constant dense<0.000000e+00> : vector<16x256xf32>
    %64 = tpu.matmul %62, %63, %cst_27 {dimension_numbers = #tpu.dot_dimension_numbers<[1], [0], [0], [1], [0, 0, 1, 1], [], []>} : vector<16x32xbf16>, vector<32x256xbf16>, vector<16x256xf32> -> vector<16x256xf32>
    %65 = arith.addf %55, %64 : vector<16x256xf32>
    %66 = vector.extract_strided_slice %28 {offsets = [0, 17], sizes = [32, 256], strides = [1, 1]} : vector<32x290xf32> to vector<32x256xf32>
    %c4 = arith.constant 4 : index
    %c0_28 = arith.constant 0 : index
    %c0_29 = arith.constant 0 : index
    %67 = vector.load %arg2[%c4, %c0_28, %c0_29] : memref<9x16x32xbf16, #tpu.memory_space<vmem>>, vector<1x16x32xbf16>
    %68 = vector.shape_cast %67 : vector<1x16x32xbf16> to vector<16x32xbf16>
    %69 = arith.truncf %66 : vector<32x256xf32> to vector<32x256xbf16>
    %cst_30 = arith.constant dense<0.000000e+00> : vector<16x256xf32>
    %70 = tpu.matmul %68, %69, %cst_30 {dimension_numbers = #tpu.dot_dimension_numbers<[1], [0], [0], [1], [0, 0, 1, 1], [], []>} : vector<16x32xbf16>, vector<32x256xbf16>, vector<16x256xf32> -> vector<16x256xf32>
    %71 = arith.addf %65, %70 : vector<16x256xf32>
    %72 = vector.extract_strided_slice %28 {offsets = [0, 18], sizes = [32, 256], strides = [1, 1]} : vector<32x290xf32> to vector<32x256xf32>
    %cst_31 = arith.constant 0.000000e+00 : f32
    %73 = vector.shape_cast %22 : vector<1x256xi1> to vector<1x256xi1>
    %74 = vector.broadcast %73 : vector<1x256xi1> to vector<32x256xi1>
    %75 = vector.broadcast %cst_31 : f32 to vector<32x256xf32>
    %76 = arith.select %74, %72, %75 : vector<32x256xi1>, vector<32x256xf32>
    %c5 = arith.constant 5 : index
    %c0_32 = arith.constant 0 : index
    %c0_33 = arith.constant 0 : index
    %77 = vector.load %arg2[%c5, %c0_32, %c0_33] : memref<9x16x32xbf16, #tpu.memory_space<vmem>>, vector<1x16x32xbf16>
    %78 = vector.shape_cast %77 : vector<1x16x32xbf16> to vector<16x32xbf16>
    %79 = arith.truncf %76 : vector<32x256xf32> to vector<32x256xbf16>
    %cst_34 = arith.constant dense<0.000000e+00> : vector<16x256xf32>
    %80 = tpu.matmul %78, %79, %cst_34 {dimension_numbers = #tpu.dot_dimension_numbers<[1], [0], [0], [1], [0, 0, 1, 1], [], []>} : vector<16x32xbf16>, vector<32x256xbf16>, vector<16x256xf32> -> vector<16x256xf32>
    %81 = arith.addf %71, %80 : vector<16x256xf32>
    %82 = vector.extract_strided_slice %28 {offsets = [0, 32], sizes = [32, 256], strides = [1, 1]} : vector<32x290xf32> to vector<32x256xf32>
    %cst_35 = arith.constant 0.000000e+00 : f32
    %83 = vector.shape_cast %20 : vector<1x256xi1> to vector<1x256xi1>
    %84 = vector.broadcast %83 : vector<1x256xi1> to vector<32x256xi1>
    %85 = vector.broadcast %cst_35 : f32 to vector<32x256xf32>
    %86 = arith.select %84, %82, %85 : vector<32x256xi1>, vector<32x256xf32>
    %c6 = arith.constant 6 : index
    %c0_36 = arith.constant 0 : index
    %c0_37 = arith.constant 0 : index
    %87 = vector.load %arg2[%c6, %c0_36, %c0_37] : memref<9x16x32xbf16, #tpu.memory_space<vmem>>, vector<1x16x32xbf16>
    %88 = vector.shape_cast %87 : vector<1x16x32xbf16> to vector<16x32xbf16>
    %89 = arith.truncf %86 : vector<32x256xf32> to vector<32x256xbf16>
    %cst_38 = arith.constant dense<0.000000e+00> : vector<16x256xf32>
    %90 = tpu.matmul %88, %89, %cst_38 {dimension_numbers = #tpu.dot_dimension_numbers<[1], [0], [0], [1], [0, 0, 1, 1], [], []>} : vector<16x32xbf16>, vector<32x256xbf16>, vector<16x256xf32> -> vector<16x256xf32>
    %91 = arith.addf %81, %90 : vector<16x256xf32>
    %92 = vector.extract_strided_slice %28 {offsets = [0, 33], sizes = [32, 256], strides = [1, 1]} : vector<32x290xf32> to vector<32x256xf32>
    %c7 = arith.constant 7 : index
    %c0_39 = arith.constant 0 : index
    %c0_40 = arith.constant 0 : index
    %93 = vector.load %arg2[%c7, %c0_39, %c0_40] : memref<9x16x32xbf16, #tpu.memory_space<vmem>>, vector<1x16x32xbf16>
    %94 = vector.shape_cast %93 : vector<1x16x32xbf16> to vector<16x32xbf16>
    %95 = arith.truncf %92 : vector<32x256xf32> to vector<32x256xbf16>
    %cst_41 = arith.constant dense<0.000000e+00> : vector<16x256xf32>
    %96 = tpu.matmul %94, %95, %cst_41 {dimension_numbers = #tpu.dot_dimension_numbers<[1], [0], [0], [1], [0, 0, 1, 1], [], []>} : vector<16x32xbf16>, vector<32x256xbf16>, vector<16x256xf32> -> vector<16x256xf32>
    %97 = arith.addf %91, %96 : vector<16x256xf32>
    %98 = vector.extract_strided_slice %28 {offsets = [0, 34], sizes = [32, 256], strides = [1, 1]} : vector<32x290xf32> to vector<32x256xf32>
    %cst_42 = arith.constant 0.000000e+00 : f32
    %99 = vector.shape_cast %22 : vector<1x256xi1> to vector<1x256xi1>
    %100 = vector.broadcast %99 : vector<1x256xi1> to vector<32x256xi1>
    %101 = vector.broadcast %cst_42 : f32 to vector<32x256xf32>
    %102 = arith.select %100, %98, %101 : vector<32x256xi1>, vector<32x256xf32>
    %c8 = arith.constant 8 : index
    %c0_43 = arith.constant 0 : index
    %c0_44 = arith.constant 0 : index
    %103 = vector.load %arg2[%c8, %c0_43, %c0_44] : memref<9x16x32xbf16, #tpu.memory_space<vmem>>, vector<1x16x32xbf16>
    %104 = vector.shape_cast %103 : vector<1x16x32xbf16> to vector<16x32xbf16>
    %105 = arith.truncf %102 : vector<32x256xf32> to vector<32x256xbf16>
    %cst_45 = arith.constant dense<0.000000e+00> : vector<16x256xf32>
    %106 = tpu.matmul %104, %105, %cst_45 {dimension_numbers = #tpu.dot_dimension_numbers<[1], [0], [0], [1], [0, 0, 1, 1], [], []>} : vector<16x32xbf16>, vector<32x256xbf16>, vector<16x256xf32> -> vector<16x256xf32>
    %107 = arith.addf %97, %106 : vector<16x256xf32>
    %108 = vector.broadcast %23 : vector<16x1xf32> to vector<16x256xf32>
    %109 = arith.addf %107, %108 : vector<16x256xf32>
    %cst_46 = arith.constant 2.000000e-01 : f32
    %110 = vector.broadcast %cst_46 : f32 to vector<16x256xf32>
    %111 = arith.mulf %110, %109 : vector<16x256xf32>
    %112 = arith.maximumf %109, %111 : vector<16x256xf32>
    %cst_47 = arith.constant 0.000000e+00 : f32
    %113 = vector.broadcast %cst_47 : f32 to vector<16x17xf32>
    %114 = tpu.concatenate %113, %112, %113 in 1 : vector<16x17xf32>, vector<16x256xf32>, vector<16x17xf32> -> vector<16x290xf32>
    %cst_48 = arith.constant 0.000000e+00 : f32
    %115 = vector.broadcast %cst_48 : f32 to vector<16x256xf32>
    %116 = vector.extract_strided_slice %114 {offsets = [0, 0], sizes = [16, 256], strides = [1, 1]} : vector<16x290xf32> to vector<16x256xf32>
    %cst_49 = arith.constant 0.000000e+00 : f32
    %117 = vector.shape_cast %20 : vector<1x256xi1> to vector<1x256xi1>
    %118 = vector.broadcast %117 : vector<1x256xi1> to vector<16x256xi1>
    %119 = vector.broadcast %cst_49 : f32 to vector<16x256xf32>
    %120 = arith.select %118, %116, %119 : vector<16x256xi1>, vector<16x256xf32>
    %c0_50 = arith.constant 0 : index
    %c0_51 = arith.constant 0 : index
    %c0_52 = arith.constant 0 : index
    %121 = vector.load %arg3[%c0_50, %c0_51, %c0_52] : memref<9x16x16xbf16, #tpu.memory_space<vmem>>, vector<1x16x16xbf16>
    %122 = vector.shape_cast %121 : vector<1x16x16xbf16> to vector<16x16xbf16>
    %123 = arith.truncf %120 : vector<16x256xf32> to vector<16x256xbf16>
    %cst_53 = arith.constant dense<0.000000e+00> : vector<16x256xf32>
    %124 = tpu.matmul %122, %123, %cst_53 {dimension_numbers = #tpu.dot_dimension_numbers<[1], [0], [0], [1], [0, 0, 1, 1], [], []>} : vector<16x16xbf16>, vector<16x256xbf16>, vector<16x256xf32> -> vector<16x256xf32>
    %125 = arith.addf %115, %124 : vector<16x256xf32>
    %126 = vector.extract_strided_slice %114 {offsets = [0, 1], sizes = [16, 256], strides = [1, 1]} : vector<16x290xf32> to vector<16x256xf32>
    %c1_54 = arith.constant 1 : index
    %c0_55 = arith.constant 0 : index
    %c0_56 = arith.constant 0 : index
    %127 = vector.load %arg3[%c1_54, %c0_55, %c0_56] : memref<9x16x16xbf16, #tpu.memory_space<vmem>>, vector<1x16x16xbf16>
    %128 = vector.shape_cast %127 : vector<1x16x16xbf16> to vector<16x16xbf16>
    %129 = arith.truncf %126 : vector<16x256xf32> to vector<16x256xbf16>
    %cst_57 = arith.constant dense<0.000000e+00> : vector<16x256xf32>
    %130 = tpu.matmul %128, %129, %cst_57 {dimension_numbers = #tpu.dot_dimension_numbers<[1], [0], [0], [1], [0, 0, 1, 1], [], []>} : vector<16x16xbf16>, vector<16x256xbf16>, vector<16x256xf32> -> vector<16x256xf32>
    %131 = arith.addf %125, %130 : vector<16x256xf32>
    %132 = vector.extract_strided_slice %114 {offsets = [0, 2], sizes = [16, 256], strides = [1, 1]} : vector<16x290xf32> to vector<16x256xf32>
    %cst_58 = arith.constant 0.000000e+00 : f32
    %133 = vector.shape_cast %22 : vector<1x256xi1> to vector<1x256xi1>
    %134 = vector.broadcast %133 : vector<1x256xi1> to vector<16x256xi1>
    %135 = vector.broadcast %cst_58 : f32 to vector<16x256xf32>
    %136 = arith.select %134, %132, %135 : vector<16x256xi1>, vector<16x256xf32>
    %c2_59 = arith.constant 2 : index
    %c0_60 = arith.constant 0 : index
    %c0_61 = arith.constant 0 : index
    %137 = vector.load %arg3[%c2_59, %c0_60, %c0_61] : memref<9x16x16xbf16, #tpu.memory_space<vmem>>, vector<1x16x16xbf16>
    %138 = vector.shape_cast %137 : vector<1x16x16xbf16> to vector<16x16xbf16>
    %139 = arith.truncf %136 : vector<16x256xf32> to vector<16x256xbf16>
    %cst_62 = arith.constant dense<0.000000e+00> : vector<16x256xf32>
    %140 = tpu.matmul %138, %139, %cst_62 {dimension_numbers = #tpu.dot_dimension_numbers<[1], [0], [0], [1], [0, 0, 1, 1], [], []>} : vector<16x16xbf16>, vector<16x256xbf16>, vector<16x256xf32> -> vector<16x256xf32>
    %141 = arith.addf %131, %140 : vector<16x256xf32>
    %142 = vector.extract_strided_slice %114 {offsets = [0, 16], sizes = [16, 256], strides = [1, 1]} : vector<16x290xf32> to vector<16x256xf32>
    %cst_63 = arith.constant 0.000000e+00 : f32
    %143 = vector.shape_cast %20 : vector<1x256xi1> to vector<1x256xi1>
    %144 = vector.broadcast %143 : vector<1x256xi1> to vector<16x256xi1>
    %145 = vector.broadcast %cst_63 : f32 to vector<16x256xf32>
    %146 = arith.select %144, %142, %145 : vector<16x256xi1>, vector<16x256xf32>
    %c3_64 = arith.constant 3 : index
    %c0_65 = arith.constant 0 : index
    %c0_66 = arith.constant 0 : index
    %147 = vector.load %arg3[%c3_64, %c0_65, %c0_66] : memref<9x16x16xbf16, #tpu.memory_space<vmem>>, vector<1x16x16xbf16>
    %148 = vector.shape_cast %147 : vector<1x16x16xbf16> to vector<16x16xbf16>
    %149 = arith.truncf %146 : vector<16x256xf32> to vector<16x256xbf16>
    %cst_67 = arith.constant dense<0.000000e+00> : vector<16x256xf32>
    %150 = tpu.matmul %148, %149, %cst_67 {dimension_numbers = #tpu.dot_dimension_numbers<[1], [0], [0], [1], [0, 0, 1, 1], [], []>} : vector<16x16xbf16>, vector<16x256xbf16>, vector<16x256xf32> -> vector<16x256xf32>
    %151 = arith.addf %141, %150 : vector<16x256xf32>
    %152 = vector.extract_strided_slice %114 {offsets = [0, 17], sizes = [16, 256], strides = [1, 1]} : vector<16x290xf32> to vector<16x256xf32>
    %c4_68 = arith.constant 4 : index
    %c0_69 = arith.constant 0 : index
    %c0_70 = arith.constant 0 : index
    %153 = vector.load %arg3[%c4_68, %c0_69, %c0_70] : memref<9x16x16xbf16, #tpu.memory_space<vmem>>, vector<1x16x16xbf16>
    %154 = vector.shape_cast %153 : vector<1x16x16xbf16> to vector<16x16xbf16>
    %155 = arith.truncf %152 : vector<16x256xf32> to vector<16x256xbf16>
    %cst_71 = arith.constant dense<0.000000e+00> : vector<16x256xf32>
    %156 = tpu.matmul %154, %155, %cst_71 {dimension_numbers = #tpu.dot_dimension_numbers<[1], [0], [0], [1], [0, 0, 1, 1], [], []>} : vector<16x16xbf16>, vector<16x256xbf16>, vector<16x256xf32> -> vector<16x256xf32>
    %157 = arith.addf %151, %156 : vector<16x256xf32>
    %158 = vector.extract_strided_slice %114 {offsets = [0, 18], sizes = [16, 256], strides = [1, 1]} : vector<16x290xf32> to vector<16x256xf32>
    %cst_72 = arith.constant 0.000000e+00 : f32
    %159 = vector.shape_cast %22 : vector<1x256xi1> to vector<1x256xi1>
    %160 = vector.broadcast %159 : vector<1x256xi1> to vector<16x256xi1>
    %161 = vector.broadcast %cst_72 : f32 to vector<16x256xf32>
    %162 = arith.select %160, %158, %161 : vector<16x256xi1>, vector<16x256xf32>
    %c5_73 = arith.constant 5 : index
    %c0_74 = arith.constant 0 : index
    %c0_75 = arith.constant 0 : index
    %163 = vector.load %arg3[%c5_73, %c0_74, %c0_75] : memref<9x16x16xbf16, #tpu.memory_space<vmem>>, vector<1x16x16xbf16>
    %164 = vector.shape_cast %163 : vector<1x16x16xbf16> to vector<16x16xbf16>
    %165 = arith.truncf %162 : vector<16x256xf32> to vector<16x256xbf16>
    %cst_76 = arith.constant dense<0.000000e+00> : vector<16x256xf32>
    %166 = tpu.matmul %164, %165, %cst_76 {dimension_numbers = #tpu.dot_dimension_numbers<[1], [0], [0], [1], [0, 0, 1, 1], [], []>} : vector<16x16xbf16>, vector<16x256xbf16>, vector<16x256xf32> -> vector<16x256xf32>
    %167 = arith.addf %157, %166 : vector<16x256xf32>
    %168 = vector.extract_strided_slice %114 {offsets = [0, 32], sizes = [16, 256], strides = [1, 1]} : vector<16x290xf32> to vector<16x256xf32>
    %cst_77 = arith.constant 0.000000e+00 : f32
    %169 = vector.shape_cast %20 : vector<1x256xi1> to vector<1x256xi1>
    %170 = vector.broadcast %169 : vector<1x256xi1> to vector<16x256xi1>
    %171 = vector.broadcast %cst_77 : f32 to vector<16x256xf32>
    %172 = arith.select %170, %168, %171 : vector<16x256xi1>, vector<16x256xf32>
    %c6_78 = arith.constant 6 : index
    %c0_79 = arith.constant 0 : index
    %c0_80 = arith.constant 0 : index
    %173 = vector.load %arg3[%c6_78, %c0_79, %c0_80] : memref<9x16x16xbf16, #tpu.memory_space<vmem>>, vector<1x16x16xbf16>
    %174 = vector.shape_cast %173 : vector<1x16x16xbf16> to vector<16x16xbf16>
    %175 = arith.truncf %172 : vector<16x256xf32> to vector<16x256xbf16>
    %cst_81 = arith.constant dense<0.000000e+00> : vector<16x256xf32>
    %176 = tpu.matmul %174, %175, %cst_81 {dimension_numbers = #tpu.dot_dimension_numbers<[1], [0], [0], [1], [0, 0, 1, 1], [], []>} : vector<16x16xbf16>, vector<16x256xbf16>, vector<16x256xf32> -> vector<16x256xf32>
    %177 = arith.addf %167, %176 : vector<16x256xf32>
    %178 = vector.extract_strided_slice %114 {offsets = [0, 33], sizes = [16, 256], strides = [1, 1]} : vector<16x290xf32> to vector<16x256xf32>
    %c7_82 = arith.constant 7 : index
    %c0_83 = arith.constant 0 : index
    %c0_84 = arith.constant 0 : index
    %179 = vector.load %arg3[%c7_82, %c0_83, %c0_84] : memref<9x16x16xbf16, #tpu.memory_space<vmem>>, vector<1x16x16xbf16>
    %180 = vector.shape_cast %179 : vector<1x16x16xbf16> to vector<16x16xbf16>
    %181 = arith.truncf %178 : vector<16x256xf32> to vector<16x256xbf16>
    %cst_85 = arith.constant dense<0.000000e+00> : vector<16x256xf32>
    %182 = tpu.matmul %180, %181, %cst_85 {dimension_numbers = #tpu.dot_dimension_numbers<[1], [0], [0], [1], [0, 0, 1, 1], [], []>} : vector<16x16xbf16>, vector<16x256xbf16>, vector<16x256xf32> -> vector<16x256xf32>
    %183 = arith.addf %177, %182 : vector<16x256xf32>
    %184 = vector.extract_strided_slice %114 {offsets = [0, 34], sizes = [16, 256], strides = [1, 1]} : vector<16x290xf32> to vector<16x256xf32>
    %cst_86 = arith.constant 0.000000e+00 : f32
    %185 = vector.shape_cast %22 : vector<1x256xi1> to vector<1x256xi1>
    %186 = vector.broadcast %185 : vector<1x256xi1> to vector<16x256xi1>
    %187 = vector.broadcast %cst_86 : f32 to vector<16x256xf32>
    %188 = arith.select %186, %184, %187 : vector<16x256xi1>, vector<16x256xf32>
    %c8_87 = arith.constant 8 : index
    %c0_88 = arith.constant 0 : index
    %c0_89 = arith.constant 0 : index
    %189 = vector.load %arg3[%c8_87, %c0_88, %c0_89] : memref<9x16x16xbf16, #tpu.memory_space<vmem>>, vector<1x16x16xbf16>
    %190 = vector.shape_cast %189 : vector<1x16x16xbf16> to vector<16x16xbf16>
    %191 = arith.truncf %188 : vector<16x256xf32> to vector<16x256xbf16>
    %cst_90 = arith.constant dense<0.000000e+00> : vector<16x256xf32>
    %192 = tpu.matmul %190, %191, %cst_90 {dimension_numbers = #tpu.dot_dimension_numbers<[1], [0], [0], [1], [0, 0, 1, 1], [], []>} : vector<16x16xbf16>, vector<16x256xbf16>, vector<16x256xf32> -> vector<16x256xf32>
    %193 = arith.addf %183, %192 : vector<16x256xf32>
    %194 = vector.broadcast %24 : vector<16x1xf32> to vector<16x256xf32>
    %195 = arith.addf %193, %194 : vector<16x256xf32>
    %cst_91 = arith.constant 2.000000e-01 : f32
    %196 = vector.broadcast %cst_91 : f32 to vector<16x256xf32>
    %197 = arith.mulf %196, %195 : vector<16x256xf32>
    %198 = arith.maximumf %195, %197 : vector<16x256xf32>
    %cst_92 = arith.constant 0.000000e+00 : f32
    %199 = vector.broadcast %cst_92 : f32 to vector<16x17xf32>
    %200 = tpu.concatenate %199, %198, %199 in 1 : vector<16x17xf32>, vector<16x256xf32>, vector<16x17xf32> -> vector<16x290xf32>
    %cst_93 = arith.constant 0.000000e+00 : f32
    %201 = vector.broadcast %cst_93 : f32 to vector<32x256xf32>
    %202 = vector.extract_strided_slice %200 {offsets = [0, 0], sizes = [16, 256], strides = [1, 1]} : vector<16x290xf32> to vector<16x256xf32>
    %cst_94 = arith.constant 0.000000e+00 : f32
    %203 = vector.shape_cast %20 : vector<1x256xi1> to vector<1x256xi1>
    %204 = vector.broadcast %203 : vector<1x256xi1> to vector<16x256xi1>
    %205 = vector.broadcast %cst_94 : f32 to vector<16x256xf32>
    %206 = arith.select %204, %202, %205 : vector<16x256xi1>, vector<16x256xf32>
    %c0_95 = arith.constant 0 : index
    %c0_96 = arith.constant 0 : index
    %c0_97 = arith.constant 0 : index
    %207 = vector.load %arg4[%c0_95, %c0_96, %c0_97] : memref<9x32x16xbf16, #tpu.memory_space<vmem>>, vector<1x32x16xbf16>
    %208 = vector.shape_cast %207 : vector<1x32x16xbf16> to vector<32x16xbf16>
    %209 = arith.truncf %206 : vector<16x256xf32> to vector<16x256xbf16>
    %cst_98 = arith.constant dense<0.000000e+00> : vector<32x256xf32>
    %210 = tpu.matmul %208, %209, %cst_98 {dimension_numbers = #tpu.dot_dimension_numbers<[1], [0], [0], [1], [0, 0, 1, 1], [], []>} : vector<32x16xbf16>, vector<16x256xbf16>, vector<32x256xf32> -> vector<32x256xf32>
    %211 = arith.addf %201, %210 : vector<32x256xf32>
    %212 = vector.extract_strided_slice %200 {offsets = [0, 1], sizes = [16, 256], strides = [1, 1]} : vector<16x290xf32> to vector<16x256xf32>
    %c1_99 = arith.constant 1 : index
    %c0_100 = arith.constant 0 : index
    %c0_101 = arith.constant 0 : index
    %213 = vector.load %arg4[%c1_99, %c0_100, %c0_101] : memref<9x32x16xbf16, #tpu.memory_space<vmem>>, vector<1x32x16xbf16>
    %214 = vector.shape_cast %213 : vector<1x32x16xbf16> to vector<32x16xbf16>
    %215 = arith.truncf %212 : vector<16x256xf32> to vector<16x256xbf16>
    %cst_102 = arith.constant dense<0.000000e+00> : vector<32x256xf32>
    %216 = tpu.matmul %214, %215, %cst_102 {dimension_numbers = #tpu.dot_dimension_numbers<[1], [0], [0], [1], [0, 0, 1, 1], [], []>} : vector<32x16xbf16>, vector<16x256xbf16>, vector<32x256xf32> -> vector<32x256xf32>
    %217 = arith.addf %211, %216 : vector<32x256xf32>
    %218 = vector.extract_strided_slice %200 {offsets = [0, 2], sizes = [16, 256], strides = [1, 1]} : vector<16x290xf32> to vector<16x256xf32>
    %cst_103 = arith.constant 0.000000e+00 : f32
    %219 = vector.shape_cast %22 : vector<1x256xi1> to vector<1x256xi1>
    %220 = vector.broadcast %219 : vector<1x256xi1> to vector<16x256xi1>
    %221 = vector.broadcast %cst_103 : f32 to vector<16x256xf32>
    %222 = arith.select %220, %218, %221 : vector<16x256xi1>, vector<16x256xf32>
    %c2_104 = arith.constant 2 : index
    %c0_105 = arith.constant 0 : index
    %c0_106 = arith.constant 0 : index
    %223 = vector.load %arg4[%c2_104, %c0_105, %c0_106] : memref<9x32x16xbf16, #tpu.memory_space<vmem>>, vector<1x32x16xbf16>
    %224 = vector.shape_cast %223 : vector<1x32x16xbf16> to vector<32x16xbf16>
    %225 = arith.truncf %222 : vector<16x256xf32> to vector<16x256xbf16>
    %cst_107 = arith.constant dense<0.000000e+00> : vector<32x256xf32>
    %226 = tpu.matmul %224, %225, %cst_107 {dimension_numbers = #tpu.dot_dimension_numbers<[1], [0], [0], [1], [0, 0, 1, 1], [], []>} : vector<32x16xbf16>, vector<16x256xbf16>, vector<32x256xf32> -> vector<32x256xf32>
    %227 = arith.addf %217, %226 : vector<32x256xf32>
    %228 = vector.extract_strided_slice %200 {offsets = [0, 16], sizes = [16, 256], strides = [1, 1]} : vector<16x290xf32> to vector<16x256xf32>
    %cst_108 = arith.constant 0.000000e+00 : f32
    %229 = vector.shape_cast %20 : vector<1x256xi1> to vector<1x256xi1>
    %230 = vector.broadcast %229 : vector<1x256xi1> to vector<16x256xi1>
    %231 = vector.broadcast %cst_108 : f32 to vector<16x256xf32>
    %232 = arith.select %230, %228, %231 : vector<16x256xi1>, vector<16x256xf32>
    %c3_109 = arith.constant 3 : index
    %c0_110 = arith.constant 0 : index
    %c0_111 = arith.constant 0 : index
    %233 = vector.load %arg4[%c3_109, %c0_110, %c0_111] : memref<9x32x16xbf16, #tpu.memory_space<vmem>>, vector<1x32x16xbf16>
    %234 = vector.shape_cast %233 : vector<1x32x16xbf16> to vector<32x16xbf16>
    %235 = arith.truncf %232 : vector<16x256xf32> to vector<16x256xbf16>
    %cst_112 = arith.constant dense<0.000000e+00> : vector<32x256xf32>
    %236 = tpu.matmul %234, %235, %cst_112 {dimension_numbers = #tpu.dot_dimension_numbers<[1], [0], [0], [1], [0, 0, 1, 1], [], []>} : vector<32x16xbf16>, vector<16x256xbf16>, vector<32x256xf32> -> vector<32x256xf32>
    %237 = arith.addf %227, %236 : vector<32x256xf32>
    %238 = vector.extract_strided_slice %200 {offsets = [0, 17], sizes = [16, 256], strides = [1, 1]} : vector<16x290xf32> to vector<16x256xf32>
    %c4_113 = arith.constant 4 : index
    %c0_114 = arith.constant 0 : index
    %c0_115 = arith.constant 0 : index
    %239 = vector.load %arg4[%c4_113, %c0_114, %c0_115] : memref<9x32x16xbf16, #tpu.memory_space<vmem>>, vector<1x32x16xbf16>
    %240 = vector.shape_cast %239 : vector<1x32x16xbf16> to vector<32x16xbf16>
    %241 = arith.truncf %238 : vector<16x256xf32> to vector<16x256xbf16>
    %cst_116 = arith.constant dense<0.000000e+00> : vector<32x256xf32>
    %242 = tpu.matmul %240, %241, %cst_116 {dimension_numbers = #tpu.dot_dimension_numbers<[1], [0], [0], [1], [0, 0, 1, 1], [], []>} : vector<32x16xbf16>, vector<16x256xbf16>, vector<32x256xf32> -> vector<32x256xf32>
    %243 = arith.addf %237, %242 : vector<32x256xf32>
    %244 = vector.extract_strided_slice %200 {offsets = [0, 18], sizes = [16, 256], strides = [1, 1]} : vector<16x290xf32> to vector<16x256xf32>
    %cst_117 = arith.constant 0.000000e+00 : f32
    %245 = vector.shape_cast %22 : vector<1x256xi1> to vector<1x256xi1>
    %246 = vector.broadcast %245 : vector<1x256xi1> to vector<16x256xi1>
    %247 = vector.broadcast %cst_117 : f32 to vector<16x256xf32>
    %248 = arith.select %246, %244, %247 : vector<16x256xi1>, vector<16x256xf32>
    %c5_118 = arith.constant 5 : index
    %c0_119 = arith.constant 0 : index
    %c0_120 = arith.constant 0 : index
    %249 = vector.load %arg4[%c5_118, %c0_119, %c0_120] : memref<9x32x16xbf16, #tpu.memory_space<vmem>>, vector<1x32x16xbf16>
    %250 = vector.shape_cast %249 : vector<1x32x16xbf16> to vector<32x16xbf16>
    %251 = arith.truncf %248 : vector<16x256xf32> to vector<16x256xbf16>
    %cst_121 = arith.constant dense<0.000000e+00> : vector<32x256xf32>
    %252 = tpu.matmul %250, %251, %cst_121 {dimension_numbers = #tpu.dot_dimension_numbers<[1], [0], [0], [1], [0, 0, 1, 1], [], []>} : vector<32x16xbf16>, vector<16x256xbf16>, vector<32x256xf32> -> vector<32x256xf32>
    %253 = arith.addf %243, %252 : vector<32x256xf32>
    %254 = vector.extract_strided_slice %200 {offsets = [0, 32], sizes = [16, 256], strides = [1, 1]} : vector<16x290xf32> to vector<16x256xf32>
    %cst_122 = arith.constant 0.000000e+00 : f32
    %255 = vector.shape_cast %20 : vector<1x256xi1> to vector<1x256xi1>
    %256 = vector.broadcast %255 : vector<1x256xi1> to vector<16x256xi1>
    %257 = vector.broadcast %cst_122 : f32 to vector<16x256xf32>
    %258 = arith.select %256, %254, %257 : vector<16x256xi1>, vector<16x256xf32>
    %c6_123 = arith.constant 6 : index
    %c0_124 = arith.constant 0 : index
    %c0_125 = arith.constant 0 : index
    %259 = vector.load %arg4[%c6_123, %c0_124, %c0_125] : memref<9x32x16xbf16, #tpu.memory_space<vmem>>, vector<1x32x16xbf16>
    %260 = vector.shape_cast %259 : vector<1x32x16xbf16> to vector<32x16xbf16>
    %261 = arith.truncf %258 : vector<16x256xf32> to vector<16x256xbf16>
    %cst_126 = arith.constant dense<0.000000e+00> : vector<32x256xf32>
    %262 = tpu.matmul %260, %261, %cst_126 {dimension_numbers = #tpu.dot_dimension_numbers<[1], [0], [0], [1], [0, 0, 1, 1], [], []>} : vector<32x16xbf16>, vector<16x256xbf16>, vector<32x256xf32> -> vector<32x256xf32>
    %263 = arith.addf %253, %262 : vector<32x256xf32>
    %264 = vector.extract_strided_slice %200 {offsets = [0, 33], sizes = [16, 256], strides = [1, 1]} : vector<16x290xf32> to vector<16x256xf32>
    %c7_127 = arith.constant 7 : index
    %c0_128 = arith.constant 0 : index
    %c0_129 = arith.constant 0 : index
    %265 = vector.load %arg4[%c7_127, %c0_128, %c0_129] : memref<9x32x16xbf16, #tpu.memory_space<vmem>>, vector<1x32x16xbf16>
    %266 = vector.shape_cast %265 : vector<1x32x16xbf16> to vector<32x16xbf16>
    %267 = arith.truncf %264 : vector<16x256xf32> to vector<16x256xbf16>
    %cst_130 = arith.constant dense<0.000000e+00> : vector<32x256xf32>
    %268 = tpu.matmul %266, %267, %cst_130 {dimension_numbers = #tpu.dot_dimension_numbers<[1], [0], [0], [1], [0, 0, 1, 1], [], []>} : vector<32x16xbf16>, vector<16x256xbf16>, vector<32x256xf32> -> vector<32x256xf32>
    %269 = arith.addf %263, %268 : vector<32x256xf32>
    %270 = vector.extract_strided_slice %200 {offsets = [0, 34], sizes = [16, 256], strides = [1, 1]} : vector<16x290xf32> to vector<16x256xf32>
    %cst_131 = arith.constant 0.000000e+00 : f32
    %271 = vector.shape_cast %22 : vector<1x256xi1> to vector<1x256xi1>
    %272 = vector.broadcast %271 : vector<1x256xi1> to vector<16x256xi1>
    %273 = vector.broadcast %cst_131 : f32 to vector<16x256xf32>
    %274 = arith.select %272, %270, %273 : vector<16x256xi1>, vector<16x256xf32>
    %c8_132 = arith.constant 8 : index
    %c0_133 = arith.constant 0 : index
    %c0_134 = arith.constant 0 : index
    %275 = vector.load %arg4[%c8_132, %c0_133, %c0_134] : memref<9x32x16xbf16, #tpu.memory_space<vmem>>, vector<1x32x16xbf16>
    %276 = vector.shape_cast %275 : vector<1x32x16xbf16> to vector<32x16xbf16>
    %277 = arith.truncf %274 : vector<16x256xf32> to vector<16x256xbf16>
    %cst_135 = arith.constant dense<0.000000e+00> : vector<32x256xf32>
    %278 = tpu.matmul %276, %277, %cst_135 {dimension_numbers = #tpu.dot_dimension_numbers<[1], [0], [0], [1], [0, 0, 1, 1], [], []>} : vector<32x16xbf16>, vector<16x256xbf16>, vector<32x256xf32> -> vector<32x256xf32>
    %279 = arith.addf %269, %278 : vector<32x256xf32>
    %280 = vector.broadcast %25 : vector<32x1xf32> to vector<32x256xf32>
    %281 = arith.addf %279, %280 : vector<32x256xf32>
    %cst_136 = arith.constant 0.000000e+00 : f32
    %282 = vector.broadcast %cst_136 : f32 to vector<32x17xf32>
    %283 = tpu.concatenate %282, %281, %282 in 1 : vector<32x17xf32>, vector<32x256xf32>, vector<32x17xf32> -> vector<32x290xf32>
    %cst_137 = arith.constant 0.000000e+00 : f32
    %284 = vector.broadcast %cst_137 : f32 to vector<3x256xf32>
    %285 = vector.extract_strided_slice %283 {offsets = [0, 0], sizes = [32, 256], strides = [1, 1]} : vector<32x290xf32> to vector<32x256xf32>
    %cst_138 = arith.constant 0.000000e+00 : f32
    %286 = vector.shape_cast %20 : vector<1x256xi1> to vector<1x256xi1>
    %287 = vector.broadcast %286 : vector<1x256xi1> to vector<32x256xi1>
    %288 = vector.broadcast %cst_138 : f32 to vector<32x256xf32>
    %289 = arith.select %287, %285, %288 : vector<32x256xi1>, vector<32x256xf32>
    %c0_139 = arith.constant 0 : index
    %c0_140 = arith.constant 0 : index
    %c0_141 = arith.constant 0 : index
    %290 = vector.load %arg5[%c0_139, %c0_140, %c0_141] : memref<9x3x32xbf16, #tpu.memory_space<vmem>>, vector<1x3x32xbf16>
    %291 = vector.shape_cast %290 : vector<1x3x32xbf16> to vector<3x32xbf16>
    %292 = arith.truncf %289 : vector<32x256xf32> to vector<32x256xbf16>
    %cst_142 = arith.constant dense<0.000000e+00> : vector<3x256xf32>
    %293 = tpu.matmul %291, %292, %cst_142 {dimension_numbers = #tpu.dot_dimension_numbers<[1], [0], [0], [1], [0, 0, 1, 1], [], []>} : vector<3x32xbf16>, vector<32x256xbf16>, vector<3x256xf32> -> vector<3x256xf32>
    %294 = arith.addf %284, %293 : vector<3x256xf32>
    %295 = vector.extract_strided_slice %283 {offsets = [0, 1], sizes = [32, 256], strides = [1, 1]} : vector<32x290xf32> to vector<32x256xf32>
    %c1_143 = arith.constant 1 : index
    %c0_144 = arith.constant 0 : index
    %c0_145 = arith.constant 0 : index
    %296 = vector.load %arg5[%c1_143, %c0_144, %c0_145] : memref<9x3x32xbf16, #tpu.memory_space<vmem>>, vector<1x3x32xbf16>
    %297 = vector.shape_cast %296 : vector<1x3x32xbf16> to vector<3x32xbf16>
    %298 = arith.truncf %295 : vector<32x256xf32> to vector<32x256xbf16>
    %cst_146 = arith.constant dense<0.000000e+00> : vector<3x256xf32>
    %299 = tpu.matmul %297, %298, %cst_146 {dimension_numbers = #tpu.dot_dimension_numbers<[1], [0], [0], [1], [0, 0, 1, 1], [], []>} : vector<3x32xbf16>, vector<32x256xbf16>, vector<3x256xf32> -> vector<3x256xf32>
    %300 = arith.addf %294, %299 : vector<3x256xf32>
    %301 = vector.extract_strided_slice %283 {offsets = [0, 2], sizes = [32, 256], strides = [1, 1]} : vector<32x290xf32> to vector<32x256xf32>
    %cst_147 = arith.constant 0.000000e+00 : f32
    %302 = vector.shape_cast %22 : vector<1x256xi1> to vector<1x256xi1>
    %303 = vector.broadcast %302 : vector<1x256xi1> to vector<32x256xi1>
    %304 = vector.broadcast %cst_147 : f32 to vector<32x256xf32>
    %305 = arith.select %303, %301, %304 : vector<32x256xi1>, vector<32x256xf32>
    %c2_148 = arith.constant 2 : index
    %c0_149 = arith.constant 0 : index
    %c0_150 = arith.constant 0 : index
    %306 = vector.load %arg5[%c2_148, %c0_149, %c0_150] : memref<9x3x32xbf16, #tpu.memory_space<vmem>>, vector<1x3x32xbf16>
    %307 = vector.shape_cast %306 : vector<1x3x32xbf16> to vector<3x32xbf16>
    %308 = arith.truncf %305 : vector<32x256xf32> to vector<32x256xbf16>
    %cst_151 = arith.constant dense<0.000000e+00> : vector<3x256xf32>
    %309 = tpu.matmul %307, %308, %cst_151 {dimension_numbers = #tpu.dot_dimension_numbers<[1], [0], [0], [1], [0, 0, 1, 1], [], []>} : vector<3x32xbf16>, vector<32x256xbf16>, vector<3x256xf32> -> vector<3x256xf32>
    %310 = arith.addf %300, %309 : vector<3x256xf32>
    %311 = vector.extract_strided_slice %283 {offsets = [0, 16], sizes = [32, 256], strides = [1, 1]} : vector<32x290xf32> to vector<32x256xf32>
    %cst_152 = arith.constant 0.000000e+00 : f32
    %312 = vector.shape_cast %20 : vector<1x256xi1> to vector<1x256xi1>
    %313 = vector.broadcast %312 : vector<1x256xi1> to vector<32x256xi1>
    %314 = vector.broadcast %cst_152 : f32 to vector<32x256xf32>
    %315 = arith.select %313, %311, %314 : vector<32x256xi1>, vector<32x256xf32>
    %c3_153 = arith.constant 3 : index
    %c0_154 = arith.constant 0 : index
    %c0_155 = arith.constant 0 : index
    %316 = vector.load %arg5[%c3_153, %c0_154, %c0_155] : memref<9x3x32xbf16, #tpu.memory_space<vmem>>, vector<1x3x32xbf16>
    %317 = vector.shape_cast %316 : vector<1x3x32xbf16> to vector<3x32xbf16>
    %318 = arith.truncf %315 : vector<32x256xf32> to vector<32x256xbf16>
    %cst_156 = arith.constant dense<0.000000e+00> : vector<3x256xf32>
    %319 = tpu.matmul %317, %318, %cst_156 {dimension_numbers = #tpu.dot_dimension_numbers<[1], [0], [0], [1], [0, 0, 1, 1], [], []>} : vector<3x32xbf16>, vector<32x256xbf16>, vector<3x256xf32> -> vector<3x256xf32>
    %320 = arith.addf %310, %319 : vector<3x256xf32>
    %321 = vector.extract_strided_slice %283 {offsets = [0, 17], sizes = [32, 256], strides = [1, 1]} : vector<32x290xf32> to vector<32x256xf32>
    %c4_157 = arith.constant 4 : index
    %c0_158 = arith.constant 0 : index
    %c0_159 = arith.constant 0 : index
    %322 = vector.load %arg5[%c4_157, %c0_158, %c0_159] : memref<9x3x32xbf16, #tpu.memory_space<vmem>>, vector<1x3x32xbf16>
    %323 = vector.shape_cast %322 : vector<1x3x32xbf16> to vector<3x32xbf16>
    %324 = arith.truncf %321 : vector<32x256xf32> to vector<32x256xbf16>
    %cst_160 = arith.constant dense<0.000000e+00> : vector<3x256xf32>
    %325 = tpu.matmul %323, %324, %cst_160 {dimension_numbers = #tpu.dot_dimension_numbers<[1], [0], [0], [1], [0, 0, 1, 1], [], []>} : vector<3x32xbf16>, vector<32x256xbf16>, vector<3x256xf32> -> vector<3x256xf32>
    %326 = arith.addf %320, %325 : vector<3x256xf32>
    %327 = vector.extract_strided_slice %283 {offsets = [0, 18], sizes = [32, 256], strides = [1, 1]} : vector<32x290xf32> to vector<32x256xf32>
    %cst_161 = arith.constant 0.000000e+00 : f32
    %328 = vector.shape_cast %22 : vector<1x256xi1> to vector<1x256xi1>
    %329 = vector.broadcast %328 : vector<1x256xi1> to vector<32x256xi1>
    %330 = vector.broadcast %cst_161 : f32 to vector<32x256xf32>
    %331 = arith.select %329, %327, %330 : vector<32x256xi1>, vector<32x256xf32>
    %c5_162 = arith.constant 5 : index
    %c0_163 = arith.constant 0 : index
    %c0_164 = arith.constant 0 : index
    %332 = vector.load %arg5[%c5_162, %c0_163, %c0_164] : memref<9x3x32xbf16, #tpu.memory_space<vmem>>, vector<1x3x32xbf16>
    %333 = vector.shape_cast %332 : vector<1x3x32xbf16> to vector<3x32xbf16>
    %334 = arith.truncf %331 : vector<32x256xf32> to vector<32x256xbf16>
    %cst_165 = arith.constant dense<0.000000e+00> : vector<3x256xf32>
    %335 = tpu.matmul %333, %334, %cst_165 {dimension_numbers = #tpu.dot_dimension_numbers<[1], [0], [0], [1], [0, 0, 1, 1], [], []>} : vector<3x32xbf16>, vector<32x256xbf16>, vector<3x256xf32> -> vector<3x256xf32>
    %336 = arith.addf %326, %335 : vector<3x256xf32>
    %337 = vector.extract_strided_slice %283 {offsets = [0, 32], sizes = [32, 256], strides = [1, 1]} : vector<32x290xf32> to vector<32x256xf32>
    %cst_166 = arith.constant 0.000000e+00 : f32
    %338 = vector.shape_cast %20 : vector<1x256xi1> to vector<1x256xi1>
    %339 = vector.broadcast %338 : vector<1x256xi1> to vector<32x256xi1>
    %340 = vector.broadcast %cst_166 : f32 to vector<32x256xf32>
    %341 = arith.select %339, %337, %340 : vector<32x256xi1>, vector<32x256xf32>
    %c6_167 = arith.constant 6 : index
    %c0_168 = arith.constant 0 : index
    %c0_169 = arith.constant 0 : index
    %342 = vector.load %arg5[%c6_167, %c0_168, %c0_169] : memref<9x3x32xbf16, #tpu.memory_space<vmem>>, vector<1x3x32xbf16>
    %343 = vector.shape_cast %342 : vector<1x3x32xbf16> to vector<3x32xbf16>
    %344 = arith.truncf %341 : vector<32x256xf32> to vector<32x256xbf16>
    %cst_170 = arith.constant dense<0.000000e+00> : vector<3x256xf32>
    %345 = tpu.matmul %343, %344, %cst_170 {dimension_numbers = #tpu.dot_dimension_numbers<[1], [0], [0], [1], [0, 0, 1, 1], [], []>} : vector<3x32xbf16>, vector<32x256xbf16>, vector<3x256xf32> -> vector<3x256xf32>
    %346 = arith.addf %336, %345 : vector<3x256xf32>
    %347 = vector.extract_strided_slice %283 {offsets = [0, 33], sizes = [32, 256], strides = [1, 1]} : vector<32x290xf32> to vector<32x256xf32>
    %c7_171 = arith.constant 7 : index
    %c0_172 = arith.constant 0 : index
    %c0_173 = arith.constant 0 : index
    %348 = vector.load %arg5[%c7_171, %c0_172, %c0_173] : memref<9x3x32xbf16, #tpu.memory_space<vmem>>, vector<1x3x32xbf16>
    %349 = vector.shape_cast %348 : vector<1x3x32xbf16> to vector<3x32xbf16>
    %350 = arith.truncf %347 : vector<32x256xf32> to vector<32x256xbf16>
    %cst_174 = arith.constant dense<0.000000e+00> : vector<3x256xf32>
    %351 = tpu.matmul %349, %350, %cst_174 {dimension_numbers = #tpu.dot_dimension_numbers<[1], [0], [0], [1], [0, 0, 1, 1], [], []>} : vector<3x32xbf16>, vector<32x256xbf16>, vector<3x256xf32> -> vector<3x256xf32>
    %352 = arith.addf %346, %351 : vector<3x256xf32>
    %353 = vector.extract_strided_slice %283 {offsets = [0, 34], sizes = [32, 256], strides = [1, 1]} : vector<32x290xf32> to vector<32x256xf32>
    %cst_175 = arith.constant 0.000000e+00 : f32
    %354 = vector.shape_cast %22 : vector<1x256xi1> to vector<1x256xi1>
    %355 = vector.broadcast %354 : vector<1x256xi1> to vector<32x256xi1>
    %356 = vector.broadcast %cst_175 : f32 to vector<32x256xf32>
    %357 = arith.select %355, %353, %356 : vector<32x256xi1>, vector<32x256xf32>
    %c8_176 = arith.constant 8 : index
    %c0_177 = arith.constant 0 : index
    %c0_178 = arith.constant 0 : index
    %358 = vector.load %arg5[%c8_176, %c0_177, %c0_178] : memref<9x3x32xbf16, #tpu.memory_space<vmem>>, vector<1x3x32xbf16>
    %359 = vector.shape_cast %358 : vector<1x3x32xbf16> to vector<3x32xbf16>
    %360 = arith.truncf %357 : vector<32x256xf32> to vector<32x256xbf16>
    %cst_179 = arith.constant dense<0.000000e+00> : vector<3x256xf32>
    %361 = tpu.matmul %359, %360, %cst_179 {dimension_numbers = #tpu.dot_dimension_numbers<[1], [0], [0], [1], [0, 0, 1, 1], [], []>} : vector<3x32xbf16>, vector<32x256xbf16>, vector<3x256xf32> -> vector<3x256xf32>
    %362 = arith.addf %352, %361 : vector<3x256xf32>
    %363 = vector.broadcast %26 : vector<3x1xf32> to vector<3x256xf32>
    %364 = arith.addf %362, %363 : vector<3x256xf32>
    %c0_180 = arith.constant 0 : index
    %c0_181 = arith.constant 0 : index
    %c0_182 = arith.constant 0 : index
    %365 = vector.load %arg7[%c0_180, %c0_181, %c0_182] : memref<1x3x256xf32, #tpu.memory_space<vmem>>, vector<1x3x256xf32>
    %366 = vector.shape_cast %365 : vector<1x3x256xf32> to vector<3x256xf32>
    %367 = vector.shape_cast %364 : vector<3x256xf32> to vector<1x3x256xf32>
    tpu.vector_store %arg7[%c0_180, %c0_181, %c0_182], %367 {strides = array<i32>} : memref<1x3x256xf32, #tpu.memory_space<vmem>>, vector<1x3x256xf32>,
    return
  }
  func.func @transform_0(%arg0: i32) -> (i32, i32, i32) {
    %c0_i32 = arith.constant 0 : i32
    %c0_i32_0 = arith.constant 0 : i32
    %c0_i32_1 = arith.constant 0 : i32
    return %arg0, %c0_i32, %c0_i32_0 : i32, i32, i32
  }
  func.func @transform_1(%arg0: i32) -> (i32, i32, i32) {
    %c0_i32 = arith.constant 0 : i32
    %c0_i32_0 = arith.constant 0 : i32
    %c0_i32_1 = arith.constant 0 : i32
    %c0_i32_2 = arith.constant 0 : i32
    return %c0_i32, %c0_i32_0, %c0_i32_1 : i32, i32, i32
  }
  func.func @transform_2(%arg0: i32) -> (i32, i32, i32) {
    %c0_i32 = arith.constant 0 : i32
    %c0_i32_0 = arith.constant 0 : i32
    %c0_i32_1 = arith.constant 0 : i32
    %c0_i32_2 = arith.constant 0 : i32
    return %c0_i32, %c0_i32_0, %c0_i32_1 : i32, i32, i32
  }
  func.func @transform_3(%arg0: i32) -> (i32, i32, i32) {
    %c0_i32 = arith.constant 0 : i32
    %c0_i32_0 = arith.constant 0 : i32
    %c0_i32_1 = arith.constant 0 : i32
    %c0_i32_2 = arith.constant 0 : i32
    return %c0_i32, %c0_i32_0, %c0_i32_1 : i32, i32, i32
  }
  func.func @transform_4(%arg0: i32) -> (i32, i32, i32) {
    %c0_i32 = arith.constant 0 : i32
    %c0_i32_0 = arith.constant 0 : i32
    %c0_i32_1 = arith.constant 0 : i32
    %c0_i32_2 = arith.constant 0 : i32
    return %c0_i32, %c0_i32_0, %c0_i32_1 : i32, i32, i32
  }
  func.func @transform_5(%arg0: i32) -> (i32, i32) {
    %c0_i32 = arith.constant 0 : i32
    %c0_i32_0 = arith.constant 0 : i32
    %c0_i32_1 = arith.constant 0 : i32
    return %c0_i32, %c0_i32_0 : i32, i32
  }
  func.func @transform_6(%arg0: i32) -> (i32, i32, i32) {
    %c0_i32 = arith.constant 0 : i32
    %c0_i32_0 = arith.constant 0 : i32
    %c0_i32_1 = arith.constant 0 : i32
    return %arg0, %c0_i32, %c0_i32_0 : i32, i32, i32
  }
}

</mosaic_0001>

<bundles_post_ra>
// kernel: tpu_custom_call.1
= control target key start
LH: loop header
LB: loop body
LE: loop exit
PB: predicated region body
PF: predicated region fallthrough
CT: control target
= control target key end

     0   :  { %11 = vsyncpa [#allocation3], 0  ;;  %s4515_s21 = smov 0   ;;  %s5510_s0 = inlined_call_operand.vmem [shape: f32[2,32,256], index: 0, kind: input, shape index: {}]   ;;  %s5511_s1 = inlined_call_operand.vmem [shape: bf16[9,16,32], index: 1, kind: input, shape index: {}]   ;;  %s5512_s2 = inlined_call_operand.hbm [shape: bf16[9,16,16], index: 2, kind: input, shape index: {}]   ;;  %s5513_s3 = inlined_call_operand.vmem [shape: bf16[9,32,16], index: 3, kind: input, shape index: {}]   ;;  %s5514_s4 = inlined_call_operand.vmem [shape: bf16[9,3,32], index: 4, kind: input, shape index: {}]   ;;  %s5515_s5 = inlined_call_operand.vmem [shape: f32[67,1], index: 5, kind: input, shape index: {}]   ;;  %s5516_s6 = inlined_call_operand.vmem [shape: f32[2,3,256], index: 6, kind: output, shape index: {}]  }
   0x1 LB: > { %s193_s24 = sshll.u32 %s5512_s2, 4  ;;  %s3324_s25 = sadd.s32 4294967295, %s4465_s21   ;;  %s4465_s21 = sphi %s4515_s21, %s17_s21   ;;  %s194_s24 = int_to_ptr.hbm [resolvable:$true] %s193_s24 }
   0x2   : > { %p3326_p0 = scmp.ge.s32.totalorder %s4465_s21, 1  ;;  %p179_p1 = scmp.lt.s32.totalorder %s4465_s21, 3 }
   0x3   : > { %p3889_p2 = scmp.eq.s32.totalorder %s3324_s25, 0  ;;  %s4467_s26 = smov [#allocation2]  }
   0x4   : > { %p180_p3 = pnand %p3326_p0, %p179_p1  ;;  %s195_s27 = sshll.u32 %s4467_s26, 4  ;;  %s196_s27 = int_to_ptr.vmem [resolvable:$true] %s195_s27 }
   0x5   : > { %s4468_s28 = smov 64   ;;  %s4469_s29 = smov 4  }
   0x6   : > { %p3885_p4 = pneg %p180_p3  ;;  %228 = sbr.rel (%p180_p3) target bundleno = 1978 (0x7ba), region = 44 }
   0x8   : > { %p3886_p5 = pnand %p3889_p2, %p3885_p4 }
   0xa   : > { %3888 = dma.hbm_to_vmem [thread:$0]  (!%p3886_p5), %s194_s24, 1152, %s196_s27, [#allocation3], %s4468_s28, %s4468_s28, %s4469_s29  }
   0xb   : > { %4460 = dma.done.wait (%p3889_p2), [#allocation3], 1152  }
   0xc   : > { %4462 = vsyncadd (%p3889_p2), [#allocation3], 4294966144  ;;  %p259_p6 = scmp.lt.s32.totalorder %s3324_s25, 1  ;;  %s4470_s10 = smov 17   ;;  %v278_v12 = vlaneseq  ;;  %vm342_vm0 = vcmask 138240   ;;  %v3845_v62 = vld [vmem:[%s5511_s1] sm:$0xff] }
   0xd   : > { %s4471_s11 = smov 126   ;;  %s4472_s12 = smov 112   ;;  %vm426_vm5 = vcmask 261120   ;;  %vm626_vm6 = vcmask 916480   ;;  %vm417_vm7 = vcmask 1039360   ;;  %vm786_vm9 = vcmask 900096  }
   0xe   : > { %s5528_s25 = smov (!%p259_p6, %s3324_s25), 1  ;;  %v4536_v13 = vand.u32 127, %v278_v12  ;;  %s4473_s13 = smov 110   ;;  %vm530_vm13 = vcmask 1031168   ;;  %vm718_vm14 = vcmask 908288   ;;  %vm882_vm15 = vcmask 785408  }
   0xf   : > { %s3843_s30 = sshll.u32 %s5528_s25, 6  ;;  %s4474_s14 = smov 127  }
  0x10   : > { %s263_s9 = scalar_lea.vmem %s5510_s0, %s3843_s30  ;;  %v4539_v20 = vadd.s32 128, %v4536_v13  ;;  %v285_v26 = vand.u32 15, %v4536_v13  ;;  %s4475_s15 = smov 96  }
  0x11   : > { %v274_v0 = vld [vmem:[%s263_s9 + $0x20] sm:$0xff]  ;;  %v275_v1 = vld [vmem:[%s263_s9 + $0x28] sm:$0xff]  ;;  %v276_v6 = vld [vmem:[%s263_s9 + $0x30] sm:$0xff]  ;;  %s4476_s16 = smov 111   ;;  %s4477_s17 = smov 94  }
  0x12   : > { %v270_v2 = vld [vmem:[%s263_s9] sm:$0xff]  ;;  %v3912_v3 = vpack.i.bf16 %v275_v1, %v274_v0  ;;  %v271_v4 = vld [vmem:[%s263_s9 + $0x8] sm:$0xff]  ;;  %v277_v7 = vld [vmem:[%s263_s9 + $0x38] sm:$0xff]  ;;  %v292_v27 = vand.u32 15, %v4539_v20  ;;  %vm305_vm1 = vcmp.ge.s32.totalorder %v285_v26, 1  ;;  %s4478_s18 = smov 95  }
  0x13   : > { %v3922_v5 = vpack.i.bf16 %v271_v4, %v270_v2  ;;  %v272_v8 = vld [vmem:[%s263_s9 + $0x10] sm:$0xff]  ;;  %v273_v9 = vld [vmem:[%s263_s9 + $0x18] sm:$0xff]  ;;  %v3917_v10 = vpack.i.bf16 %v277_v7, %v276_v6  ;;  %vm4563_vm3 = vmpackc.low %vm305_vm1, %vm305_vm1  ;;  %vm307_vm8 = vcmp.le.s32.totalorder %v285_v26, 14  ;;  %vm974_vm1 = vcmask 777216   ;;  %s3844_s23 = sshll.u32 %s5528_s25, 3 }
  0x14   : > { %3913 = vrot.lane.b32.xlu0 %v3912_v3, %s4470_s10  ;;  %v3927_v11 = vpack.i.bf16 %v273_v9, %v272_v8  ;;  %vm306_vm2 = vcmp.ge.s32.totalorder %v292_v27, 1  ;;  %vm4712_vm10 = vcmp.le.s32.totalorder %v292_v27, 14  ;;  %vm4720_vm11 = vmpackc.low %vm307_vm8, %vm307_vm8  ;;  %vm1192_vm8 = vcmask 130048  }
  0x15   : > { %3923 = vrot.lane.b32.xlu1 %v3922_v5, %s4470_s10  ;;  %vm4571_vm4 = vmpackc.low %vm306_vm2, %vm306_vm2  ;;  %vm1042_vm2 = vcmask 769024  }
  0x16   : > { %vm4731_vm12 = vmpackc.low %vm4712_vm10, %vm4712_vm10 }
  0x1c   : > { %3918 = vrot.lane.b32.xlu0 %v3917_v10, %s4470_s10 }
  0x1d   : > { %3928 = vrot.lane.b32.xlu1 %v3927_v11, %s4470_s10 }
  0x86   : > { %v3914_v14 = vpop.permute.xlu0 %3913 }
  0x87   : > { %v3916_v15 = vunpack.i.h.bf16 %v3914_v14  ;;  %v3915_v16 = vunpack.i.l.bf16 %v3914_v14  ;;  %v3924_v17 = vpop.permute.xlu1 %3923 }
  0x88   : > { %v3926_v18 = vunpack.i.h.bf16 %v3924_v17  ;;  %v3925_v19 = vunpack.i.l.bf16 %v3924_v17 }
  0x89   : > { %v345_v21 = vsel %vm342_vm0, %v3915_v16, %v3916_v15  ;;  %v361_v22 = vsel %vm342_vm0, 0.0, %v3915_v16  ;;  %v365_v38 = vsel %vm342_vm0, %v3916_v15, 0.0 }
  0x8a   : > { %v343_v23 = vsel %vm342_vm0, %v3925_v19, %v3926_v18  ;;  %v359_v24 = vsel %vm342_vm0, 0.0, %v3925_v19  ;;  %v4545_v25 = vpack.i.bf16 %v345_v21, %v361_v22  ;;  %v363_v47 = vsel %vm342_vm0, %v3926_v18, 0.0 }
  0x8b   : > { %v4551_v28 = vpack.i.bf16 %v343_v23, %v359_v24 }
  0x8c   : > { %3933 = vrot.lane.b32.xlu1 %v4545_v25, %s4471_s11 }
  0x8e   : > { %v3919_v29 = vpop.permute.xlu0 %3918 }
  0x8f   : > { %v3921_v30 = vunpack.i.h.bf16 %v3919_v29  ;;  %v3920_v31 = vunpack.i.l.bf16 %v3919_v29  ;;  %v3929_v32 = vpop.permute.xlu1 %3928 }
  0x90   : > { %v3931_v33 = vunpack.i.h.bf16 %v3929_v32  ;;  %v3930_v34 = vunpack.i.l.bf16 %v3929_v32 }
  0x91   : > { %v366_v35 = vsel %vm342_vm0, %v3921_v30, 0.0  ;;  %v346_v36 = vsel %vm342_vm0, %v3920_v31, %v3921_v30  ;;  %v362_v37 = vsel %vm342_vm0, 0.0, %v3920_v31 }
  0x92   : > { %v4561_v39 = vpack.i.bf16 %v366_v35, %v346_v36  ;;  %v4567_v41 = vpack.i.bf16 %v362_v37, %v365_v38  ;;  %v391_v42 = vpack.c.bf16 %v362_v37, %v361_v22  ;;  %v4569_v43 = vpack.c.bf16 %v346_v36, %v345_v21  ;;  %v3848_v36 = vld [vmem:[%s5511_s1 + $0x18] sm:$0xff] }
  0x93   : > { %v344_v45 = vsel %vm342_vm0, %v3930_v34, %v3931_v33  ;;  %v360_v46 = vsel %vm342_vm0, 0.0, %v3930_v34  ;;  %v364_v48 = vsel %vm342_vm0, %v3931_v33, 0.0  ;;  %v393_v53 = vpack.c.bf16 %v366_v35, %v365_v38 }
  0x94   : > { %3943 = vrot.lane.b32.xlu0 %v4561_v39, %s4471_s11  ;;  %3948 = vrot.lane.b32.xlu1 %v4551_v28, %s4471_s11  ;;  %v388_v49 = vpack.c.bf16 %v360_v46, %v359_v24  ;;  %v4590_v50 = vpack.c.bf16 %v344_v45, %v343_v23  ;;  %v3957_v51 = vpack.i.bf16 %v364_v48, %v344_v45 }
  0x95   : > { %3938 = vrot.lane.b32.xlu2 %v4567_v41, %s4471_s11  ;;  %3349 = vmatpush.bf16.msk.msra.mxu2 %vm4563_vm3, %v391_v42  ;;  %v4592_v52 = vpack.i.bf16 %v360_v46, %v363_v47  ;;  %v390_v54 = vpack.c.bf16 %v364_v48, %v363_v47 }
  0x96   : > { %3356 = vmatpush.bf16.msk.msra.mxu3 %vm4571_vm4, %v4569_v43 }
  0x99   : > { %3352 = vmatpush.bf16.msk.msra.mxu2 %vm4563_vm3, %v388_v49 }
  0x9a   : > { %3359 = vmatpush.bf16.msk.msra.mxu3 %vm4571_vm4, %v4590_v50 }
  0x9c   : > { %3958 = vrot.lane.b32.xlu0 %v3957_v51, %s4471_s11  ;;  %3963 = vrot.lane.b32.xlu1 %v4545_v25, %s4472_s12 }
  0x9d   : > { %3953 = vrot.lane.b32.xlu2 %v4592_v52, %s4471_s11  ;;  %3353 = vmatmul.msk.bf16.vlgmr.msra.gmra.mxu2 %vm426_vm5, %v3845_v62 }
  0x9e   : > { %3360 = vmatmul.msk.bf16.vlgmr.msra.gmra.mxu3 %vm426_vm5, %v3845_v62 }
  0xa4   : > { %3973 = vrot.lane.b32.xlu0 %v4561_v39, %s4472_s12  ;;  %3978 = vrot.lane.b32.xlu1 %v4551_v28, %s4472_s12 }
  0xa5   : > { %3968 = vrot.lane.b32.xlu2 %v4567_v41, %s4472_s12 }
  0xac   : > { %3988 = vrot.lane.b32.xlu0 %v3957_v51, %s4472_s12  ;;  %3993 = vrot.lane.b32.xlu1 %v4545_v25, %s4473_s13 }
  0xad   : > { %3983 = vrot.lane.b32.xlu2 %v4592_v52, %s4472_s12 }
  0xb4   : > { %4003 = vrot.lane.b32.xlu0 %v4561_v39, %s4473_s13  ;;  %4008 = vrot.lane.b32.xlu1 %v4551_v28, %s4473_s13 }
  0xb5   : > { %3998 = vrot.lane.b32.xlu2 %v4567_v41, %s4473_s13 }
  0xbc   : > { %4018 = vrot.lane.b32.xlu0 %v3957_v51, %s4473_s13  ;;  %405 = vrot.lane.b32.xlu1 %v388_v49, %s4474_s14 }
  0xbd   : > { %4013 = vrot.lane.b32.xlu2 %v4592_v52, %s4473_s13 }
  0xc4   : > { %415 = vrot.lane.b32.xlu0 %v393_v53, %s4474_s14  ;;  %4023 = vrot.lane.b32.xlu1 %v4545_v25, %s4475_s15 }
  0xc5   : > { %411 = vrot.lane.b32.xlu2 %v391_v42, %s4474_s14 }
  0xcc   : > { %409 = vrot.lane.b32.xlu0 %v390_v54, %s4474_s14  ;;  %4038 = vrot.lane.b32.xlu1 %v4551_v28, %s4475_s15 }
  0xcd   : > { %413 = vrot.lane.b32.xlu2 %v4569_v43, %s4474_s14 }
  0xd4   : > { %4033 = vrot.lane.b32.xlu0 %v4561_v39, %s4475_s15  ;;  %712 = vrot.lane.b32.xlu1 %v391_v42, %s4476_s16 }
  0xd5   : > { %407 = vrot.lane.b32.xlu2 %v4590_v50, %s4474_s14 }
  0xdc   : > { %4048 = vrot.lane.b32.xlu0 %v3957_v51, %s4475_s15  ;;  %706 = vrot.lane.b32.xlu1 %v388_v49, %s4476_s16 }
  0xdd   : > { %4028 = vrot.lane.b32.xlu2 %v4567_v41, %s4475_s15 }
  0xe4   : > { %716 = vrot.lane.b32.xlu0 %v393_v53, %s4476_s16  ;;  %4053 = vrot.lane.b32.xlu1 %v4545_v25, %s4477_s17 }
  0xe5   : > { %4043 = vrot.lane.b32.xlu2 %v4592_v52, %s4475_s15 }
  0xec   : > { %710 = vrot.lane.b32.xlu0 %v390_v54, %s4476_s16  ;;  %968 = vrot.lane.b32.xlu1 %v391_v42, %s4478_s18 }
  0xed   : > { %714 = vrot.lane.b32.xlu2 %v4569_v43, %s4476_s16 }
  0xef   : > { %v4652_v55 = vpop.permute.xlu2 %3938 }
  0xf0   : > { %v3941_v62 = vunpack.i.h.bf16 %v4652_v55 }
  0xf4   : > { %972 = vrot.lane.b32.xlu0 %v393_v53, %s4478_s18  ;;  %962 = vrot.lane.b32.xlu1 %v388_v49, %s4478_s18 }
  0xf5   : > { %708 = vrot.lane.b32.xlu2 %v4590_v50, %s4476_s16 }
  0xf7   : > { %v4658_v56 = vpop.permute.xlu2 %3953 }
  0xfc   : > { %966 = vrot.lane.b32.xlu0 %v390_v54, %s4478_s18  ;;  %4068 = vrot.lane.b32.xlu1 %v4551_v28, %s4477_s17 }
  0xfd   : > { %4058 = vrot.lane.b32.xlu2 %v4567_v41, %s4477_s17 }
  0xfe   : > { %v4665_v57 = vpop.permute.xlu1 %3933 }
  0xff   : > { %v3969_v58 = vpop.permute.xlu2 %3968  ;;  %v3936_v53 = vunpack.i.h.bf16 %v4665_v57  ;;  %v3935_v54 = vunpack.i.l.bf16 %v4665_v57 }
 0x100   : > { %v3971_v6 = vunpack.i.h.bf16 %v3969_v58  ;;  %v3970_v7 = vunpack.i.l.bf16 %v3969_v58 }
 0x104   : > { %4063 = vrot.lane.b32.xlu0 %v4561_v39, %s4477_s17 }
 0x105   : > { %970 = vrot.lane.b32.xlu2 %v4569_v43, %s4478_s18 }
 0x106   : > { %v4671_v59 = vpop.permute.xlu0 %3943  ;;  %v4673_v60 = vpop.permute.xlu1 %3948 }
 0x107   : > { %v3984_v61 = vpop.permute.xlu2 %3983  ;;  %v3945_v13 = vunpack.i.l.bf16 %v4671_v59  ;;  %v3951_v57 = vunpack.i.h.bf16 %v4673_v60 }
 0x108   : > { %v3986_v23 = vunpack.i.h.bf16 %v3984_v61  ;;  %v3985_v24 = vunpack.i.l.bf16 %v3984_v61 }
 0x10c   : > { %4078 = vrot.lane.b32.xlu0 %v3957_v51, %s4477_s17 }
 0x10d   : > { %964 = vrot.lane.b32.xlu2 %v4590_v50, %s4478_s18 }
 0x10e   : > { %v4683_v63 = vpop.permute.xlu0 %3958  ;;  %v3964_v0 = vpop.permute.xlu1 %3963 }
 0x10f   : > { %v3999_v1 = vpop.permute.xlu2 %3998  ;;  %v3966_v2 = vunpack.i.h.bf16 %v3964_v0  ;;  %v3965_v3 = vunpack.i.l.bf16 %v3964_v0  ;;  %v3960_v0 = vunpack.i.l.bf16 %v4683_v63 }
 0x110   : > { %v4001_v43 = vunpack.i.h.bf16 %v3999_v1  ;;  %v4000_v45 = vunpack.i.l.bf16 %v3999_v1 }
 0x111   : > { %v631_v11 = vsel %vm626_vm6, %v3965_v3, %v3966_v2  ;;  %v632_v14 = vsel %vm626_vm6, %v3966_v2, %v3970_v7  ;;  %v537_v3 = vsel %vm530_vm13, %v3941_v62, %v3945_v13 }
 0x115   : > { %4073 = vrot.lane.b32.xlu2 %v4592_v52, %s4477_s17 }
 0x116   : > { %v3974_v4 = vpop.permute.xlu0 %3973  ;;  %v3979_v5 = vpop.permute.xlu1 %3978 }
 0x117   : > { %v3976_v8 = vunpack.i.h.bf16 %v3974_v4  ;;  %v3975_v9 = vunpack.i.l.bf16 %v3974_v4  ;;  %v4687_v10 = vpop.permute.xlu2 %4013  ;;  %v3981_v18 = vunpack.i.h.bf16 %v3979_v5  ;;  %v3980_v19 = vunpack.i.l.bf16 %v3979_v5 }
 0x118   : > { %v3956_v4 = vunpack.i.h.bf16 %v4658_v56  ;;  %v3950_v5 = vunpack.i.l.bf16 %v4673_v60 }
 0x119   : > { %v633_v12 = vsel %vm626_vm6, %v3971_v6, %v3975_v9  ;;  %v634_v15 = vsel %vm626_vm6, %v3975_v9, %v3976_v8  ;;  %v627_v30 = vsel %vm626_vm6, %v3980_v19, %v3981_v18  ;;  %v628_v32 = vsel %vm626_vm6, %v3981_v18, %v3985_v24  ;;  %v3846_v18 = vld [vmem:[%s5511_s1 + $0x8] sm:$0xff] }
 0x11a   : > { %v3388_v16 = vpack.c.bf16 %v633_v12, %v631_v11  ;;  %v3395_v17 = vpack.c.bf16 %v634_v15, %v632_v14  ;;  %v535_v8 = vsel %vm530_vm13, %v3935_v54, %v3936_v53  ;;  %v4016_v9 = vunpack.i.h.bf16 %v4687_v10 }
 0x11b   : > { %v4015_v11 = vunpack.i.l.bf16 %v4687_v10  ;;  %v533_v60 = vsel %vm530_vm13, %v3956_v4, %v3960_v0 }
 0x11c   : > { %3389 = vmatpush.bf16.msk.msrb.mxu2 %vm4563_vm3, %v3388_v16  ;;  %3396 = vmatpush.bf16.msk.msrb.mxu3 %vm4571_vm4, %v3395_v17  ;;  %v3368_v17 = vpack.c.bf16 %v537_v3, %v535_v8 }
 0x11e   : > { %v3989_v21 = vpop.permute.xlu0 %3988  ;;  %v3994_v22 = vpop.permute.xlu1 %3993 }
 0x11f   : > { %v3991_v25 = vunpack.i.h.bf16 %v3989_v21  ;;  %v3990_v28 = vunpack.i.l.bf16 %v3989_v21  ;;  %v412_v29 = vpop.permute.xlu2 %411  ;;  %v3996_v37 = vunpack.i.h.bf16 %v3994_v22  ;;  %v3995_v38 = vunpack.i.l.bf16 %v3994_v22 }
 0x121   : > { %v629_v31 = vsel %vm626_vm6, %v3986_v23, %v3990_v28  ;;  %v630_v33 = vsel %vm626_vm6, %v3990_v28, %v3991_v25  ;;  %v792_v20 = vsel %vm786_vm9, %v3996_v37, %v4000_v45  ;;  %v791_v27 = vsel %vm786_vm9, %v3995_v38, %v3996_v37  ;;  %v3850_v28 = vld [vmem:[%s5511_s1 + $0x28] sm:$0xff] }
 0x122   : > { %v3391_v34 = vpack.c.bf16 %v629_v31, %v627_v30  ;;  %v3398_v35 = vpack.c.bf16 %v630_v33, %v628_v32  ;;  %v531_v25 = vsel %vm530_vm13, %v3950_v5, %v3951_v57  ;;  %v3849_v5 = vld [vmem:[%s5511_s1 + $0x20] sm:$0xff] }
 0x124   : > { %3392 = vmatpush.bf16.msk.msrb.mxu2 %vm4563_vm3, %v3391_v34  ;;  %3399 = vmatpush.bf16.msk.msrb.mxu3 %vm4571_vm4, %v3398_v35  ;;  %v3946_v34 = vunpack.i.h.bf16 %v4671_v59  ;;  %v3940_v35 = vunpack.i.l.bf16 %v4652_v55  ;;  %v3955_v59 = vunpack.i.l.bf16 %v4658_v56  ;;  %v3847_v55 = vld [vmem:[%s5511_s1 + $0x10] sm:$0xff] }
 0x126   : > { %v4004_v39 = vpop.permute.xlu0 %4003  ;;  %v4009_v41 = vpop.permute.xlu1 %4008  ;;  %v538_v37 = vsel %vm530_vm13, %v3945_v13, %v3946_v34 }
 0x127   : > { %v4006_v46 = vunpack.i.h.bf16 %v4004_v39  ;;  %v4005_v47 = vunpack.i.l.bf16 %v4004_v39  ;;  %v414_v48 = vpop.permute.xlu2 %413  ;;  %3393 = vmatmul.msk.bf16.vlgmr.msrb.gmra.mxu2 %vm426_vm5, %v3848_v36  ;;  %3400 = vmatmul.msk.bf16.vlgmr.msrb.gmra.mxu3 %vm426_vm5, %v3848_v36  ;;  %v4011_v1 = vunpack.i.h.bf16 %v4009_v41  ;;  %v4010_v2 = vunpack.i.l.bf16 %v4009_v41 }
 0x128   : > { %v420_v26 = vsel %vm417_vm7, %v412_v29, %v414_v48  ;;  %v3371_v29 = vpack.c.bf16 %v533_v60, %v531_v25  ;;  %v3961_v36 = vunpack.i.h.bf16 %v4683_v63  ;;  %v536_v41 = vsel %vm530_vm13, %v3936_v53, %v3940_v35 }
 0x129   : > { %v793_v50 = vsel %vm786_vm9, %v4001_v43, %v4005_v47  ;;  %v794_v51 = vsel %vm786_vm9, %v4005_v47, %v4006_v46  ;;  %436 = vmatpush.bf16.msra.mxu0 %v420_v26  ;;  %v788_v19 = vsel %vm786_vm9, %v4011_v1, %v4015_v11  ;;  %v787_v21 = vsel %vm786_vm9, %v4010_v2, %v4011_v1 }
 0x12a   : > { %v3416_v58 = vpack.c.bf16 %v793_v50, %v791_v27  ;;  %v3423_v61 = vpack.c.bf16 %v794_v51, %v792_v20  ;;  %v3375_v45 = vpack.c.bf16 %v538_v37, %v536_v41  ;;  %v534_v63 = vsel %vm530_vm13, %v3960_v0, %v3961_v36  ;;  %v309_v36 = vld [vmem:[%s5515_s5] sm:$0xff] }
 0x12b   : > { %v532_v46 = vsel %vm530_vm13, %v3951_v57, %v3955_v59 }
 0x12c   : > { %3417 = vmatpush.bf16.msk.msra.mxu2 %vm4720_vm11, %v3416_v58  ;;  %3424 = vmatpush.bf16.msk.msra.mxu3 %vm4731_vm12, %v3423_v61  ;;  %v3378_v47 = vpack.c.bf16 %v534_v63, %v532_v46 }
 0x12e   : > { %v4019_v6 = vpop.permute.xlu0 %4018  ;;  %v406_v7 = vpop.permute.xlu1 %405 }
 0x12f   : > { %v4021_v12 = vunpack.i.h.bf16 %v4019_v6  ;;  %v4020_v14 = vunpack.i.l.bf16 %v4019_v6  ;;  %v408_v15 = vpop.permute.xlu2 %407 }
 0x130   : > { %v418_v16 = vsel %vm417_vm7, %v406_v7, %v408_v15 }
 0x131   : > { %v789_v22 = vsel %vm786_vm9, %v4016_v9, %v4020_v14  ;;  %v790_v10 = vsel %vm786_vm9, %v4020_v14, %v4021_v12  ;;  %437 = vmatpush.bf16.msra.mxu0 %v418_v16 }
 0x132   : > { %v3419_v23 = vpack.c.bf16 %v789_v22, %v787_v21  ;;  %v3426_v24 = vpack.c.bf16 %v790_v10, %v788_v19 }
 0x134   : > { %3341 = vmatmul.msk.bf16.vlgmr.msra.gmra.mxu0 %vm426_vm5, %v3846_v18  ;;  %3420 = vmatpush.bf16.msk.msra.mxu2 %vm4720_vm11, %v3419_v23 }
 0x135   : > { %3369 = vmatpush.bf16.msk.msrb.mxu0 %vm4720_vm11, %v3368_v17  ;;  %3427 = vmatpush.bf16.msk.msra.mxu3 %vm4731_vm12, %v3426_v24 }
 0x136   : > { %v416_v30 = vpop.permute.xlu0 %415  ;;  %v4772_v31 = vpop.permute.xlu1 %4023 }
 0x137   : > { %v4774_v32 = vpop.permute.xlu2 %4028  ;;  %v421_v33 = vsel %vm417_vm7, %v414_v48, %v416_v30  ;;  %3421 = vmatmul.msk.bf16.vlgmr.msra.gmra.mxu2 %vm426_vm5, %v3850_v28  ;;  %v4026_v27 = vunpack.i.h.bf16 %v4772_v31  ;;  %v4025_v50 = vunpack.i.l.bf16 %v4772_v31 }
 0x138   : > { %450 = vmatpush.bf16.msra.mxu1 %v421_v33  ;;  %3428 = vmatmul.msk.bf16.vlgmr.msra.gmra.mxu3 %vm426_vm5, %v3850_v28  ;;  %v4031_v51 = vunpack.i.h.bf16 %v4774_v32  ;;  %v4030_v16 = vunpack.i.l.bf16 %v4774_v32 }
 0x139   : > { %3372 = vmatpush.bf16.msk.msrb.mxu0 %vm4720_vm11, %v3371_v29  ;;  %v887_v0 = vsel %vm882_vm15, %v4025_v50, %v4026_v27  ;;  %v3851_v29 = vld [vmem:[%s5511_s1 + $0x30] sm:$0xff] }
 0x13a   : > { %v888_v60 = vsel %vm882_vm15, %v4026_v27, %v4030_v16 }
 0x13e   : > { %v410_v38 = vpop.permute.xlu0 %409  ;;  %v4783_v39 = vpop.permute.xlu1 %4038 }
 0x13f   : > { %v4786_v42 = vpop.permute.xlu2 %4043  ;;  %v419_v43 = vsel %vm417_vm7, %v408_v15, %v410_v38  ;;  %v4041_v53 = vunpack.i.h.bf16 %v4783_v39  ;;  %v4040_v54 = vunpack.i.l.bf16 %v4783_v39  ;;  %v3852_v38 = vld [vmem:[%s5511_s1 + $0x38] sm:$0xff]  ;;  %v4479_v39 = vmov 0  }
 0x140   : > { %451 = vmatpush.bf16.msra.mxu1 %v419_v43  ;;  %v4046_v1 = vunpack.i.h.bf16 %v4786_v42  ;;  %v4045_v19 = vunpack.i.l.bf16 %v4786_v42  ;;  %4082 = vset.pattern.permute.xlu1 %v4479_v39 }
 0x141   : > { %v883_v6 = vsel %vm882_vm15, %v4040_v54, %v4041_v53  ;;  %1116 = vperm.xlu1 %4082, %v309_v36   ;;  %4083 = vset.pattern.permute.xlu2 %v4479_v39 }
 0x142   : > { %v884_v30 = vsel %vm882_vm15, %v4041_v53, %v4045_v19  ;;  %4169 = vset.pattern.permute.xlu0 %v4479_v39 }
 0x143   : > { %3342 = vmatmul.msk.bf16.vlgmr.msra.gmra.mxu1 %vm426_vm5, %v3846_v18 }
 0x144   : > { %3376 = vmatpush.bf16.msk.msrb.mxu1 %vm4731_vm12, %v3375_v45  ;;  %3373 = vmatmul.msk.bf16.vlgmr.msrb.gmra.mxu0 %vm426_vm5, %v3847_v55 }
 0x146   : > { %v4034_v56 = vpop.permute.xlu0 %4033  ;;  %v713_v48 = vpop.permute.xlu1 %712 }
 0x147   : > { %v715_v13 = vpop.permute.xlu2 %714  ;;  %v4035_v20 = vunpack.i.l.bf16 %v4034_v56  ;;  %v4036_v15 = vunpack.i.h.bf16 %v4034_v56 }
 0x148   : > { %3379 = vmatpush.bf16.msk.msrb.mxu1 %vm4731_vm12, %v3378_v47  ;;  %v721_v26 = vsel %vm718_vm14, %v713_v48, %v715_v13 }
 0x149   : > { %736 = vmatpush.bf16.msra.mxu0 %v721_v26  ;;  %v889_v58 = vsel %vm882_vm15, %v4031_v51, %v4035_v20  ;;  %v890_v17 = vsel %vm882_vm15, %v4035_v20, %v4036_v15  ;;  %v489_v15 = vpop.f32.mrf.mxu3 }
 0x14a   : > { %v3436_v4 = vpack.c.bf16 %v889_v58, %v887_v0  ;;  %v3443_v10 = vpack.c.bf16 %v890_v17, %v888_v60 }
 0x14e   : > { %v4049_v61 = vpop.permute.xlu0 %4048  ;;  %v707_v62 = vpop.permute.xlu1 %706 }
 0x14f   : > { %v4050_v2 = vunpack.i.l.bf16 %v4049_v61  ;;  %v709_v3 = vpop.permute.xlu2 %708  ;;  %v4051_v18 = vunpack.i.h.bf16 %v4049_v61 }
 0x150   : > { %v719_v57 = vsel %vm718_vm14, %v707_v62, %v709_v3 }
 0x151   : > { %v885_v7 = vsel %vm882_vm15, %v4046_v1, %v4050_v2  ;;  %737 = vmatpush.bf16.msra.mxu0 %v719_v57  ;;  %v886_v25 = vsel %vm882_vm15, %v4050_v2, %v4051_v18  ;;  %v491_v60 = vpop.f32.mrf.mxu3 }
 0x152   : > { %v3439_v8 = vpack.c.bf16 %v885_v7, %v883_v6  ;;  %v3446_v31 = vpack.c.bf16 %v886_v25, %v884_v30  ;;  %v3853_v7 = vld [vmem:[%s5511_s1 + $0x40] sm:$0xff] }
 0x153   : > { %3380 = vmatmul.msk.bf16.vlgmr.msrb.gmra.mxu1 %vm426_vm5, %v3847_v55 }
 0x154   : > { %3407 = vmatmul.msk.bf16.vlgmr.msra.gmra.mxu0 %vm426_vm5, %v3849_v5 }
 0x155   : > { %3437 = vmatpush.bf16.msk.msrb.mxu0 %vm4563_vm3, %v3436_v4 }
 0x156   : > { %v717_v9 = vpop.permute.xlu0 %716  ;;  %v4054_v11 = vpop.permute.xlu1 %4053 }
 0x157   : > { %v722_v12 = vsel %vm718_vm14, %v715_v13, %v717_v9  ;;  %v4059_v14 = vpop.permute.xlu2 %4058  ;;  %v4056_v43 = vunpack.i.h.bf16 %v4054_v11  ;;  %v4055_v45 = vunpack.i.l.bf16 %v4054_v11 }
 0x158   : > { %750 = vmatpush.bf16.msra.mxu1 %v722_v12  ;;  %v4060_v59 = vunpack.i.l.bf16 %v4059_v14  ;;  %v4061_v63 = vunpack.i.h.bf16 %v4059_v14  ;;  %v475_v14 = vpop.f32.mrf.mxu2 }
 0x159   : > { %3440 = vmatpush.bf16.msk.msrb.mxu0 %vm4563_vm3, %v3439_v8  ;;  %v1047_v56 = vsel %vm1042_vm2, %v4055_v45, %v4056_v43  ;;  %v310_v8 = vld [vmem:[%s5515_s5 + $0x8] sm:$0xff] }
 0x15a   : > { %v1048_v48 = vsel %vm1042_vm2, %v4056_v43, %v4060_v59  ;;  %1121 = vperm.xlu2 %4083, %v310_v8  }
 0x15e   : > { %v711_v21 = vpop.permute.xlu0 %710  ;;  %v969_v22 = vpop.permute.xlu1 %968 }
 0x15f   : > { %v971_v23 = vpop.permute.xlu2 %970  ;;  %v720_v24 = vsel %vm718_vm14, %v709_v3, %v711_v21 }
 0x160   : > { %v977_v28 = vsel %vm974_vm1, %v969_v22, %v971_v23  ;;  %751 = vmatpush.bf16.msra.mxu1 %v720_v24  ;;  %v477_v18 = vpop.f32.mrf.mxu2 }
 0x161   : > { %992 = vmatpush.bf16.msrb.mxu2 %v977_v28 }
 0x163   : > { %3408 = vmatmul.msk.bf16.vlgmr.msra.gmra.mxu1 %vm426_vm5, %v3849_v5 }
 0x164   : > { %3444 = vmatpush.bf16.msk.msrb.mxu1 %vm4571_vm4, %v3443_v10  ;;  %3441 = vmatmul.msk.bf16.vlgmr.msrb.gmra.mxu0 %vm426_vm5, %v3851_v29 }
 0x166   : > { %v973_v32 = vpop.permute.xlu0 %972  ;;  %v963_v33 = vpop.permute.xlu1 %962 }
 0x167   : > { %v978_v34 = vsel %vm974_vm1, %v971_v23, %v973_v32  ;;  %v965_v35 = vpop.permute.xlu2 %964 }
 0x168   : > { %3447 = vmatpush.bf16.msk.msrb.mxu1 %vm4571_vm4, %v3446_v31  ;;  %v975_v37 = vsel %vm974_vm1, %v963_v33, %v965_v35  ;;  %1006 = vmatpush.bf16.msrb.mxu3 %v978_v34 }
 0x169   : > { %993 = vmatpush.bf16.msrb.mxu2 %v975_v37 }
 0x16c   : > { %3455 = vmatmul.msk.bf16.vlgmr.msrb.gmra.mxu2 %vm426_vm5, %v3852_v38 }
 0x16e   : > { %v967_v41 = vpop.permute.xlu0 %966  ;;  %v4069_v20 = vpop.permute.xlu1 %4068 }
 0x16f   : > { %v976_v42 = vsel %vm974_vm1, %v965_v35, %v967_v41  ;;  %v4074_v27 = vpop.permute.xlu2 %4073  ;;  %v4071_v53 = vunpack.i.h.bf16 %v4069_v20  ;;  %v4070_v54 = vunpack.i.l.bf16 %v4069_v20 }
 0x170   : > { %1007 = vmatpush.bf16.msrb.mxu3 %v976_v42  ;;  %v4075_v58 = vunpack.i.l.bf16 %v4074_v27  ;;  %v4076_v62 = vunpack.i.h.bf16 %v4074_v27 }
 0x171   : > { %v1043_v2 = vsel %vm1042_vm2, %v4070_v54, %v4071_v53 }
 0x172   : > { %v1044_v3 = vsel %vm1042_vm2, %v4071_v53, %v4075_v58 }
 0x173   : > { %3448 = vmatmul.msk.bf16.vlgmr.msrb.gmra.mxu1 %vm426_vm5, %v3851_v29  ;;  %3456 = vmatmul.msk.bf16.vlgmr.msrb.gmra.mxu3 %vm426_vm5, %v3852_v38 }
 0x176   : > { %v4064_v55 = vpop.permute.xlu0 %4063 }
 0x177   : > { %v4066_v46 = vunpack.i.h.bf16 %v4064_v55  ;;  %v4065_v47 = vunpack.i.l.bf16 %v4064_v55 }
 0x179   : > { %v1049_v13 = vsel %vm1042_vm2, %v4061_v63, %v4065_v47  ;;  %v1050_v26 = vsel %vm1042_vm2, %v4065_v47, %v4066_v46 }
 0x17a   : > { %v3464_v50 = vpack.c.bf16 %v1049_v13, %v1047_v56  ;;  %v3471_v51 = vpack.c.bf16 %v1050_v26, %v1048_v48 }
 0x17c   : > { %3465 = vmatpush.bf16.msk.msra.mxu0 %vm4720_vm11, %v3464_v50  ;;  %3472 = vmatpush.bf16.msk.msra.mxu1 %vm4731_vm12, %v3471_v51 }
 0x17e   : > { %v4079_v61 = vpop.permute.xlu0 %4078 }
 0x17f   : > { %v4081_v0 = vunpack.i.h.bf16 %v4079_v61  ;;  %v4080_v1 = vunpack.i.l.bf16 %v4079_v61 }
 0x181   : > { %v1045_v4 = vsel %vm1042_vm2, %v4076_v62, %v4080_v1  ;;  %v1046_v57 = vsel %vm1042_vm2, %v4080_v1, %v4081_v0 }
 0x182   : > { %v3467_v5 = vpack.c.bf16 %v1045_v4, %v1043_v2  ;;  %v3474_v6 = vpack.c.bf16 %v1046_v57, %v1044_v3 }
 0x184   : > { %3468 = vmatpush.bf16.msk.msra.mxu0 %vm4720_vm11, %v3467_v5  ;;  %3475 = vmatpush.bf16.msk.msra.mxu1 %vm4731_vm12, %v3474_v6 }
 0x187   : > { %3469 = vmatmul.msk.bf16.vlgmr.msra.gmra.mxu0 %vm426_vm5, %v3853_v7  ;;  %3476 = vmatmul.msk.bf16.vlgmr.msra.gmra.mxu1 %vm426_vm5, %v3853_v7 }
 0x1aa   : > { %v675_v22 = vpop.f32.mrf.mxu2  ;;  %v689_v10 = vpop.f32.mrf.mxu3 }
 0x1b1   : > { %v439_v9 = vpop.f32.mrf.mxu0 }
 0x1b2   : > { %v677_v28 = vpop.f32.mrf.mxu2  ;;  %v691_v29 = vpop.f32.mrf.mxu3  ;;  %v476_v34 = vadd.f32 %v475_v14, %v439_v9 }
 0x1b3   : > { %v1117_v2 = vpop.permute.xlu1 %1116 }
 0x1b9   : > { %v441_v11 = vpop.f32.mrf.mxu0 }
 0x1ba   : > { %v835_v32 = vpop.f32.mrf.mxu2  ;;  %v478_v59 = vadd.f32 %v477_v18, %v441_v11 }
 0x1bb   : > { %v849_v33 = vpop.f32.mrf.mxu3 }
 0x1c0   : > { %v453_v12 = vpop.f32.mrf.mxu1 }
 0x1c1   : > { %v579_v17 = vpop.f32.mrf.mxu0  ;;  %v490_v37 = vadd.f32 %v489_v15, %v453_v12 }
 0x1c2   : > { %v598_v38 = vadd.f32 %v579_v17, %v476_v34  ;;  %v837_v41 = vpop.f32.mrf.mxu2 }
 0x1c3   : > { %v851_v42 = vpop.f32.mrf.mxu3 }
 0x1c4   : > { %v694_v43 = vadd.f32 %v675_v22, %v598_v38  ;;  %v1122_v22 = vpop.permute.xlu2 %1121 }
 0x1c8   : > { %v455_v16 = vpop.f32.mrf.mxu1 }
 0x1c9   : > { %v581_v21 = vpop.f32.mrf.mxu0  ;;  %v492_v55 = vadd.f32 %v491_v60, %v455_v16 }
 0x1ca   : > { %v600_v48 = vadd.f32 %v581_v21, %v478_v59 }
 0x1cc   : > { %v696_v51 = vadd.f32 %v677_v28, %v600_v48 }
 0x1d0   : > { %v593_v19 = vpop.f32.mrf.mxu1 }
 0x1d1   : > { %v739_v24 = vpop.f32.mrf.mxu0  ;;  %v599_v39 = vadd.f32 %v593_v19, %v490_v37 }
 0x1d2   : > { %v758_v63 = vadd.f32 %v739_v24, %v694_v43 }
 0x1d3   : > { %v695_v45 = vadd.f32 %v689_v10, %v599_v39 }
 0x1d4   : > { %v854_v27 = vadd.f32 %v835_v32, %v758_v63 }
 0x1d8   : > { %v595_v23 = vpop.f32.mrf.mxu1 }
 0x1d9   : > { %v741_v30 = vpop.f32.mrf.mxu0  ;;  %v601_v13 = vadd.f32 %v595_v23, %v492_v55 }
 0x1da   : > { %v760_v61 = vadd.f32 %v741_v30, %v696_v51 }
 0x1db   : > { %v697_v53 = vadd.f32 %v691_v29, %v601_v13 }
 0x1dc   : > { %v856_v6 = vadd.f32 %v837_v41, %v760_v61 }
 0x1e0   : > { %v753_v25 = vpop.f32.mrf.mxu1 }
 0x1e1   : > { %v931_v35 = vpop.f32.mrf.mxu0  ;;  %v759_v46 = vadd.f32 %v753_v25, %v695_v45 }
 0x1e2   : > { %v950_v54 = vadd.f32 %v931_v35, %v854_v27  ;;  %v311_v27 = vld [vmem:[%s5515_s5 + $0x10] sm:$0xff] }
 0x1e3   : > { %v855_v50 = vadd.f32 %v849_v33, %v759_v46 }
 0x1e8   : > { %v755_v31 = vpop.f32.mrf.mxu1 }
 0x1e9   : > { %v933_v47 = vpop.f32.mrf.mxu0  ;;  %v761_v62 = vadd.f32 %v755_v31, %v697_v53 }
 0x1ea   : > { %v952_v14 = vadd.f32 %v933_v47, %v856_v6 }
 0x1eb   : > { %v857_v7 = vadd.f32 %v851_v42, %v761_v62 }
 0x1ef   : > { %v995_v26 = vpop.f32.mrf.mxu2 }
 0x1f0   : > { %v945_v36 = vpop.f32.mrf.mxu1  ;;  %v1014_v0 = vadd.f32 %v995_v26, %v950_v54 }
 0x1f1   : > { %v951_v58 = vadd.f32 %v945_v36, %v855_v50  ;;  %v3854_v50 = vld [vmem:[#allocation2] sm:$0xff] }
 0x1f6   : > { %v1009_v20 = vpop.f32.mrf.mxu3 }
 0x1f7   : > { %v1015_v1 = vadd.f32 %v1009_v20, %v951_v58  ;;  %v997_v11 = vpop.f32.mrf.mxu2 }
 0x1f8   : > { %v947_v56 = vpop.f32.mrf.mxu1  ;;  %v1016_v18 = vadd.f32 %v997_v11, %v952_v14 }
 0x1f9   : > { %v953_v15 = vadd.f32 %v947_v56, %v857_v7 }
 0x1fe   : > { %v1011_v12 = vpop.f32.mrf.mxu3 }
 0x1ff   : > { %v1017_v60 = vadd.f32 %v1011_v12, %v953_v15 }
 0x204   : > { %v1091_v3 = vpop.f32.mrf.mxu0  ;;  %v1105_v4 = vpop.f32.mrf.mxu1 }
 0x205   : > { %v1110_v57 = vadd.f32 %v1091_v3, %v1014_v0  ;;  %v1111_v5 = vadd.f32 %v1105_v4, %v1015_v1  ;;  %v3855_v0 = vld [vmem:[#allocation2 + $0x8] sm:$0xff] }
 0x207   : > { %v1124_v8 = vadd.f32 %v1117_v2, %v1110_v57  ;;  %v1125_v9 = vadd.f32 %v1117_v2, %v1111_v5 }
 0x209   : > { %v1128_v16 = vmul.f32 0.2, %v1124_v8  ;;  %v1129_v17 = vmul.f32 0.2, %v1125_v9 }
 0x20b   : > { %v1132_v19 = vmax.f32 %v1124_v8, %v1128_v16  ;;  %v1133_v21 = vmax.f32 %v1125_v9, %v1129_v17 }
 0x20c   : > { %v1093_v10 = vpop.f32.mrf.mxu0  ;;  %v1107_v23 = vpop.f32.mrf.mxu1 }
 0x20d   : > { %v1112_v24 = vadd.f32 %v1093_v10, %v1016_v18  ;;  %v1113_v25 = vadd.f32 %v1107_v23, %v1017_v60  ;;  %v4084_v28 = vpack.i.bf16 %v1133_v21, %v1132_v19 }
 0x20f   : > { %v1126_v29 = vadd.f32 %v1122_v22, %v1112_v24  ;;  %v1127_v30 = vadd.f32 %v1122_v22, %v1113_v25  ;;  %4085 = vrot.lane.b32.xlu0 %v4084_v28, %s4470_s10  ;;  %v3856_v22 = vld [vmem:[#allocation2 + $0x10] sm:$0xff] }
 0x211   : > { %v1130_v31 = vmul.f32 0.2, %v1126_v29  ;;  %v1131_v32 = vmul.f32 0.2, %v1127_v30 }
 0x213   : > { %v1134_v33 = vmax.f32 %v1126_v29, %v1130_v31  ;;  %v1135_v34 = vmax.f32 %v1127_v30, %v1131_v32 }
 0x215   : > { %v4089_v35 = vpack.i.bf16 %v1135_v34, %v1134_v33 }
 0x217   : > { %4090 = vrot.lane.b32.xlu1 %v4089_v35, %s4470_s10 }
 0x281   : > { %v4086_v36 = vpop.permute.xlu0 %4085 }
 0x282   : > { %v4088_v37 = vunpack.i.h.bf16 %v4086_v36  ;;  %v4087_v38 = vunpack.i.l.bf16 %v4086_v36 }
 0x284   : > { %v1158_v43 = vsel %vm342_vm0, %v4088_v37, 0.0  ;;  %v1148_v45 = vsel %vm342_vm0, %v4087_v38, %v4088_v37  ;;  %v1156_v59 = vsel %vm342_vm0, 0.0, %v4087_v38 }
 0x285   : > { %v4094_v26 = vpack.i.bf16 %v1148_v45, %v1156_v59 }
 0x289   : > { %v4091_v39 = vpop.permute.xlu1 %4090 }
 0x28a   : > { %v4093_v41 = vunpack.i.h.bf16 %v4091_v39  ;;  %v4092_v42 = vunpack.i.l.bf16 %v4091_v39  ;;  %v3857_v39 = vld [vmem:[#allocation2 + $0x18] sm:$0xff] }
 0x28c   : > { %v1159_v55 = vsel %vm342_vm0, %v4093_v41, 0.0  ;;  %v1149_v63 = vsel %vm342_vm0, %v4092_v42, %v4093_v41  ;;  %v1157_v46 = vsel %vm342_vm0, 0.0, %v4092_v42 }
 0x28d   : > { %v1173_v47 = vpack.c.bf16 %v1159_v55, %v1158_v43  ;;  %v1171_v56 = vpack.c.bf16 %v1157_v46, %v1156_v59  ;;  %v1172_v48 = vpack.c.bf16 %v1149_v63, %v1148_v45  ;;  %v4104_v13 = vpack.i.bf16 %v1159_v55, %v1149_v63 }
 0x28e   : > { %v4099_v20 = vpack.i.bf16 %v1157_v46, %v1158_v43 }
 0x28f   : > { %1186 = vrot.lane.b32.xlu1 %v1173_v47, %s4474_s14  ;;  %1182 = vrot.lane.b32.xlu2 %v1171_v56, %s4474_s14 }
 0x290   : > { %3489 = vmatpush.bf16.msk.msrb.mxu0 %vm4563_vm3, %v1171_v56  ;;  %1184 = vrot.lane.b32.xlu0 %v1172_v48, %s4474_s14 }
 0x291   : > { %3493 = vmatpush.bf16.msk.msrb.mxu1 %vm4571_vm4, %v1172_v48 }
 0x293   : > { %3490 = vmatmul.msk.bf16.vlgmr.msrb.gmra.mxu0 %vm1192_vm8, %v3854_v50 }
 0x294   : > { %3494 = vmatmul.msk.bf16.vlgmr.msrb.gmra.mxu1 %vm1192_vm8, %v3854_v50 }
 0x297   : > { %4105 = vrot.lane.b32.xlu1 %v4104_v13, %s4471_s11  ;;  %4095 = vrot.lane.b32.xlu2 %v4094_v26, %s4471_s11 }
 0x298   : > { %4100 = vrot.lane.b32.xlu0 %v4099_v20, %s4471_s11 }
 0x29f   : > { %1414 = vrot.lane.b32.xlu1 %v1173_v47, %s4476_s16  ;;  %1410 = vrot.lane.b32.xlu2 %v1171_v56, %s4476_s16 }
 0x2a0   : > { %1412 = vrot.lane.b32.xlu0 %v1172_v48, %s4476_s16 }
 0x2a7   : > { %4120 = vrot.lane.b32.xlu1 %v4104_v13, %s4472_s12  ;;  %4110 = vrot.lane.b32.xlu2 %v4094_v26, %s4472_s12 }
 0x2a8   : > { %4115 = vrot.lane.b32.xlu0 %v4099_v20, %s4472_s12 }
 0x2af   : > { %4135 = vrot.lane.b32.xlu1 %v4104_v13, %s4475_s15  ;;  %4125 = vrot.lane.b32.xlu2 %v4094_v26, %s4475_s15 }
 0x2b0   : > { %4130 = vrot.lane.b32.xlu0 %v4099_v20, %s4475_s15 }
 0x2b7   : > { %4150 = vrot.lane.b32.xlu1 %v4104_v13, %s4473_s13  ;;  %4140 = vrot.lane.b32.xlu2 %v4094_v26, %s4473_s13 }
 0x2b8   : > { %4145 = vrot.lane.b32.xlu0 %v4099_v20, %s4473_s13 }
 0x2bf   : > { %4165 = vrot.lane.b32.xlu1 %v4104_v13, %s4477_s17  ;;  %4155 = vrot.lane.b32.xlu2 %v4094_v26, %s4477_s17 }
 0x2c0   : > { %4160 = vrot.lane.b32.xlu0 %v4099_v20, %s4477_s17 }
 0x2c7   : > { %1605 = vrot.lane.b32.xlu1 %v1173_v47, %s4478_s18  ;;  %1601 = vrot.lane.b32.xlu2 %v1171_v56, %s4478_s18  ;;  %v3858_v47 = vld [vmem:[#allocation2 + $0x20] sm:$0xff] }
 0x2c8   : > { %1603 = vrot.lane.b32.xlu0 %v1172_v48, %s4478_s18 }
 0x2cf   : > { %1717 = vperm.xlu2 %4083, %v311_v27  }
 0x2e9   : > { %v1183_v51 = vpop.permute.xlu2 %1182 }
 0x2f1   : > { %v4096_v53 = vpop.permute.xlu2 %4095 }
 0x2f2   : > { %v4098_v2 = vunpack.i.h.bf16 %v4096_v53  ;;  %v4097_v3 = vunpack.i.l.bf16 %v4096_v53 }
 0x2f4   : > { %v1276_v11 = vsel %vm530_vm13, %v4097_v3, %v4098_v2 }
 0x2f9   : > { %v1411_v1 = vpop.permute.xlu2 %1410 }
 0x301   : > { %v1187_v54 = vpop.permute.xlu1 %1186  ;;  %v4111_v17 = vpop.permute.xlu2 %4110 }
 0x302   : > { %v1185_v58 = vpop.permute.xlu0 %1184  ;;  %v4113_v10 = vunpack.i.h.bf16 %v4111_v17  ;;  %v4112_v23 = vunpack.i.l.bf16 %v4111_v17 }
 0x303   : > { %v1188_v61 = vsel %vm417_vm7, %v1183_v51, %v1185_v58  ;;  %v1189_v62 = vsel %vm417_vm7, %v1185_v58, %v1187_v54  ;;  %v312_v51 = vld [vmem:[%s5515_s5 + $0x18] sm:$0xff] }
 0x304   : > { %1203 = vmatpush.bf16.msra.mxu2 %v1188_v61  ;;  %1217 = vmatpush.bf16.msra.mxu3 %v1189_v62  ;;  %v1345_v34 = vsel %vm626_vm6, %v4112_v23, %v4113_v10 }
 0x305   : > { %1722 = vperm.xlu0 %4169, %v312_v51  }
 0x307   : > { %3481 = vmatmul.msk.bf16.vlgmr.msra.gmra.mxu2 %vm1192_vm8, %v3855_v0  ;;  %3482 = vmatmul.msk.bf16.vlgmr.msra.gmra.mxu3 %vm1192_vm8, %v3855_v0 }
 0x309   : > { %v4106_v4 = vpop.permute.xlu1 %4105  ;;  %v4126_v25 = vpop.permute.xlu2 %4125 }
 0x30a   : > { %v4108_v57 = vunpack.i.h.bf16 %v4106_v4  ;;  %v4107_v5 = vunpack.i.l.bf16 %v4106_v4  ;;  %v4101_v6 = vpop.permute.xlu0 %4100  ;;  %v4128_v41 = vunpack.i.h.bf16 %v4126_v25  ;;  %v4127_v42 = vunpack.i.l.bf16 %v4126_v25 }
 0x30b   : > { %v4103_v7 = vunpack.i.h.bf16 %v4101_v6  ;;  %v4102_v8 = vunpack.i.l.bf16 %v4101_v6 }
 0x30c   : > { %v1279_v9 = vsel %vm530_vm13, %v4107_v5, %v4108_v57  ;;  %v1536_v13 = vsel %vm882_vm15, %v4127_v42, %v4128_v41 }
 0x30d   : > { %v1278_v12 = vsel %vm530_vm13, %v4103_v7, %v4107_v5  ;;  %v1277_v14 = vsel %vm530_vm13, %v4098_v2, %v4102_v8 }
 0x30e   : > { %v3500_v15 = vpack.c.bf16 %v1278_v12, %v1276_v11  ;;  %v3504_v16 = vpack.c.bf16 %v1279_v9, %v1277_v14  ;;  %v3859_v9 = vld [vmem:[#allocation2 + $0x28] sm:$0xff] }
 0x310   : > { %3501 = vmatpush.bf16.msk.msrb.mxu2 %vm4720_vm11, %v3500_v15  ;;  %3505 = vmatpush.bf16.msk.msrb.mxu3 %vm4731_vm12, %v3504_v16 }
 0x311   : > { %v1415_v18 = vpop.permute.xlu1 %1414  ;;  %v4141_v56 = vpop.permute.xlu2 %4140 }
 0x312   : > { %v1413_v60 = vpop.permute.xlu0 %1412  ;;  %v4143_v53 = vunpack.i.h.bf16 %v4141_v56  ;;  %v4142_v54 = vunpack.i.l.bf16 %v4141_v56 }
 0x313   : > { %v1416_v19 = vsel %vm718_vm14, %v1411_v1, %v1413_v60  ;;  %v1417_v21 = vsel %vm718_vm14, %v1413_v60, %v1415_v18 }
 0x314   : > { %1430 = vmatpush.bf16.msra.mxu2 %v1416_v19  ;;  %1444 = vmatpush.bf16.msra.mxu3 %v1417_v21  ;;  %v1467_v4 = vsel %vm786_vm9, %v4142_v54, %v4143_v53  ;;  %v3860_v19 = vld [vmem:[#allocation2 + $0x30] sm:$0xff] }
 0x317   : > { %3502 = vmatmul.msk.bf16.vlgmr.msrb.gmra.mxu2 %vm1192_vm8, %v3856_v22  ;;  %3506 = vmatmul.msk.bf16.vlgmr.msrb.gmra.mxu3 %vm1192_vm8, %v3856_v22 }
 0x319   : > { %v4121_v24 = vpop.permute.xlu1 %4120  ;;  %v4156_v6 = vpop.permute.xlu2 %4155 }
 0x31a   : > { %v4123_v28 = vunpack.i.h.bf16 %v4121_v24  ;;  %v4122_v29 = vunpack.i.l.bf16 %v4121_v24  ;;  %v4116_v30 = vpop.permute.xlu0 %4115  ;;  %v4158_v11 = vunpack.i.h.bf16 %v4156_v6  ;;  %v4157_v12 = vunpack.i.l.bf16 %v4156_v6 }
 0x31b   : > { %v4118_v31 = vunpack.i.h.bf16 %v4116_v30  ;;  %v4117_v32 = vunpack.i.l.bf16 %v4116_v30 }
 0x31c   : > { %v1348_v33 = vsel %vm626_vm6, %v4122_v29, %v4123_v28  ;;  %v1658_v22 = vsel %vm1042_vm2, %v4157_v12, %v4158_v11 }
 0x31d   : > { %v1347_v35 = vsel %vm626_vm6, %v4118_v31, %v4122_v29  ;;  %v1346_v36 = vsel %vm626_vm6, %v4113_v10, %v4117_v32 }
 0x31e   : > { %v3512_v37 = vpack.c.bf16 %v1347_v35, %v1345_v34  ;;  %v3516_v38 = vpack.c.bf16 %v1348_v33, %v1346_v36  ;;  %v3861_v33 = vld [vmem:[#allocation2 + $0x38] sm:$0xff]  ;;  %v3862_v34 = vld [vmem:[#allocation2 + $0x40] sm:$0xff] }
 0x320   : > { %3513 = vmatpush.bf16.msk.msra.mxu0 %vm4563_vm3, %v3512_v37  ;;  %3517 = vmatpush.bf16.msk.msra.mxu1 %vm4571_vm4, %v3516_v38  ;;  %v1241_v37 = vpop.f32.mrf.mxu0  ;;  %v1255_v38 = vpop.f32.mrf.mxu1 }
 0x321   : > { %v4136_v43 = vpop.permute.xlu1 %4135  ;;  %v1602_v29 = vpop.permute.xlu2 %1601 }
 0x322   : > { %v4138_v45 = vunpack.i.h.bf16 %v4136_v43  ;;  %v4137_v59 = vunpack.i.l.bf16 %v4136_v43  ;;  %v4131_v55 = vpop.permute.xlu0 %4130 }
 0x323   : > { %v4133_v63 = vunpack.i.h.bf16 %v4131_v55  ;;  %v4132_v46 = vunpack.i.l.bf16 %v4131_v55  ;;  %3514 = vmatmul.msk.bf16.vlgmr.msra.gmra.mxu0 %vm1192_vm8, %v3857_v39  ;;  %3518 = vmatmul.msk.bf16.vlgmr.msra.gmra.mxu1 %vm1192_vm8, %v3857_v39 }
 0x324   : > { %v1539_v48 = vsel %vm882_vm15, %v4137_v59, %v4138_v45 }
 0x325   : > { %v1538_v26 = vsel %vm882_vm15, %v4133_v63, %v4137_v59  ;;  %v1537_v20 = vsel %vm882_vm15, %v4128_v41, %v4132_v46 }
 0x326   : > { %v3542_v27 = vpack.c.bf16 %v1538_v26, %v1536_v13  ;;  %v3546_v50 = vpack.c.bf16 %v1539_v48, %v1537_v20 }
 0x327   : > { %3523 = vmatmul.msk.bf16.vlgmr.msra.gmra.mxu2 %vm1192_vm8, %v3858_v47  ;;  %3524 = vmatmul.msk.bf16.vlgmr.msra.gmra.mxu3 %vm1192_vm8, %v3858_v47 }
 0x328   : > { %3543 = vmatpush.bf16.msk.msrb.mxu2 %vm4563_vm3, %v3542_v27  ;;  %3547 = vmatpush.bf16.msk.msrb.mxu3 %vm4571_vm4, %v3546_v50  ;;  %v1243_v42 = vpop.f32.mrf.mxu0  ;;  %v1257_v43 = vpop.f32.mrf.mxu1 }
 0x329   : > { %v4151_v58 = vpop.permute.xlu1 %4150 }
 0x32a   : > { %v4153_v61 = vunpack.i.h.bf16 %v4151_v58  ;;  %v4152_v62 = vunpack.i.l.bf16 %v4151_v58  ;;  %v4146_v0 = vpop.permute.xlu0 %4145 }
 0x32b   : > { %v4148_v1 = vunpack.i.h.bf16 %v4146_v0  ;;  %v4147_v2 = vunpack.i.l.bf16 %v4146_v0 }
 0x32c   : > { %v1470_v3 = vsel %vm786_vm9, %v4152_v62, %v4153_v61 }
 0x32d   : > { %v1469_v57 = vsel %vm786_vm9, %v4148_v1, %v4152_v62  ;;  %v1468_v5 = vsel %vm786_vm9, %v4143_v53, %v4147_v2 }
 0x32e   : > { %v3530_v7 = vpack.c.bf16 %v1469_v57, %v1467_v4  ;;  %v3534_v8 = vpack.c.bf16 %v1470_v3, %v1468_v5 }
 0x330   : > { %3531 = vmatpush.bf16.msk.msrb.mxu0 %vm4720_vm11, %v3530_v7  ;;  %3535 = vmatpush.bf16.msk.msrb.mxu1 %vm4731_vm12, %v3534_v8 }
 0x331   : > { %v4166_v14 = vpop.permute.xlu1 %4165 }
 0x332   : > { %v4168_v15 = vunpack.i.h.bf16 %v4166_v14  ;;  %v4167_v16 = vunpack.i.l.bf16 %v4166_v14  ;;  %v4161_v17 = vpop.permute.xlu0 %4160 }
 0x333   : > { %v4163_v18 = vunpack.i.h.bf16 %v4161_v17  ;;  %v4162_v60 = vunpack.i.l.bf16 %v4161_v17  ;;  %3532 = vmatmul.msk.bf16.vlgmr.msrb.gmra.mxu0 %vm1192_vm8, %v3859_v9  ;;  %3536 = vmatmul.msk.bf16.vlgmr.msrb.gmra.mxu1 %vm1192_vm8, %v3859_v9 }
 0x334   : > { %v1661_v21 = vsel %vm1042_vm2, %v4167_v16, %v4168_v15 }
 0x335   : > { %v1660_v10 = vsel %vm1042_vm2, %v4163_v18, %v4167_v16  ;;  %v1659_v23 = vsel %vm1042_vm2, %v4158_v11, %v4162_v60 }
 0x336   : > { %v3560_v24 = vpack.c.bf16 %v1660_v10, %v1658_v22  ;;  %v3564_v25 = vpack.c.bf16 %v1661_v21, %v1659_v23 }
 0x337   : > { %3544 = vmatmul.msk.bf16.vlgmr.msrb.gmra.mxu2 %vm1192_vm8, %v3860_v19  ;;  %3548 = vmatmul.msk.bf16.vlgmr.msrb.gmra.mxu3 %vm1192_vm8, %v3860_v19 }
 0x338   : > { %3561 = vmatpush.bf16.msk.msra.mxu2 %vm4720_vm11, %v3560_v24  ;;  %3565 = vmatpush.bf16.msk.msra.mxu3 %vm4731_vm12, %v3564_v25 }
 0x339   : > { %v1606_v28 = vpop.permute.xlu1 %1605 }
 0x33a   : > { %v1604_v30 = vpop.permute.xlu0 %1603 }
 0x33b   : > { %v1607_v31 = vsel %vm974_vm1, %v1602_v29, %v1604_v30  ;;  %v1608_v32 = vsel %vm974_vm1, %v1604_v30, %v1606_v28 }
 0x33c   : > { %1621 = vmatpush.bf16.msra.mxu0 %v1607_v31  ;;  %1635 = vmatpush.bf16.msra.mxu1 %v1608_v32  ;;  %v1718_v31 = vpop.permute.xlu2 %1717 }
 0x343   : > { %3553 = vmatmul.msk.bf16.vlgmr.msra.gmra.mxu0 %vm1192_vm8, %v3861_v33  ;;  %3554 = vmatmul.msk.bf16.vlgmr.msra.gmra.mxu1 %vm1192_vm8, %v3861_v33 }
 0x347   : > { %3562 = vmatmul.msk.bf16.vlgmr.msra.gmra.mxu2 %vm1192_vm8, %v3862_v34  ;;  %3566 = vmatmul.msk.bf16.vlgmr.msra.gmra.mxu3 %vm1192_vm8, %v3862_v34 }
 0x38a   : > { %v1205_v35 = vpop.f32.mrf.mxu2  ;;  %v1219_v36 = vpop.f32.mrf.mxu3 }
 0x38b   : > { %v1242_v62 = vadd.f32 %v1241_v37, %v1205_v35  ;;  %v1256_v0 = vadd.f32 %v1255_v38, %v1219_v36 }
 0x392   : > { %v1207_v39 = vpop.f32.mrf.mxu2  ;;  %v1221_v41 = vpop.f32.mrf.mxu3 }
 0x393   : > { %v1244_v11 = vadd.f32 %v1243_v42, %v1207_v39  ;;  %v1258_v12 = vadd.f32 %v1257_v43, %v1221_v41 }
 0x39a   : > { %v1310_v45 = vpop.f32.mrf.mxu2  ;;  %v1324_v59 = vpop.f32.mrf.mxu3 }
 0x39b   : > { %v1329_v1 = vadd.f32 %v1310_v45, %v1242_v62  ;;  %v1330_v2 = vadd.f32 %v1324_v59, %v1256_v0 }
 0x3a0   : > { %v1379_v55 = vpop.f32.mrf.mxu0  ;;  %v1393_v63 = vpop.f32.mrf.mxu1 }
 0x3a1   : > { %v1398_v3 = vadd.f32 %v1379_v55, %v1329_v1  ;;  %v1399_v4 = vadd.f32 %v1393_v63, %v1330_v2  ;;  %v1723_v63 = vpop.permute.xlu0 %1722 }
 0x3a2   : > { %v1312_v46 = vpop.f32.mrf.mxu2  ;;  %v1326_v47 = vpop.f32.mrf.mxu3 }
 0x3a3   : > { %v1331_v16 = vadd.f32 %v1312_v46, %v1244_v11  ;;  %v1332_v17 = vadd.f32 %v1326_v47, %v1258_v12 }
 0x3a8   : > { %v1381_v56 = vpop.f32.mrf.mxu0  ;;  %v1395_v48 = vpop.f32.mrf.mxu1 }
 0x3a9   : > { %v1400_v19 = vadd.f32 %v1381_v56, %v1331_v16  ;;  %v1401_v21 = vadd.f32 %v1395_v48, %v1332_v17  ;;  %v313_v16 = vld [vmem:[%s5515_s5 + $0x20] sm:$0xff]  ;;  %v315_v17 = vld [vmem:[%s5515_s5 + $0x30] sm:$0xff] }
 0x3aa   : > { %v1432_v13 = vpop.f32.mrf.mxu2  ;;  %v1446_v26 = vpop.f32.mrf.mxu3 }
 0x3ab   : > { %v1451_v6 = vadd.f32 %v1432_v13, %v1398_v3  ;;  %v1452_v7 = vadd.f32 %v1446_v26, %v1399_v4 }
 0x3b0   : > { %v1501_v20 = vpop.f32.mrf.mxu0  ;;  %v1515_v27 = vpop.f32.mrf.mxu1 }
 0x3b1   : > { %v1520_v14 = vadd.f32 %v1501_v20, %v1451_v6  ;;  %v1521_v15 = vadd.f32 %v1515_v27, %v1452_v7 }
 0x3b2   : > { %v1434_v50 = vpop.f32.mrf.mxu2  ;;  %v1448_v51 = vpop.f32.mrf.mxu3 }
 0x3b3   : > { %v1453_v25 = vadd.f32 %v1434_v50, %v1400_v19  ;;  %v1454_v28 = vadd.f32 %v1448_v51, %v1401_v21  ;;  %v3863_v19 = vld [vmem:[%s5513_s3] sm:$0xff]  ;;  %v3864_v21 = vld [vmem:[%s5513_s3 + $0x8] sm:$0xff] }
 0x3b8   : > { %v1503_v53 = vpop.f32.mrf.mxu0  ;;  %v1517_v54 = vpop.f32.mrf.mxu1 }
 0x3b9   : > { %v1522_v32 = vadd.f32 %v1503_v53, %v1453_v25  ;;  %v1523_v33 = vadd.f32 %v1517_v54, %v1454_v28 }
 0x3ba   : > { %v1570_v58 = vpop.f32.mrf.mxu2  ;;  %v1584_v61 = vpop.f32.mrf.mxu3 }
 0x3bb   : > { %v1589_v18 = vadd.f32 %v1570_v58, %v1520_v14  ;;  %v1590_v60 = vadd.f32 %v1584_v61, %v1521_v15 }
 0x3c0   : > { %v1623_v8 = vpop.f32.mrf.mxu0  ;;  %v1637_v9 = vpop.f32.mrf.mxu1 }
 0x3c1   : > { %v1642_v22 = vadd.f32 %v1623_v8, %v1589_v18  ;;  %v1643_v10 = vadd.f32 %v1637_v9, %v1590_v60  ;;  %v316_v18 = vld [vmem:[%s5515_s5 + $0x38] sm:$0xff]  ;;  %v314_v60 = vld [vmem:[%s5515_s5 + $0x28] sm:$0xff] }
 0x3c2   : > { %v1572_v57 = vpop.f32.mrf.mxu2  ;;  %v1586_v5 = vpop.f32.mrf.mxu3 }
 0x3c3   : > { %v1591_v38 = vadd.f32 %v1572_v57, %v1522_v32  ;;  %v1592_v39 = vadd.f32 %v1586_v5, %v1523_v33 }
 0x3c8   : > { %v1625_v36 = vpop.f32.mrf.mxu0  ;;  %v1639_v37 = vpop.f32.mrf.mxu1 }
 0x3c9   : > { %v1644_v43 = vadd.f32 %v1625_v36, %v1591_v38  ;;  %v1645_v45 = vadd.f32 %v1639_v37, %v1592_v39 }
 0x3ca   : > { %v1692_v23 = vpop.f32.mrf.mxu2  ;;  %v1706_v24 = vpop.f32.mrf.mxu3 }
 0x3cb   : > { %v1711_v29 = vadd.f32 %v1692_v23, %v1642_v22  ;;  %v1712_v30 = vadd.f32 %v1706_v24, %v1643_v10 }
 0x3cd   : > { %v1725_v34 = vadd.f32 %v1718_v31, %v1711_v29  ;;  %v1726_v35 = vadd.f32 %v1718_v31, %v1712_v30  ;;  %v3865_v29 = vld [vmem:[%s5513_s3 + $0x10] sm:$0xff] }
 0x3cf   : > { %v1729_v41 = vmul.f32 0.2, %v1725_v34  ;;  %v1730_v42 = vmul.f32 0.2, %v1726_v35 }
 0x3d1   : > { %v1733_v59 = vmax.f32 %v1725_v34, %v1729_v41  ;;  %v1734_v55 = vmax.f32 %v1726_v35, %v1730_v42 }
 0x3d2   : > { %v1694_v46 = vpop.f32.mrf.mxu2  ;;  %v1708_v47 = vpop.f32.mrf.mxu3 }
 0x3d3   : > { %v1713_v56 = vadd.f32 %v1694_v46, %v1644_v43  ;;  %v1714_v48 = vadd.f32 %v1708_v47, %v1645_v45  ;;  %v4170_v13 = vpack.i.bf16 %v1734_v55, %v1733_v59 }
 0x3d5   : > { %v1727_v26 = vadd.f32 %v1723_v63, %v1713_v56  ;;  %v1728_v20 = vadd.f32 %v1723_v63, %v1714_v48  ;;  %4171 = vrot.lane.b32.xlu1 %v4170_v13, %s4470_s10 }
 0x3d7   : > { %v1731_v27 = vmul.f32 0.2, %v1727_v26  ;;  %v1732_v50 = vmul.f32 0.2, %v1728_v20 }
 0x3d9   : > { %v1735_v51 = vmax.f32 %v1727_v26, %v1731_v27  ;;  %v1736_v53 = vmax.f32 %v1728_v20, %v1732_v50  ;;  %v3866_v27 = vld [vmem:[%s5513_s3 + $0x18] sm:$0xff] }
 0x3db   : > { %v4175_v54 = vpack.i.bf16 %v1736_v53, %v1735_v51 }
 0x3dd   : > { %4176 = vrot.lane.b32.xlu2 %v4175_v54, %s4470_s10 }
 0x437   : > { %v4177_v58 = vpop.permute.xlu2 %4176 }
 0x438   : > { %v4179_v61 = vunpack.i.h.bf16 %v4177_v58  ;;  %v4178_v62 = vunpack.i.l.bf16 %v4177_v58 }
 0x43a   : > { %v1760_v3 = vsel %vm342_vm0, %v4179_v61, 0.0  ;;  %v1750_v4 = vsel %vm342_vm0, %v4178_v62, %v4179_v61  ;;  %v1758_v57 = vsel %vm342_vm0, 0.0, %v4178_v62  ;;  %v3869_v62 = vld [vmem:[%s5513_s3 + $0x30] sm:$0xff] }
 0x43b   : > { %v4190_v12 = vpack.i.bf16 %v1760_v3, %v1750_v4 }
 0x447   : > { %v4172_v0 = vpop.permute.xlu1 %4171 }
 0x448   : > { %v4174_v1 = vunpack.i.h.bf16 %v4172_v0  ;;  %v4173_v2 = vunpack.i.l.bf16 %v4172_v0 }
 0x44a   : > { %v1759_v5 = vsel %vm342_vm0, %v4174_v1, 0.0  ;;  %v1749_v6 = vsel %vm342_vm0, %v4173_v2, %v4174_v1  ;;  %v1757_v7 = vsel %vm342_vm0, 0.0, %v4173_v2 }
 0x44b   : > { %v1778_v8 = vpack.c.bf16 %v1760_v3, %v1759_v5  ;;  %v1776_v9 = vpack.c.bf16 %v1758_v57, %v1757_v7  ;;  %v1777_v11 = vpack.c.bf16 %v1750_v4, %v1749_v6  ;;  %v4180_v14 = vpack.i.bf16 %v1749_v6, %v1757_v7 }
 0x44c   : > { %v4185_v15 = vpack.i.bf16 %v1758_v57, %v1759_v5 }
 0x44d   : > { %1796 = vrot.lane.b32.xlu0 %v1778_v8, %s4474_s14  ;;  %1792 = vrot.lane.b32.xlu1 %v1776_v9, %s4474_s14 }
 0x44e   : > { %3593 = vmatpush.bf16.msk.msrb.mxu2 %vm4563_vm3, %v1776_v9  ;;  %1794 = vrot.lane.b32.xlu2 %v1777_v11, %s4474_s14 }
 0x44f   : > { %3598 = vmatpush.bf16.msk.msrb.mxu3 %vm4571_vm4, %v1777_v11 }
 0x451   : > { %3594 = vmatmul.msk.bf16.vlgmr.msrb.gmra.mxu2 %vm1192_vm8, %v3863_v19 }
 0x452   : > { %3599 = vmatmul.msk.bf16.vlgmr.msrb.gmra.mxu3 %vm1192_vm8, %v3863_v19 }
 0x455   : > { %4191 = vrot.lane.b32.xlu0 %v4190_v12, %s4471_s11  ;;  %4181 = vrot.lane.b32.xlu1 %v4180_v14, %s4471_s11 }
 0x456   : > { %4186 = vrot.lane.b32.xlu2 %v4185_v15, %s4471_s11 }
 0x45d   : > { %4206 = vrot.lane.b32.xlu0 %v4190_v12, %s4472_s12  ;;  %4196 = vrot.lane.b32.xlu1 %v4180_v14, %s4472_s12 }
 0x45e   : > { %4201 = vrot.lane.b32.xlu2 %v4185_v15, %s4472_s12 }
 0x461   : > { %3595 = vmatmul.msk.bf16.gmra.mxu2 %vm1192_vm8, %v3864_v21 }
 0x462   : > { %3600 = vmatmul.msk.bf16.gmra.mxu3 %vm1192_vm8, %v3864_v21 }
 0x465   : > { %2109 = vrot.lane.b32.xlu0 %v1778_v8, %s4476_s16  ;;  %2105 = vrot.lane.b32.xlu1 %v1776_v9, %s4476_s16 }
 0x466   : > { %2107 = vrot.lane.b32.xlu2 %v1777_v11, %s4476_s16 }
 0x46d   : > { %4221 = vrot.lane.b32.xlu0 %v4190_v12, %s4473_s13  ;;  %4211 = vrot.lane.b32.xlu1 %v4180_v14, %s4473_s13 }
 0x46e   : > { %4216 = vrot.lane.b32.xlu2 %v4185_v15, %s4473_s13 }
 0x475   : > { %4236 = vrot.lane.b32.xlu0 %v4190_v12, %s4475_s15  ;;  %4226 = vrot.lane.b32.xlu1 %v4180_v14, %s4475_s15 }
 0x476   : > { %4231 = vrot.lane.b32.xlu2 %v4185_v15, %s4475_s15 }
 0x47d   : > { %2372 = vrot.lane.b32.xlu0 %v1778_v8, %s4478_s18  ;;  %2368 = vrot.lane.b32.xlu1 %v1776_v9, %s4478_s18 }
 0x47e   : > { %2370 = vrot.lane.b32.xlu2 %v1777_v11, %s4478_s18 }
 0x485   : > { %4251 = vrot.lane.b32.xlu0 %v4190_v12, %s4477_s17  ;;  %4241 = vrot.lane.b32.xlu1 %v4180_v14, %s4477_s17  ;;  %v3867_v14 = vld [vmem:[%s5513_s3 + $0x20] sm:$0xff] }
 0x486   : > { %4246 = vrot.lane.b32.xlu2 %v4185_v15, %s4477_s17 }
 0x48d   : > { %2525 = vperm.xlu0 %4169, %v313_v16   ;;  %2535 = vperm.xlu1 %4082, %v315_v17  }
 0x48e   : > { %2540 = vperm.xlu2 %4083, %v316_v18  }
 0x495   : > { %2530 = vperm.xlu1 %4082, %v314_v60  }
 0x4a8   : > { %v1795_v22 = vpop.permute.xlu2 %1794 }
 0x4b0   : > { %v4187_v10 = vpop.permute.xlu2 %4186 }
 0x4b1   : > { %v4189_v31 = vunpack.i.h.bf16 %v4187_v10  ;;  %v4188_v32 = vunpack.i.l.bf16 %v4187_v10 }
 0x4b8   : > { %v4202_v30 = vpop.permute.xlu2 %4201 }
 0x4b9   : > { %v4204_v55 = vunpack.i.h.bf16 %v4202_v30  ;;  %v4203_v63 = vunpack.i.l.bf16 %v4202_v30 }
 0x4bf   : > { %v1797_v23 = vpop.permute.xlu0 %1796  ;;  %v1793_v24 = vpop.permute.xlu1 %1792 }
 0x4c0   : > { %v1799_v25 = vsel %vm417_vm7, %v1795_v22, %v1797_v23  ;;  %v1798_v28 = vsel %vm417_vm7, %v1793_v24, %v1795_v22  ;;  %v2108_v56 = vpop.permute.xlu2 %2107  ;;  %v3870_v22 = vld [vmem:[%s5513_s3 + $0x38] sm:$0xff] }
 0x4c1   : > { %1815 = vmatpush.bf16.msrb.mxu0 %v1798_v28  ;;  %1834 = vmatpush.bf16.msrb.mxu1 %v1799_v25 }
 0x4c4   : > { %3579 = vmatmul.msk.bf16.vlgmr.msrb.gmra.mxu0 %vm1192_vm8, %v3865_v29  ;;  %3581 = vmatmul.msk.bf16.vlgmr.msrb.gmra.mxu1 %vm1192_vm8, %v3865_v29 }
 0x4c7   : > { %v4192_v33 = vpop.permute.xlu0 %4191  ;;  %v4182_v34 = vpop.permute.xlu1 %4181 }
 0x4c8   : > { %v4194_v35 = vunpack.i.h.bf16 %v4192_v33  ;;  %v4193_v36 = vunpack.i.l.bf16 %v4192_v33  ;;  %v4184_v37 = vunpack.i.h.bf16 %v4182_v34  ;;  %v4183_v38 = vunpack.i.l.bf16 %v4182_v34  ;;  %v4217_v4 = vpop.permute.xlu2 %4216 }
 0x4c9   : > { %v4219_v57 = vunpack.i.h.bf16 %v4217_v4  ;;  %v4218_v5 = vunpack.i.l.bf16 %v4217_v4  ;;  %v3876_v4 = vld [vmem:[%s5513_s3 + $0x68] sm:$0xff] }
 0x4ca   : > { %v1918_v39 = vsel %vm530_vm13, %v4189_v31, %v4193_v36  ;;  %v1919_v41 = vsel %vm530_vm13, %v4193_v36, %v4194_v35  ;;  %v1916_v42 = vsel %vm530_vm13, %v4183_v38, %v4184_v37  ;;  %v1917_v43 = vsel %vm530_vm13, %v4184_v37, %v4188_v32 }
 0x4cb   : > { %v3614_v45 = vpack.c.bf16 %v1918_v39, %v1916_v42  ;;  %v3619_v59 = vpack.c.bf16 %v1919_v41, %v1917_v43 }
 0x4cd   : > { %3615 = vmatpush.bf16.msk.msra.mxu0 %vm4720_vm11, %v3614_v45  ;;  %3620 = vmatpush.bf16.msk.msra.mxu1 %vm4731_vm12, %v3619_v59  ;;  %v3868_v45 = vld [vmem:[%s5513_s3 + $0x28] sm:$0xff]  ;;  %v3873_v59 = vld [vmem:[%s5513_s3 + $0x50] sm:$0xff] }
 0x4cf   : > { %v4207_v46 = vpop.permute.xlu0 %4206  ;;  %v4197_v47 = vpop.permute.xlu1 %4196 }
 0x4d0   : > { %v4209_v48 = vunpack.i.h.bf16 %v4207_v46  ;;  %v4208_v13 = vunpack.i.l.bf16 %v4207_v46  ;;  %v4199_v26 = vunpack.i.h.bf16 %v4197_v47  ;;  %v4198_v20 = vunpack.i.l.bf16 %v4197_v47  ;;  %v4232_v21 = vpop.permute.xlu2 %4231 }
 0x4d1   : > { %v4234_v10 = vunpack.i.h.bf16 %v4232_v21  ;;  %v4233_v23 = vunpack.i.l.bf16 %v4232_v21 }
 0x4d2   : > { %v2011_v50 = vsel %vm626_vm6, %v4204_v55, %v4208_v13  ;;  %v2012_v51 = vsel %vm626_vm6, %v4208_v13, %v4209_v48  ;;  %v2009_v53 = vsel %vm626_vm6, %v4198_v20, %v4199_v26  ;;  %v2010_v54 = vsel %vm626_vm6, %v4199_v26, %v4203_v63 }
 0x4d3   : > { %v3636_v58 = vpack.c.bf16 %v2011_v50, %v2009_v53  ;;  %v3641_v61 = vpack.c.bf16 %v2012_v51, %v2010_v54  ;;  %v3871_v54 = vld [vmem:[%s5513_s3 + $0x40] sm:$0xff] }
 0x4d4   : > { %3580 = vmatmul.msk.bf16.gmra.mxu0 %vm1192_vm8, %v3866_v27  ;;  %3582 = vmatmul.msk.bf16.gmra.mxu1 %vm1192_vm8, %v3866_v27 }
 0x4d5   : > { %3637 = vmatpush.bf16.msk.msra.mxu2 %vm4563_vm3, %v3636_v58  ;;  %3642 = vmatpush.bf16.msk.msra.mxu3 %vm4571_vm4, %v3641_v61 }
 0x4d7   : > { %v2110_v0 = vpop.permute.xlu0 %2109  ;;  %v2106_v1 = vpop.permute.xlu1 %2105 }
 0x4d8   : > { %v2112_v2 = vsel %vm718_vm14, %v2108_v56, %v2110_v0  ;;  %v2111_v3 = vsel %vm718_vm14, %v2106_v1, %v2108_v56  ;;  %3638 = vmatmul.msk.bf16.vlgmr.msra.gmra.mxu2 %vm1192_vm8, %v3869_v62  ;;  %3643 = vmatmul.msk.bf16.vlgmr.msra.gmra.mxu3 %vm1192_vm8, %v3869_v62  ;;  %v2371_v38 = vpop.permute.xlu2 %2370  ;;  %v3874_v62 = vld [vmem:[%s5513_s3 + $0x58] sm:$0xff]  ;;  %v3872_v0 = vld [vmem:[%s5513_s3 + $0x48] sm:$0xff]  ;;  %v3877_v1 = vld [vmem:[%s5513_s3 + $0x70] sm:$0xff] }
 0x4d9   : > { %2128 = vmatpush.bf16.msrb.mxu0 %v2111_v3  ;;  %2147 = vmatpush.bf16.msrb.mxu1 %v2112_v2  ;;  %v3875_v2 = vld [vmem:[%s5513_s3 + $0x60] sm:$0xff]  ;;  %v3878_v3 = vld [vmem:[%s5513_s3 + $0x78] sm:$0xff] }
 0x4df   : > { %v4222_v6 = vpop.permute.xlu0 %4221  ;;  %v4212_v7 = vpop.permute.xlu1 %4211 }
 0x4e0   : > { %v4224_v8 = vunpack.i.h.bf16 %v4222_v6  ;;  %v4223_v9 = vunpack.i.l.bf16 %v4222_v6  ;;  %v4214_v11 = vunpack.i.h.bf16 %v4212_v7  ;;  %v4213_v12 = vunpack.i.l.bf16 %v4212_v7  ;;  %v4247_v46 = vpop.permute.xlu2 %4246  ;;  %v3879_v6 = vld [vmem:[%s5513_s3 + $0x80] sm:$0xff] }
 0x4e1   : > { %v4249_v26 = vunpack.i.h.bf16 %v4247_v46  ;;  %v4248_v20 = vunpack.i.l.bf16 %v4247_v46 }
 0x4e2   : > { %v2181_v15 = vsel %vm786_vm9, %v4219_v57, %v4223_v9  ;;  %v2182_v16 = vsel %vm786_vm9, %v4223_v9, %v4224_v8  ;;  %v2179_v17 = vsel %vm786_vm9, %v4213_v12, %v4214_v11  ;;  %v2180_v18 = vsel %vm786_vm9, %v4214_v11, %v4218_v5  ;;  %v1871_v57 = vpop.f32.mrf.mxu2  ;;  %v1890_v5 = vpop.f32.mrf.mxu3 }
 0x4e3   : > { %v3674_v60 = vpack.c.bf16 %v2181_v15, %v2179_v17  ;;  %v3679_v19 = vpack.c.bf16 %v2182_v16, %v2180_v18 }
 0x4e4   : > { %3616 = vmatmul.msk.bf16.vlgmr.msra.gmra.mxu0 %vm1192_vm8, %v3867_v14  ;;  %3621 = vmatmul.msk.bf16.vlgmr.msra.gmra.mxu1 %vm1192_vm8, %v3867_v14 }
 0x4e5   : > { %3675 = vmatpush.bf16.msk.msrb.mxu2 %vm4720_vm11, %v3674_v60  ;;  %3680 = vmatpush.bf16.msk.msrb.mxu3 %vm4731_vm12, %v3679_v19  ;;  %v3880_v60 = vld [vmem:[%s5513_s3 + $0x88] sm:$0xff] }
 0x4e7   : > { %v4237_v24 = vpop.permute.xlu0 %4236  ;;  %v4227_v25 = vpop.permute.xlu1 %4226 }
 0x4e8   : > { %v4239_v28 = vunpack.i.h.bf16 %v4237_v24  ;;  %v4238_v29 = vunpack.i.l.bf16 %v4237_v24  ;;  %v4229_v30 = vunpack.i.h.bf16 %v4227_v25  ;;  %v4228_v31 = vunpack.i.l.bf16 %v4227_v25  ;;  %3639 = vmatmul.msk.bf16.gmra.mxu2 %vm1192_vm8, %v3870_v22  ;;  %3644 = vmatmul.msk.bf16.gmra.mxu3 %vm1192_vm8, %v3870_v22 }
 0x4ea   : > { %v2274_v32 = vsel %vm882_vm15, %v4234_v10, %v4238_v29  ;;  %v2275_v33 = vsel %vm882_vm15, %v4238_v29, %v4239_v28  ;;  %v2272_v34 = vsel %vm882_vm15, %v4228_v31, %v4229_v30  ;;  %v2273_v35 = vsel %vm882_vm15, %v4229_v30, %v4233_v23  ;;  %v5161_v12 = vpop.f32.mrf.mxu2  ;;  %v5163_v14 = vpop.f32.mrf.mxu3 }
 0x4eb   : > { %v3696_v36 = vpack.c.bf16 %v2274_v32, %v2272_v34  ;;  %v3701_v37 = vpack.c.bf16 %v2275_v33, %v2273_v35 }
 0x4ed   : > { %3697 = vmatpush.bf16.msk.msra.mxu0 %vm4563_vm3, %v3696_v36  ;;  %3702 = vmatpush.bf16.msk.msra.mxu1 %vm4571_vm4, %v3701_v37 }
 0x4ef   : > { %v2373_v39 = vpop.permute.xlu0 %2372  ;;  %v2369_v41 = vpop.permute.xlu1 %2368 }
 0x4f0   : > { %v2375_v42 = vsel %vm974_vm1, %v2371_v38, %v2373_v39  ;;  %v2374_v43 = vsel %vm974_vm1, %v2369_v41, %v2371_v38 }
 0x4f1   : > { %2391 = vmatpush.bf16.msra.mxu2 %v2374_v43  ;;  %2410 = vmatpush.bf16.msra.mxu3 %v2375_v42 }
 0x4f2   : > { %v1876_v17 = vpop.f32.mrf.mxu2  ;;  %v1895_v18 = vpop.f32.mrf.mxu3 }
 0x4f4   : > { %3617 = vmatmul.msk.bf16.gmra.mxu0 %vm1192_vm8, %v3868_v45  ;;  %3622 = vmatmul.msk.bf16.gmra.mxu1 %vm1192_vm8, %v3868_v45 }
 0x4f7   : > { %v4252_v55 = vpop.permute.xlu0 %4251  ;;  %v4242_v63 = vpop.permute.xlu1 %4241 }
 0x4f8   : > { %3676 = vmatmul.msk.bf16.vlgmr.msrb.gmra.mxu2 %vm1192_vm8, %v3873_v59  ;;  %3681 = vmatmul.msk.bf16.vlgmr.msrb.gmra.mxu3 %vm1192_vm8, %v3873_v59  ;;  %v4254_v47 = vunpack.i.h.bf16 %v4252_v55  ;;  %v4253_v56 = vunpack.i.l.bf16 %v4252_v55  ;;  %v4244_v48 = vunpack.i.h.bf16 %v4242_v63  ;;  %v4243_v13 = vunpack.i.l.bf16 %v4242_v63 }
 0x4fa   : > { %v2444_v27 = vsel %vm1042_vm2, %v4249_v26, %v4253_v56  ;;  %v2445_v50 = vsel %vm1042_vm2, %v4253_v56, %v4254_v47  ;;  %v2442_v51 = vsel %vm1042_vm2, %v4243_v13, %v4244_v48  ;;  %v2443_v53 = vsel %vm1042_vm2, %v4244_v48, %v4248_v20  ;;  %v1878_v25 = vpop.f32.mrf.mxu2  ;;  %v1897_v28 = vpop.f32.mrf.mxu3 }
 0x4fb   : > { %v3734_v58 = vpack.c.bf16 %v2444_v27, %v2442_v51  ;;  %v3739_v61 = vpack.c.bf16 %v2445_v50, %v2443_v53 }
 0x504   : > { %3657 = vmatmul.msk.bf16.vlgmr.msrb.gmra.mxu0 %vm1192_vm8, %v3871_v54  ;;  %3659 = vmatmul.msk.bf16.vlgmr.msrb.gmra.mxu1 %vm1192_vm8, %v3871_v54 }
 0x505   : > { %3735 = vmatpush.bf16.msk.msrb.mxu0 %vm4720_vm11, %v3734_v58  ;;  %3740 = vmatpush.bf16.msk.msrb.mxu1 %vm4731_vm12, %v3739_v61 }
 0x508   : > { %3677 = vmatmul.msk.bf16.gmra.mxu2 %vm1192_vm8, %v3874_v62  ;;  %3682 = vmatmul.msk.bf16.gmra.mxu3 %vm1192_vm8, %v3874_v62 }
 0x514   : > { %3658 = vmatmul.msk.bf16.gmra.mxu0 %vm1192_vm8, %v3872_v0  ;;  %3660 = vmatmul.msk.bf16.gmra.mxu1 %vm1192_vm8, %v3872_v0 }
 0x518   : > { %3717 = vmatmul.msk.bf16.vlgmr.msra.gmra.mxu2 %vm1192_vm8, %v3877_v1  ;;  %3719 = vmatmul.msk.bf16.vlgmr.msra.gmra.mxu3 %vm1192_vm8, %v3877_v1 }
 0x524   : > { %3698 = vmatmul.msk.bf16.vlgmr.msra.gmra.mxu0 %vm1192_vm8, %v3875_v2  ;;  %3703 = vmatmul.msk.bf16.vlgmr.msra.gmra.mxu1 %vm1192_vm8, %v3875_v2 }
 0x528   : > { %3718 = vmatmul.msk.bf16.gmra.mxu2 %vm1192_vm8, %v3878_v3  ;;  %3720 = vmatmul.msk.bf16.gmra.mxu3 %vm1192_vm8, %v3878_v3 }
 0x534   : > { %3699 = vmatmul.msk.bf16.gmra.mxu0 %vm1192_vm8, %v3876_v4  ;;  %3704 = vmatmul.msk.bf16.gmra.mxu1 %vm1192_vm8, %v3876_v4 }
 0x541   : > { %v1817_v7 = vpop.f32.mrf.mxu0  ;;  %v1836_v8 = vpop.f32.mrf.mxu1 }
 0x542   : > { %v1872_v9 = vadd.f32 %v1871_v57, %v1817_v7  ;;  %v1891_v11 = vadd.f32 %v1890_v5, %v1836_v8 }
 0x544   : > { %3736 = vmatmul.msk.bf16.vlgmr.msrb.gmra.mxu0 %vm1192_vm8, %v3879_v6  ;;  %3741 = vmatmul.msk.bf16.vlgmr.msrb.gmra.mxu1 %vm1192_vm8, %v3879_v6 }
 0x549   : > { %v5165_v15 = vpop.f32.mrf.mxu0  ;;  %v5167_v16 = vpop.f32.mrf.mxu1 }
 0x551   : > { %v1822_v19 = vpop.f32.mrf.mxu0  ;;  %v1841_v21 = vpop.f32.mrf.mxu1 }
 0x552   : > { %v1877_v22 = vadd.f32 %v1876_v17, %v1822_v19  ;;  %v1896_v10 = vadd.f32 %v1895_v18, %v1841_v21  ;;  %v1874_v19 = vadd.f32 %v5161_v12, %v5165_v15  ;;  %v1893_v21 = vadd.f32 %v5163_v14, %v5167_v16  ;;  %v2536_v12 = vpop.permute.xlu1 %2535 }
 0x554   : > { %3737 = vmatmul.msk.bf16.gmra.mxu0 %vm1192_vm8, %v3880_v60  ;;  %3742 = vmatmul.msk.bf16.gmra.mxu1 %vm1192_vm8, %v3880_v60 }
 0x559   : > { %v1824_v23 = vpop.f32.mrf.mxu0  ;;  %v1843_v24 = vpop.f32.mrf.mxu1 }
 0x55a   : > { %v1879_v45 = vadd.f32 %v1878_v25, %v1824_v23  ;;  %v1898_v59 = vadd.f32 %v1897_v28, %v1843_v24 }
 0x55b   : > { %v2053_v33 = vpop.f32.mrf.mxu2  ;;  %v2072_v34 = vpop.f32.mrf.mxu3 }
 0x561   : > { %v1960_v29 = vpop.f32.mrf.mxu0  ;;  %v1979_v30 = vpop.f32.mrf.mxu1 }
 0x562   : > { %v1989_v31 = vadd.f32 %v1960_v29, %v1872_v9  ;;  %v1990_v32 = vadd.f32 %v1979_v30, %v1891_v11 }
 0x563   : > { %v2055_v37 = vpop.f32.mrf.mxu2  ;;  %v2074_v38 = vpop.f32.mrf.mxu3 }
 0x564   : > { %v2082_v18 = vadd.f32 %v2053_v33, %v1989_v31  ;;  %v2083_v60 = vadd.f32 %v2072_v34, %v1990_v32 }
 0x569   : > { %v1962_v35 = vpop.f32.mrf.mxu0  ;;  %v1981_v36 = vpop.f32.mrf.mxu1 }
 0x56a   : > { %v1991_v25 = vadd.f32 %v1962_v35, %v1874_v19  ;;  %v1992_v28 = vadd.f32 %v1981_v36, %v1893_v21 }
 0x56b   : > { %v2058_v46 = vpop.f32.mrf.mxu2  ;;  %v2077_v47 = vpop.f32.mrf.mxu3 }
 0x571   : > { %v1965_v39 = vpop.f32.mrf.mxu0  ;;  %v1984_v41 = vpop.f32.mrf.mxu1 }
 0x572   : > { %v5174_v42 = vadd.f32 %v1965_v39, %v1877_v22  ;;  %v5176_v43 = vadd.f32 %v1984_v41, %v1896_v10 }
 0x573   : > { %v5182_v20 = vpop.f32.mrf.mxu2  ;;  %v5184_v27 = vpop.f32.mrf.mxu3 }
 0x579   : > { %v1967_v55 = vpop.f32.mrf.mxu0  ;;  %v1986_v63 = vpop.f32.mrf.mxu1 }
 0x57a   : > { %v5178_v56 = vadd.f32 %v1967_v55, %v1879_v45  ;;  %v5180_v48 = vadd.f32 %v1986_v63, %v1898_v59  ;;  %v2084_v45 = vadd.f32 %v2055_v37, %v1991_v25  ;;  %v2085_v59 = vadd.f32 %v2074_v38, %v1992_v28 }
 0x57b   : > { %v2223_v53 = vpop.f32.mrf.mxu2  ;;  %v2242_v54 = vpop.f32.mrf.mxu3  ;;  %v2087_v37 = vadd.f32 %v2077_v47, %v5176_v43 }
 0x57c   : > { %v2088_v43 = vadd.f32 %v5182_v20, %v5178_v56 }
 0x581   : > { %v2130_v13 = vpop.f32.mrf.mxu0  ;;  %v2149_v26 = vpop.f32.mrf.mxu1 }
 0x582   : > { %v2159_v22 = vadd.f32 %v2130_v13, %v2082_v18  ;;  %v2160_v10 = vadd.f32 %v2149_v26, %v2083_v60  ;;  %v2526_v60 = vpop.permute.xlu0 %2525 }
 0x583   : > { %v2225_v62 = vpop.f32.mrf.mxu2  ;;  %v2244_v0 = vpop.f32.mrf.mxu3 }
 0x584   : > { %v2252_v39 = vadd.f32 %v2223_v53, %v2159_v22  ;;  %v2253_v41 = vadd.f32 %v2242_v54, %v2160_v10  ;;  %v2086_v53 = vadd.f32 %v2058_v46, %v5174_v42  ;;  %v2531_v10 = vpop.permute.xlu1 %2530  ;;  %v2089_v46 = vadd.f32 %v5184_v27, %v5180_v48 }
 0x589   : > { %v2132_v50 = vpop.f32.mrf.mxu0  ;;  %v2151_v51 = vpop.f32.mrf.mxu1 }
 0x58a   : > { %v2161_v33 = vadd.f32 %v2132_v50, %v2084_v45  ;;  %v2162_v34 = vadd.f32 %v2151_v51, %v2085_v59 }
 0x58b   : > { %v2228_v57 = vpop.f32.mrf.mxu2  ;;  %v2247_v5 = vpop.f32.mrf.mxu3 }
 0x58c   : > { %v2254_v26 = vadd.f32 %v2225_v62, %v2161_v33  ;;  %v2255_v35 = vadd.f32 %v2244_v0, %v2162_v34 }
 0x591   : > { %v2135_v58 = vpop.f32.mrf.mxu0  ;;  %v2154_v61 = vpop.f32.mrf.mxu1 }
 0x593   : > { %v5190_v8 = vpop.f32.mrf.mxu2  ;;  %v5192_v9 = vpop.f32.mrf.mxu3 }
 0x599   : > { %v5186_v1 = vpop.f32.mrf.mxu0  ;;  %v5188_v2 = vpop.f32.mrf.mxu1 }
 0x59b   : > { %v2393_v23 = vpop.f32.mrf.mxu2  ;;  %v2412_v24 = vpop.f32.mrf.mxu3 }
 0x5a1   : > { %v2316_v3 = vpop.f32.mrf.mxu0  ;;  %v2335_v4 = vpop.f32.mrf.mxu1 }
 0x5a2   : > { %v2345_v31 = vadd.f32 %v2316_v3, %v2252_v39  ;;  %v2346_v32 = vadd.f32 %v2335_v4, %v2253_v41  ;;  %v2163_v3 = vadd.f32 %v2135_v58, %v2086_v53  ;;  %v2164_v4 = vadd.f32 %v2154_v61, %v2087_v37 }
 0x5a3   : > { %v2395_v14 = vpop.f32.mrf.mxu2  ;;  %v2414_v16 = vpop.f32.mrf.mxu3  ;;  %v2165_v39 = vadd.f32 %v5186_v1, %v2088_v43  ;;  %v2166_v41 = vadd.f32 %v5188_v2, %v2089_v46 }
 0x5a4   : > { %v2422_v15 = vadd.f32 %v2393_v23, %v2345_v31  ;;  %v2423_v55 = vadd.f32 %v2412_v24, %v2346_v32  ;;  %v2256_v23 = vadd.f32 %v2228_v57, %v2163_v3  ;;  %v2257_v24 = vadd.f32 %v2247_v5, %v2164_v4 }
 0x5a5   : > { %v2258_v20 = vadd.f32 %v5190_v8, %v2165_v39  ;;  %v2259_v48 = vadd.f32 %v5192_v9, %v2166_v41  ;;  %v2541_v8 = vpop.permute.xlu2 %2540 }
 0x5a9   : > { %v2318_v6 = vpop.f32.mrf.mxu0  ;;  %v2337_v7 = vpop.f32.mrf.mxu1 }
 0x5aa   : > { %v2347_v38 = vadd.f32 %v2318_v6, %v2254_v26  ;;  %v2348_v54 = vadd.f32 %v2337_v7, %v2255_v35 }
 0x5ab   : > { %v2398_v47 = vpop.f32.mrf.mxu2  ;;  %v2417_v58 = vpop.f32.mrf.mxu3 }
 0x5ac   : > { %v2424_v21 = vadd.f32 %v2395_v14, %v2347_v38  ;;  %v2425_v22 = vadd.f32 %v2414_v16, %v2348_v54 }
 0x5b1   : > { %v2321_v11 = vpop.f32.mrf.mxu0  ;;  %v2340_v17 = vpop.f32.mrf.mxu1 }
 0x5b2   : > { %v2349_v61 = vadd.f32 %v2321_v11, %v2256_v23  ;;  %v2350_v6 = vadd.f32 %v2340_v17, %v2257_v24 }
 0x5b3   : > { %v2400_v1 = vpop.f32.mrf.mxu2  ;;  %v2419_v34 = vpop.f32.mrf.mxu3 }
 0x5b4   : > { %v2426_v5 = vadd.f32 %v2398_v47, %v2349_v61  ;;  %v2427_v45 = vadd.f32 %v2417_v58, %v2350_v6 }
 0x5b9   : > { %v2323_v29 = vpop.f32.mrf.mxu0  ;;  %v2342_v30 = vpop.f32.mrf.mxu1 }
 0x5ba   : > { %v2351_v17 = vadd.f32 %v2323_v29, %v2258_v20  ;;  %v2352_v31 = vadd.f32 %v2342_v30, %v2259_v48 }
 0x5c1   : > { %v2486_v63 = vpop.f32.mrf.mxu0  ;;  %v2505_v13 = vpop.f32.mrf.mxu1 }
 0x5c2   : > { %v2515_v36 = vadd.f32 %v2486_v63, %v2422_v15  ;;  %v2516_v18 = vadd.f32 %v2505_v13, %v2423_v55  ;;  %v2428_v15 = vadd.f32 %v2400_v1, %v2351_v17  ;;  %v2429_v55 = vadd.f32 %v2419_v34, %v2352_v31 }
 0x5c4   : > { %v2543_v50 = vadd.f32 %v2526_v60, %v2515_v36  ;;  %v2544_v51 = vadd.f32 %v2526_v60, %v2516_v18 }
 0x5c6   : > { %v4255_v19 = vpack.i.bf16 %v2544_v51, %v2543_v50 }
 0x5c8   : > { %4256 = vrot.lane.b32.xlu1 %v4255_v19, %s4470_s10 }
 0x5c9   : > { %v2488_v62 = vpop.f32.mrf.mxu0  ;;  %v2507_v0 = vpop.f32.mrf.mxu1 }
 0x5ca   : > { %v2517_v25 = vadd.f32 %v2488_v62, %v2424_v21  ;;  %v2518_v42 = vadd.f32 %v2507_v0, %v2425_v22 }
 0x5cc   : > { %v2545_v7 = vadd.f32 %v2531_v10, %v2517_v25  ;;  %v2546_v28 = vadd.f32 %v2531_v10, %v2518_v42 }
 0x5ce   : > { %v4260_v57 = vpack.i.bf16 %v2546_v28, %v2545_v7 }
 0x5d0   : > { %4261 = vrot.lane.b32.xlu2 %v4260_v57, %s4470_s10 }
 0x5d1   : > { %v2491_v59 = vpop.f32.mrf.mxu0  ;;  %v2510_v56 = vpop.f32.mrf.mxu1 }
 0x5d2   : > { %v2519_v27 = vadd.f32 %v2491_v59, %v2426_v5  ;;  %v2520_v11 = vadd.f32 %v2510_v56, %v2427_v45 }
 0x5d4   : > { %v2547_v32 = vadd.f32 %v2536_v12, %v2519_v27  ;;  %v2548_v33 = vadd.f32 %v2536_v12, %v2520_v11 }
 0x5d6   : > { %v4265_v2 = vpack.i.bf16 %v2548_v33, %v2547_v32 }
 0x5d8   : > { %4266 = vrot.lane.b32.xlu2 %v4265_v2, %s4470_s10  ;;  %v317_v2 = vld [vmem:[%s5515_s5 + $0x40] sm:$0x7] }
 0x5d9   : > { %v2493_v14 = vpop.f32.mrf.mxu0  ;;  %v2512_v16 = vpop.f32.mrf.mxu1 }
 0x5da   : > { %v2521_v63 = vadd.f32 %v2493_v14, %v2428_v15  ;;  %v2522_v13 = vadd.f32 %v2512_v16, %v2429_v55 }
 0x5dc   : > { %v2549_v26 = vadd.f32 %v2541_v8, %v2521_v63  ;;  %v2550_v9 = vadd.f32 %v2541_v8, %v2522_v13 }
 0x5de   : > { %v4270_v35 = vpack.i.bf16 %v2550_v9, %v2549_v26 }
 0x5e0   : > { %4271 = vrot.lane.b32.xlu0 %v4270_v35, %s4470_s10 }
 0x62a   : > { %v4262_v29 = vpop.permute.xlu2 %4261 }
 0x62b   : > { %v4264_v30 = vunpack.i.h.bf16 %v4262_v29  ;;  %v4263_v12 = vunpack.i.l.bf16 %v4262_v29 }
 0x62d   : > { %v2596_v36 = vsel %vm342_vm0, %v4264_v30, 0.0  ;;  %v2576_v18 = vsel %vm342_vm0, %v4263_v12, %v4264_v30  ;;  %v2592_v21 = vsel %vm342_vm0, 0.0, %v4263_v12 }
 0x62e   : > { %v5214_v60 = vpack.i.bf16 %v2596_v36, %v2576_v18 }
 0x630   : > { %4291 = vrot.lane.b32.xlu2 %v5214_v60, %s4471_s11 }
 0x632   : > { %v4267_v53 = vpop.permute.xlu2 %4266 }
 0x633   : > { %v4269_v37 = vunpack.i.h.bf16 %v4267_v53  ;;  %v4268_v38 = vunpack.i.l.bf16 %v4267_v53 }
 0x635   : > { %v2577_v54 = vsel %vm342_vm0, %v4268_v38, %v4269_v37  ;;  %v2593_v50 = vsel %vm342_vm0, 0.0, %v4268_v38  ;;  %v2597_v6 = vsel %vm342_vm0, %v4269_v37, 0.0 }
 0x636   : > { %v5220_v51 = vpack.i.bf16 %v2577_v54, %v2593_v50  ;;  %v4310_v45 = vpack.i.bf16 %v2597_v6, %v2577_v54 }
 0x63a   : > { %v4257_v3 = vpop.permute.xlu1 %4256 }
 0x63b   : > { %v4259_v4 = vunpack.i.h.bf16 %v4257_v3  ;;  %v4258_v19 = vunpack.i.l.bf16 %v4257_v3 }
 0x63d   : > { %v2595_v22 = vsel %vm342_vm0, %v4259_v4, 0.0  ;;  %v2575_v62 = vsel %vm342_vm0, %v4258_v19, %v4259_v4  ;;  %v2591_v0 = vsel %vm342_vm0, 0.0, %v4258_v19 }
 0x63e   : > { %v5226_v10 = vpack.i.bf16 %v2592_v21, %v2595_v22  ;;  %v4300_v23 = vpack.i.bf16 %v2592_v21, %v2591_v0  ;;  %v5228_v24 = vpack.i.bf16 %v2575_v62, %v2591_v0  ;;  %v4350_v25 = vpack.i.bf16 %v2595_v22, %v2575_v62 }
 0x63f   : > { %v5235_v42 = vpack.c.bf16 %v2592_v21, %v2591_v0  ;;  %v2616_v43 = vpack.c.bf16 %v2596_v36, %v2595_v22  ;;  %v5242_v46 = vpack.c.bf16 %v2576_v18, %v2575_v62 }
 0x640   : > { %4286 = vrot.lane.b32.xlu1 %v5226_v10, %s4471_s11  ;;  %4301 = vrot.lane.b32.xlu2 %v4300_v23, %s4472_s12 }
 0x641   : > { %4276 = vrot.lane.b32.xlu0 %v5228_v24, %s4471_s11 }
 0x648   : > { %4296 = vrot.lane.b32.xlu1 %v5214_v60, %s4472_s12  ;;  %2626 = vrot.lane.b32.xlu2 %v5235_v42, %s4474_s14 }
 0x649   : > { %4281 = vrot.lane.b32.xlu0 %v4350_v25, %s4472_s12 }
 0x650   : > { %2630 = vrot.lane.b32.xlu1 %v2616_v43, %s4474_s14 }
 0x651   : > { %2628 = vrot.lane.b32.xlu0 %v5242_v46, %s4474_s14 }
 0x652   : > { %v4272_v47 = vpop.permute.xlu0 %4271 }
 0x653   : > { %v4274_v58 = vunpack.i.h.bf16 %v4272_v47  ;;  %v4273_v61 = vunpack.i.l.bf16 %v4272_v47 }
 0x655   : > { %v2598_v7 = vsel %vm342_vm0, %v4274_v58, 0.0  ;;  %v2578_v28 = vsel %vm342_vm0, %v4273_v61, %v4274_v58  ;;  %v2594_v39 = vsel %vm342_vm0, 0.0, %v4273_v61  ;;  %vm3253_vm0 = vcmask 1043456  }
 0x656   : > { %v4315_v41 = vpack.i.bf16 %v2594_v39, %v2597_v6  ;;  %v4320_v57 = vpack.i.bf16 %v2598_v7, %v2578_v28  ;;  %v4330_v5 = vpack.i.bf16 %v2594_v39, %v2593_v50  ;;  %v2619_v59 = vpack.c.bf16 %v2598_v7, %v2597_v6 }
 0x657   : > { %v5258_v56 = vpack.c.bf16 %v2578_v28, %v2577_v54  ;;  %v5264_v20 = vpack.c.bf16 %v2594_v39, %v2593_v50 }
 0x658   : > { %4316 = vrot.lane.b32.xlu1 %v4315_v41, %s4471_s11  ;;  %4321 = vrot.lane.b32.xlu2 %v4320_v57, %s4471_s11 }
 0x659   : > { %4306 = vrot.lane.b32.xlu0 %v5220_v51, %s4471_s11  ;;  %s268_s11 = scalar_lea.vmem %s5516_s6, %s3844_s23 }
 0x660   : > { %4326 = vrot.lane.b32.xlu1 %v4320_v57, %s4472_s12  ;;  %4331 = vrot.lane.b32.xlu2 %v4330_v5, %s4472_s12 }
 0x661   : > { %4311 = vrot.lane.b32.xlu0 %v4310_v45, %s4472_s12 }
 0x668   : > { %2636 = vrot.lane.b32.xlu1 %v2619_v59, %s4474_s14  ;;  %2888 = vrot.lane.b32.xlu2 %v2616_v43, %s4476_s16 }
 0x669   : > { %2634 = vrot.lane.b32.xlu0 %v5258_v56, %s4474_s14 }
 0x670   : > { %2632 = vrot.lane.b32.xlu2 %v5264_v20, %s4474_s14  ;;  %2886 = vrot.lane.b32.xlu1 %v5242_v46, %s4476_s16 }
 0x671   : > { %2884 = vrot.lane.b32.xlu0 %v5235_v42, %s4476_s16 }
 0x678   : > { %4346 = vrot.lane.b32.xlu2 %v4330_v5, %s4473_s13  ;;  %4341 = vrot.lane.b32.xlu1 %v4320_v57, %s4473_s13  ;;  %v3760_v5 = vld [vmem:[%s5514_s4 + $0x4] sm:$0x3] }
 0x679   : > { %4336 = vrot.lane.b32.xlu0 %v4310_v45, %s4473_s13 }
 0x680   : > { %4361 = vrot.lane.b32.xlu2 %v4300_v23, %s4473_s13  ;;  %4356 = vrot.lane.b32.xlu1 %v5214_v60, %s4473_s13 }
 0x681   : > { %4351 = vrot.lane.b32.xlu0 %v4350_v25, %s4473_s13 }
 0x688   : > { %4376 = vrot.lane.b32.xlu2 %v4320_v57, %s4475_s15  ;;  %4371 = vrot.lane.b32.xlu1 %v4315_v41, %s4475_s15 }
 0x689   : > { %4366 = vrot.lane.b32.xlu0 %v5220_v51, %s4475_s15 }
 0x68a   : > { %v4292_v48 = vpop.permute.xlu2 %4291 }
 0x68b   : > { %v4294_v53 = vunpack.i.h.bf16 %v4292_v48  ;;  %v4293_v38 = vunpack.i.l.bf16 %v4292_v48 }
 0x68d   : > { %v2739_v62 = vsel %vm530_vm13, %v4293_v38, %v4294_v53 }
 0x690   : > { %2894 = vrot.lane.b32.xlu2 %v2619_v59, %s4476_s16  ;;  %2892 = vrot.lane.b32.xlu1 %v5258_v56, %s4476_s16 }
 0x691   : > { %2890 = vrot.lane.b32.xlu0 %v5264_v20, %s4476_s16 }
 0x698   : > { %4391 = vrot.lane.b32.xlu2 %v5214_v60, %s4475_s15  ;;  %4386 = vrot.lane.b32.xlu1 %v5226_v10, %s4475_s15 }
 0x699   : > { %4381 = vrot.lane.b32.xlu0 %v5228_v24, %s4475_s15 }
 0x69a   : > { %v5294_v27 = vpop.permute.xlu2 %4301 }
 0x6a0   : > { %3107 = vrot.lane.b32.xlu2 %v5235_v42, %s4478_s18  ;;  %3111 = vrot.lane.b32.xlu1 %v2616_v43, %s4478_s18 }
 0x6a1   : > { %3109 = vrot.lane.b32.xlu0 %v5242_v46, %s4478_s18 }
 0x6a2   : > { %v5305_v11 = vpop.permute.xlu2 %2626 }
 0x6a8   : > { %4406 = vrot.lane.b32.xlu2 %v4320_v57, %s4477_s17  ;;  %3117 = vrot.lane.b32.xlu1 %v2619_v59, %s4478_s18 }
 0x6a9   : > { %3115 = vrot.lane.b32.xlu0 %v5258_v56, %s4478_s18 }
 0x6b0   : > { %3113 = vrot.lane.b32.xlu2 %v5264_v20, %s4478_s18  ;;  %4401 = vrot.lane.b32.xlu1 %v4315_v41, %s4477_s17 }
 0x6b1   : > { %4396 = vrot.lane.b32.xlu0 %v5220_v51, %s4477_s17 }
 0x6b2   : > { %v4287_v17 = vpop.permute.xlu1 %4286  ;;  %v4322_v31 = vpop.permute.xlu2 %4321 }
 0x6b3   : > { %v4277_v32 = vpop.permute.xlu0 %4276  ;;  %v4324_v16 = vunpack.i.h.bf16 %v4322_v31  ;;  %v4323_v63 = vunpack.i.l.bf16 %v4322_v31  ;;  %v4289_v8 = vunpack.i.h.bf16 %v4287_v17  ;;  %v4288_v26 = vunpack.i.l.bf16 %v4287_v17 }
 0x6b4   : > { %v4279_v12 = vunpack.i.h.bf16 %v4277_v32  ;;  %v4278_v36 = vunpack.i.l.bf16 %v4277_v32 }
 0x6b5   : > { %v2743_v54 = vsel %vm530_vm13, %v4323_v63, %v4324_v16  ;;  %v2738_v19 = vsel %vm530_vm13, %v4289_v8, %v4293_v38 }
 0x6b6   : > { %v2737_v21 = vsel %vm530_vm13, %v4279_v12, %v4288_v26  ;;  %v2736_v22 = vsel %vm530_vm13, %v4278_v36, %v4279_v12 }
 0x6b7   : > { %v3765_v23 = vpack.c.bf16 %v2738_v19, %v2736_v22 }
 0x6b8   : > { %4421 = vrot.lane.b32.xlu2 %v5214_v60, %s4477_s17  ;;  %4416 = vrot.lane.b32.xlu1 %v5226_v10, %s4477_s17  ;;  %v3772_v10 = vpack.c.bf16 %v2739_v62, %v2737_v21 }
 0x6b9   : > { %4411 = vrot.lane.b32.xlu0 %v5228_v24, %s4477_s17 }
 0x6ba   : > { %v5318_v33 = vpop.permute.xlu1 %4296  ;;  %v5320_v1 = vpop.permute.xlu2 %4331 }
 0x6bb   : > { %v5322_v34 = vpop.permute.xlu0 %4281  ;;  %v4334_v41 = vunpack.i.h.bf16 %v5320_v1  ;;  %v4333_v45 = vunpack.i.l.bf16 %v5320_v1  ;;  %v4299_v17 = vunpack.i.h.bf16 %v5318_v33  ;;  %v4298_v31 = vunpack.i.l.bf16 %v5318_v33 }
 0x6bc   : > { %v4284_v32 = vunpack.i.h.bf16 %v5322_v34  ;;  %v4283_v1 = vunpack.i.l.bf16 %v5322_v34  ;;  %v4303_v34 = vunpack.i.l.bf16 %v5294_v27 }
 0x6c1   : > { %3245 = vperm.xlu0 %4169, %v317_v2  }
 0x6c2   : > { %v2631_v15 = vpop.permute.xlu1 %2630  ;;  %v5327_v55 = vpop.permute.xlu2 %2888 }
 0x6c3   : > { %v2629_v14 = vpop.permute.xlu0 %2628 }
 0x6c4   : > { %v2638_v59 = vsel %vm417_vm7, %v5305_v11, %v2629_v14  ;;  %v2639_v48 = vsel %vm417_vm7, %v2629_v14, %v2631_v15  ;;  %v3743_v11 = vld [vmem:[%s5514_s4 + $0x2] sm:$0x3] }
 0x6ca   : > { %v4317_v13 = vpop.permute.xlu1 %4316  ;;  %v2633_v29 = vpop.permute.xlu2 %2632 }
 0x6cb   : > { %v4319_v9 = vunpack.i.h.bf16 %v4317_v13  ;;  %v4318_v35 = vunpack.i.l.bf16 %v4317_v13  ;;  %v4307_v30 = vpop.permute.xlu0 %4306 }
 0x6cc   : > { %v4309_v18 = vunpack.i.h.bf16 %v4307_v30  ;;  %v4308_v60 = vunpack.i.l.bf16 %v4307_v30 }
 0x6cd   : > { %v2742_v37 = vsel %vm530_vm13, %v4319_v9, %v4323_v63  ;;  %v4304_v63 = vunpack.i.h.bf16 %v5294_v27  ;;  %v2824_v9 = vsel %vm626_vm6, %v4298_v31, %v4299_v17  ;;  %v3775_v17 = vld [vmem:[%s5514_s4 + $0x6] sm:$0x3] }
 0x6ce   : > { %v2741_v50 = vsel %vm530_vm13, %v4309_v18, %v4318_v35  ;;  %v2740_v51 = vsel %vm530_vm13, %v4308_v60, %v4309_v18  ;;  %v2822_v35 = vsel %vm626_vm6, %v4283_v1, %v4284_v32 }
 0x6cf   : > { %v3769_v3 = vpack.c.bf16 %v2743_v54, %v2741_v50  ;;  %v3762_v4 = vpack.c.bf16 %v2742_v37, %v2740_v51  ;;  %v2823_v8 = vsel %vm626_vm6, %v4304_v63, %v4298_v31 }
 0x6d1   : > { %3763 = vmatpush.bf16.msk.msra.mxu0 %vm4720_vm11, %v3762_v4  ;;  %3770 = vmatpush.bf16.msk.msra.mxu1 %vm4731_vm12, %v3769_v3  ;;  %v2607_v3 = vld [vmem:[%s5514_s4] sm:$0x3] }
 0x6d2   : > { %v4327_v0 = vpop.permute.xlu1 %4326  ;;  %v5341_v25 = vpop.permute.xlu2 %4346 }
 0x6d3   : > { %v4312_v24 = vpop.permute.xlu0 %4311  ;;  %v4328_v6 = vunpack.i.l.bf16 %v4327_v0  ;;  %v4329_v7 = vunpack.i.h.bf16 %v4327_v0  ;;  %v4349_v53 = vunpack.i.h.bf16 %v5341_v25  ;;  %v4348_v37 = vunpack.i.l.bf16 %v5341_v25 }
 0x6d4   : > { %v4314_v28 = vunpack.i.h.bf16 %v4312_v24  ;;  %v4313_v39 = vunpack.i.l.bf16 %v4312_v24 }
 0x6d5   : > { %3766 = vmatpush.bf16.msk.msra.mxu0 %vm4720_vm11, %v3765_v23  ;;  %3773 = vmatpush.bf16.msk.msra.mxu1 %vm4731_vm12, %v3772_v10  ;;  %v2827_v2 = vsel %vm626_vm6, %v4334_v41, %v4328_v6  ;;  %v2828_v15 = vsel %vm626_vm6, %v4328_v6, %v4329_v7 }
 0x6d6   : > { %v2825_v14 = vsel %vm626_vm6, %v4333_v45, %v4313_v39  ;;  %v2826_v16 = vsel %vm626_vm6, %v4313_v39, %v4314_v28 }
 0x6d7   : > { %v3777_v26 = vpack.c.bf16 %v2827_v2, %v2825_v14 }
 0x6d8   : > { %3767 = vmatmul.msk.bf16.vlgmr.msra.gmra.mxu0 %vm426_vm5, %v3760_v5  ;;  %3774 = vmatmul.msk.bf16.vlgmr.msra.gmra.mxu1 %vm426_vm5, %v3760_v5 }
 0x6da   : > { %v2637_v43 = vpop.permute.xlu1 %2636  ;;  %v5350_v57 = vpop.permute.xlu2 %4361 }
 0x6db   : > { %v2635_v47 = vpop.permute.xlu0 %2634  ;;  %v4364_v4 = vunpack.i.h.bf16 %v5350_v57  ;;  %v4363_v24 = vunpack.i.l.bf16 %v5350_v57 }
 0x6dc   : > { %v2640_v58 = vsel %vm417_vm7, %v2633_v29, %v2635_v47  ;;  %v2641_v61 = vsel %vm417_vm7, %v2635_v47, %v2637_v43  ;;  %v3787_v29 = vpack.c.bf16 %v2824_v9, %v2822_v35  ;;  %v3790_v35 = vld [vmem:[%s5514_s4 + $0x8] sm:$0x3] }
 0x6dd   : > { %2655 = vmatpush.bf16.msrb.mxu2 %v2640_v58  ;;  %2668 = vmatpush.bf16.msrb.mxu3 %v2641_v61 }
 0x6e1   : > { %2656 = vmatpush.bf16.msrb.mxu2 %v2638_v59  ;;  %2669 = vmatpush.bf16.msrb.mxu3 %v2639_v48 }
 0x6e2   : > { %v5378_v33 = vpop.permute.xlu1 %2886  ;;  %v4377_v30 = vpop.permute.xlu2 %4376 }
 0x6e3   : > { %v5381_v13 = vpop.permute.xlu0 %2884  ;;  %v4379_v32 = vunpack.i.h.bf16 %v4377_v30  ;;  %v4378_v2 = vunpack.i.l.bf16 %v4377_v30 }
 0x6e4   : > { %3744 = vmatmul.msk.bf16.vlgmr.msrb.gmra.mxu2 %vm426_vm5, %v3743_v11  ;;  %3745 = vmatmul.msk.bf16.vlgmr.msrb.gmra.mxu3 %vm426_vm5, %v3743_v11  ;;  %v2896_v9 = vsel %vm718_vm14, %v5381_v13, %v5378_v33 }
 0x6e5   : > { %3748 = vmatpush.bf16.msk.msra.mxu2 %vm4563_vm3, %v5264_v20  ;;  %3755 = vmatpush.bf16.msk.msra.mxu3 %vm4571_vm4, %v5258_v56  ;;  %v3784_v20 = vpack.c.bf16 %v2828_v15, %v2826_v16  ;;  %v2821_v56 = vsel %vm626_vm6, %v4303_v34, %v4283_v1  ;;  %v3051_v34 = vsel %vm882_vm15, %v4378_v2, %v4379_v32 }
 0x6e6   : > { %v3780_v27 = vpack.c.bf16 %v2823_v8, %v2821_v56  ;;  %v2897_v56 = vsel %vm718_vm14, %v5378_v33, %v5327_v55 }
 0x6e9   : > { %3751 = vmatpush.bf16.msk.msra.mxu2 %vm4563_vm3, %v5235_v42  ;;  %3758 = vmatpush.bf16.msk.msra.mxu3 %vm4571_vm4, %v5242_v46 }
 0x6ea   : > { %v4342_v12 = vpop.permute.xlu1 %4341  ;;  %v2895_v21 = vpop.permute.xlu2 %2894 }
 0x6eb   : > { %v4337_v36 = vpop.permute.xlu0 %4336  ;;  %v4344_v42 = vunpack.i.h.bf16 %v4342_v12  ;;  %v4343_v18 = vunpack.i.l.bf16 %v4342_v12 }
 0x6ec   : > { %v4339_v46 = vunpack.i.h.bf16 %v4337_v36  ;;  %v4338_v60 = vunpack.i.l.bf16 %v4337_v36 }
 0x6ed   : > { %3778 = vmatpush.bf16.msk.msrb.mxu2 %vm4563_vm3, %v3777_v26  ;;  %3785 = vmatpush.bf16.msk.msrb.mxu3 %vm4571_vm4, %v3784_v20  ;;  %v2965_v38 = vsel %vm786_vm9, %v4349_v53, %v4343_v18  ;;  %v2966_v54 = vsel %vm786_vm9, %v4343_v18, %v4344_v42 }
 0x6ee   : > { %v2963_v50 = vsel %vm786_vm9, %v4348_v37, %v4338_v60  ;;  %v2964_v51 = vsel %vm786_vm9, %v4338_v60, %v4339_v46 }
 0x6ef   : > { %v3795_v22 = vpack.c.bf16 %v2965_v38, %v2963_v50  ;;  %v3802_v62 = vpack.c.bf16 %v2966_v54, %v2964_v51  ;;  %v3793_v54 = vld [vmem:[%s5514_s4 + $0xa] sm:$0x3] }
 0x6f1   : > { %3781 = vmatpush.bf16.msk.msrb.mxu2 %vm4563_vm3, %v3780_v27  ;;  %3788 = vmatpush.bf16.msk.msrb.mxu3 %vm4571_vm4, %v3787_v29 }
 0x6f2   : > { %v4357_v19 = vpop.permute.xlu1 %4356  ;;  %v4392_v57 = vpop.permute.xlu2 %4391 }
 0x6f3   : > { %v4359_v0 = vunpack.i.h.bf16 %v4357_v19  ;;  %v4358_v10 = vunpack.i.l.bf16 %v4357_v19  ;;  %v4352_v23 = vpop.permute.xlu0 %4351  ;;  %v4394_v27 = vunpack.i.h.bf16 %v4392_v57  ;;  %v4393_v29 = vunpack.i.l.bf16 %v4392_v57 }
 0x6f4   : > { %v4354_v25 = vunpack.i.h.bf16 %v4352_v23  ;;  %v4353_v43 = vunpack.i.l.bf16 %v4352_v23  ;;  %3752 = vmatmul.msk.bf16.vlgmr.msra.gmra.mxu2 %vm426_vm5, %v2607_v3  ;;  %3759 = vmatmul.msk.bf16.vlgmr.msra.gmra.mxu3 %vm426_vm5, %v2607_v3  ;;  %v3808_v3 = vld [vmem:[%s5514_s4 + $0xc] sm:$0x3] }
 0x6f5   : > { %v2961_v47 = vsel %vm786_vm9, %v4364_v4, %v4358_v10  ;;  %v2962_v58 = vsel %vm786_vm9, %v4358_v10, %v4359_v0  ;;  %3796 = vmatpush.bf16.msk.msra.mxu2 %vm4720_vm11, %v3795_v22  ;;  %3803 = vmatpush.bf16.msk.msra.mxu3 %vm4731_vm12, %v3802_v62  ;;  %v3047_v18 = vsel %vm882_vm15, %v4393_v29, %v4394_v27  ;;  %v3823_v0 = vld [vmem:[%s5514_s4 + $0xe] sm:$0x3] }
 0x6f6   : > { %v2959_v61 = vsel %vm786_vm9, %v4363_v24, %v4353_v43  ;;  %v2960_v6 = vsel %vm786_vm9, %v4353_v43, %v4354_v25 }
 0x6f7   : > { %v3798_v7 = vpack.c.bf16 %v2961_v47, %v2959_v61  ;;  %v3805_v28 = vpack.c.bf16 %v2962_v58, %v2960_v6 }
 0x6f9   : > { %3799 = vmatpush.bf16.msk.msra.mxu2 %vm4720_vm11, %v3798_v7  ;;  %3806 = vmatpush.bf16.msk.msra.mxu3 %vm4731_vm12, %v3805_v28 }
 0x6fa   : > { %v4372_v39 = vpop.permute.xlu1 %4371  ;;  %v3108_v8 = vpop.permute.xlu2 %3107 }
 0x6fb   : > { %v4367_v41 = vpop.permute.xlu0 %4366  ;;  %v4374_v5 = vunpack.i.h.bf16 %v4372_v39  ;;  %v4373_v45 = vunpack.i.l.bf16 %v4372_v39 }
 0x6fc   : > { %v4369_v59 = vunpack.i.h.bf16 %v4367_v41  ;;  %v4368_v48 = vunpack.i.l.bf16 %v4367_v41 }
 0x6fd   : > { %v3050_v14 = vsel %vm882_vm15, %v4374_v5, %v4378_v2 }
 0x6fe   : > { %v3049_v16 = vsel %vm882_vm15, %v4369_v59, %v4373_v45  ;;  %v3048_v63 = vsel %vm882_vm15, %v4368_v48, %v4369_v59 }
 0x6ff   : > { %v3817_v26 = vpack.c.bf16 %v3051_v34, %v3049_v16  ;;  %v3810_v20 = vpack.c.bf16 %v3050_v14, %v3048_v63 }
 0x702   : > { %v2893_v31 = vpop.permute.xlu1 %2892  ;;  %v4407_v38 = vpop.permute.xlu2 %4406 }
 0x703   : > { %v2899_v11 = vsel %vm718_vm14, %v2893_v31, %v2895_v21  ;;  %v2891_v1 = vpop.permute.xlu0 %2890  ;;  %v4409_v10 = vunpack.i.h.bf16 %v4407_v38  ;;  %v4408_v23 = vunpack.i.l.bf16 %v4407_v38 }
 0x704   : > { %v2898_v15 = vsel %vm718_vm14, %v2891_v1, %v2893_v31  ;;  %3782 = vmatmul.msk.bf16.vlgmr.msrb.gmra.mxu2 %vm426_vm5, %v3775_v17  ;;  %3789 = vmatmul.msk.bf16.vlgmr.msrb.gmra.mxu3 %vm426_vm5, %v3775_v17 }
 0x705   : > { %2913 = vmatpush.bf16.msrb.mxu0 %v2898_v15  ;;  %2926 = vmatpush.bf16.msrb.mxu1 %v2899_v11  ;;  %v3189_v7 = vsel %vm1042_vm2, %v4408_v23, %v4409_v10 }
 0x709   : > { %2914 = vmatpush.bf16.msrb.mxu0 %v2896_v9  ;;  %2927 = vmatpush.bf16.msrb.mxu1 %v2897_v56 }
 0x70a   : > { %v4387_v30 = vpop.permute.xlu1 %4386  ;;  %v3114_v40 = vpop.permute.xlu2 %3113 }
 0x70b   : > { %v4389_v13 = vunpack.i.h.bf16 %v4387_v30  ;;  %v4388_v12 = vunpack.i.l.bf16 %v4387_v30  ;;  %v4382_v36 = vpop.permute.xlu0 %4381 }
 0x70c   : > { %v4384_v42 = vunpack.i.h.bf16 %v4382_v36  ;;  %v4383_v55 = vunpack.i.l.bf16 %v4382_v36  ;;  %3791 = vmatmul.msk.bf16.vlgmr.msrb.gmra.mxu0 %vm426_vm5, %v3790_v35  ;;  %3792 = vmatmul.msk.bf16.vlgmr.msrb.gmra.mxu1 %vm426_vm5, %v3790_v35 }
 0x70d   : > { %3811 = vmatpush.bf16.msk.msra.mxu0 %vm4563_vm3, %v3810_v20  ;;  %3818 = vmatpush.bf16.msk.msra.mxu1 %vm4571_vm4, %v3817_v26  ;;  %v3046_v33 = vsel %vm882_vm15, %v4389_v13, %v4393_v29 }
 0x70e   : > { %v3045_v46 = vsel %vm882_vm15, %v4384_v42, %v4388_v12  ;;  %v3044_v60 = vsel %vm882_vm15, %v4383_v55, %v4384_v42 }
 0x70f   : > { %v3820_v53 = vpack.c.bf16 %v3047_v18, %v3045_v46  ;;  %v3813_v37 = vpack.c.bf16 %v3046_v33, %v3044_v60 }
 0x711   : > { %3814 = vmatpush.bf16.msk.msra.mxu0 %vm4563_vm3, %v3813_v37  ;;  %3821 = vmatpush.bf16.msk.msra.mxu1 %vm4571_vm4, %v3820_v53 }
 0x712   : > { %v3112_v50 = vpop.permute.xlu1 %3111  ;;  %v4422_v41 = vpop.permute.xlu2 %4421 }
 0x713   : > { %v3110_v51 = vpop.permute.xlu0 %3109  ;;  %v4424_v45 = vunpack.i.h.bf16 %v4422_v41  ;;  %v4423_v59 = vunpack.i.l.bf16 %v4422_v41 }
 0x714   : > { %3800 = vmatmul.msk.bf16.vlgmr.msra.gmra.mxu2 %vm426_vm5, %v3793_v54  ;;  %3807 = vmatmul.msk.bf16.vlgmr.msra.gmra.mxu3 %vm426_vm5, %v3793_v54  ;;  %v3119_v22 = vsel %vm974_vm1, %v3108_v8, %v3110_v51  ;;  %v3120_v62 = vsel %vm974_vm1, %v3110_v51, %v3112_v50  ;;  %v3826_v8 = vld [vmem:[%s5514_s4 + $0x10] sm:$0x3] }
 0x715   : > { %v3185_v15 = vsel %vm1042_vm2, %v4423_v59, %v4424_v45 }
 0x71a   : > { %v3118_v4 = vpop.permute.xlu1 %3117 }
 0x71b   : > { %v3116_v19 = vpop.permute.xlu0 %3115 }
 0x71c   : > { %v3121_v44 = vsel %vm974_vm1, %v3114_v40, %v3116_v19  ;;  %v3122_v21 = vsel %vm974_vm1, %v3116_v19, %v3118_v4  ;;  %3815 = vmatmul.msk.bf16.vlgmr.msra.gmra.mxu0 %vm426_vm5, %v3808_v3  ;;  %3822 = vmatmul.msk.bf16.vlgmr.msra.gmra.mxu1 %vm426_vm5, %v3808_v3 }
 0x71d   : > { %3136 = vmatpush.bf16.msrb.mxu2 %v3121_v44  ;;  %3149 = vmatpush.bf16.msrb.mxu3 %v3122_v21 }
 0x721   : > { %3137 = vmatpush.bf16.msrb.mxu2 %v3119_v22  ;;  %3150 = vmatpush.bf16.msrb.mxu3 %v3120_v62 }
 0x722   : > { %v4402_v24 = vpop.permute.xlu1 %4401 }
 0x723   : > { %v4404_v25 = vunpack.i.h.bf16 %v4402_v24  ;;  %v4403_v43 = vunpack.i.l.bf16 %v4402_v24  ;;  %v4397_v47 = vpop.permute.xlu0 %4396 }
 0x724   : > { %v4399_v58 = vunpack.i.h.bf16 %v4397_v47  ;;  %v4398_v61 = vunpack.i.l.bf16 %v4397_v47  ;;  %3824 = vmatmul.msk.bf16.vlgmr.msrb.gmra.mxu2 %vm426_vm5, %v3823_v0  ;;  %3825 = vmatmul.msk.bf16.vlgmr.msrb.gmra.mxu3 %vm426_vm5, %v3823_v0 }
 0x725   : > { %v3188_v6 = vsel %vm1042_vm2, %v4404_v25, %v4408_v23 }
 0x726   : > { %v3187_v28 = vsel %vm1042_vm2, %v4399_v58, %v4403_v43  ;;  %v3186_v39 = vsel %vm1042_vm2, %v4398_v61, %v4399_v58 }
 0x727   : > { %v3835_v57 = vpack.c.bf16 %v3189_v7, %v3187_v28  ;;  %v3828_v5 = vpack.c.bf16 %v3188_v6, %v3186_v39 }
 0x729   : > { %3829 = vmatpush.bf16.msk.msrb.mxu0 %vm4720_vm11, %v3828_v5  ;;  %3836 = vmatpush.bf16.msk.msrb.mxu1 %vm4731_vm12, %v3835_v57 }
 0x72a   : > { %v4417_v48 = vpop.permute.xlu1 %4416 }
 0x72b   : > { %v4419_v17 = vunpack.i.h.bf16 %v4417_v48  ;;  %v4418_v31 = vunpack.i.l.bf16 %v4417_v48  ;;  %v4412_v32 = vpop.permute.xlu0 %4411 }
 0x72c   : > { %v4414_v2 = vunpack.i.h.bf16 %v4412_v32  ;;  %v4413_v11 = vunpack.i.l.bf16 %v4412_v32 }
 0x72d   : > { %v3184_v1 = vsel %vm1042_vm2, %v4419_v17, %v4423_v59 }
 0x72e   : > { %v3183_v14 = vsel %vm1042_vm2, %v4414_v2, %v4418_v31  ;;  %v3182_v16 = vsel %vm1042_vm2, %v4413_v11, %v4414_v2 }
 0x72f   : > { %v3838_v63 = vpack.c.bf16 %v3185_v15, %v3183_v14  ;;  %v3831_v34 = vpack.c.bf16 %v3184_v1, %v3182_v16 }
 0x731   : > { %3832 = vmatpush.bf16.msk.msrb.mxu0 %vm4720_vm11, %v3831_v34  ;;  %3839 = vmatpush.bf16.msk.msrb.mxu1 %vm4731_vm12, %v3838_v63 }
 0x733   : > { %v3246_v59 = vpop.permute.xlu0 %3245 }
 0x734   : > { %3833 = vmatmul.msk.bf16.vlgmr.msrb.gmra.mxu0 %vm426_vm5, %v3826_v8  ;;  %3840 = vmatmul.msk.bf16.vlgmr.msrb.gmra.mxu1 %vm426_vm5, %v3826_v8 }
 0x755   : > { %v2778_v26 = vpop.f32.mrf.mxu0  ;;  %v2791_v20 = vpop.f32.mrf.mxu1 }
 0x75d   : > { %v2780_v9 = vpop.f32.mrf.mxu0  ;;  %v2793_v56 = vpop.f32.mrf.mxu1 }
 0x767   : > { %v2658_v35 = vpop.f32.mrf.mxu2  ;;  %v2671_v27 = vpop.f32.mrf.mxu3 }
 0x76f   : > { %v2660_v29 = vpop.f32.mrf.mxu2  ;;  %v2673_v49 = vpop.f32.mrf.mxu3 }
 0x777   : > { %v2687_v30 = vpop.f32.mrf.mxu2  ;;  %v2700_v13 = vpop.f32.mrf.mxu3 }
 0x778   : > { %v2688_v51 = vadd.f32 %v2687_v30, %v2658_v35  ;;  %v2701_v3 = vadd.f32 %v2700_v13, %v2671_v27 }
 0x77a   : > { %v2795_v21 = vadd.f32 %v2778_v26, %v2688_v51  ;;  %v2796_v22 = vadd.f32 %v2791_v20, %v2701_v3 }
 0x77f   : > { %v2689_v52 = vpop.f32.mrf.mxu2  ;;  %v2702_v12 = vpop.f32.mrf.mxu3 }
 0x787   : > { %v2863_v36 = vpop.f32.mrf.mxu2  ;;  %v2876_v42 = vpop.f32.mrf.mxu3 }
 0x788   : > { %v2880_v62 = vadd.f32 %v2863_v36, %v2795_v21  ;;  %v2881_v0 = vadd.f32 %v2876_v42, %v2796_v22 }
 0x789   : > { %v2916_v55 = vpop.f32.mrf.mxu0  ;;  %v2929_v33 = vpop.f32.mrf.mxu1 }
 0x78a   : > { %v2933_v24 = vadd.f32 %v2916_v55, %v2880_v62  ;;  %v2934_v25 = vadd.f32 %v2929_v33, %v2881_v0 }
 0x78f   : > { %v2865_v18 = vpop.f32.mrf.mxu2  ;;  %v2878_v46 = vpop.f32.mrf.mxu3 }
 0x791   : > { %v2918_v60 = vpop.f32.mrf.mxu0  ;;  %v2931_v53 = vpop.f32.mrf.mxu1 }
 0x797   : > { %v3001_v37 = vpop.f32.mrf.mxu2  ;;  %v3014_v38 = vpop.f32.mrf.mxu3 }
 0x798   : > { %v3018_v43 = vadd.f32 %v3001_v37, %v2933_v24  ;;  %v3019_v47 = vadd.f32 %v3014_v38, %v2934_v25 }
 0x799   : > { %v3086_v54 = vpop.f32.mrf.mxu0  ;;  %v3099_v50 = vpop.f32.mrf.mxu1 }
 0x79a   : > { %v3103_v58 = vadd.f32 %v3086_v54, %v3018_v43  ;;  %v3104_v61 = vadd.f32 %v3099_v50, %v3019_v47 }
 0x79f   : > { %v3003_v4 = vpop.f32.mrf.mxu2  ;;  %v3016_v40 = vpop.f32.mrf.mxu3 }
 0x7a1   : > { %v3088_v19 = vpop.f32.mrf.mxu0  ;;  %v3101_v44 = vpop.f32.mrf.mxu1 }
 0x7a7   : > { %v3139_v10 = vpop.f32.mrf.mxu2  ;;  %v3152_v23 = vpop.f32.mrf.mxu3 }
 0x7a8   : > { %v3156_v28 = vadd.f32 %v3139_v10, %v3103_v58  ;;  %v3157_v39 = vadd.f32 %v3152_v23, %v3104_v61 }
 0x7af   : > { %v3154_v6 = vpop.f32.mrf.mxu3  ;;  %v3141_v7 = vpop.f32.mrf.mxu2 }
 0x7b1   : > { %v3224_v41 = vpop.f32.mrf.mxu0  ;;  %v3237_v57 = vpop.f32.mrf.mxu1 }
 0x7b2   : > { %v3241_v5 = vadd.f32 %v3224_v41, %v3156_v28  ;;  %v3242_v45 = vadd.f32 %v3237_v57, %v3157_v39 }
 0x7b4   : > { %v3249_v48 = vadd.f32 %v3246_v59, %v3242_v45  ;;  %v3248_v17 = vadd.f32 %v3246_v59, %v3241_v5 }
 0x7b6   : > { %v3252_v31 = vrot.slane %v3249_v48, 4 }
 0x7b8   : > { %v3254_v32 = vsel %vm3253_vm0, %v3248_v17, %v3252_v31 }
 0x7b9   : > { %3256 = vst [vmem:[%s268_s11] sm:$0x77] %v3254_v32  ;;  %v3226_v2 = vpop.f32.mrf.mxu0  ;;  %v3239_v11 = vpop.f32.mrf.mxu1 }
 0x7ba PF: > { %s17_s21 = sadd.s32 1, %s4465_s21  }
 0x7bb   : > { %p14_p7 = scmp.ge.s32.totalorder %s17_s21, 4  }
 0x7bd   :  { %16 = sbr.rel (!%p14_p7) target bundleno = 1 (0x1), region = 111 }
 0x7c2   :  { %3278 = vsyncpa [#allocation3], 1 }
 0x7c3   :  { %3280 = vsyncpa [#allocation3 + $0x1], 1 }

</bundles_post_ra>
